<compile_context>
chip_gen: v7x
topology: tpu7x:2x2x1
jax: 0.10.0
libtpu: 0.0.40
codegen_flags: <defaults>
</compile_context>

<pallas_src>
import functools

import jax
import jax.numpy as jnp
from jax import lax
from jax.experimental import pallas as pl
from jax.experimental.pallas import tpu as pltpu


# ----------------------------------------------------------------------------
# Fused Pallas kernel: conv1->pool1->conv2->pool2->conv3->pool3->fc1->fc2
# ----------------------------------------------------------------------------
def _lmk_fused_kernel(
    patches_ref, w1_ref, m1_ref, a1_ref,
    w2_ref, m2_ref, a2_ref,
    w3_ref, m3_ref, a3_ref,
    fw1_ref, fb1_ref, fw2_ref, fb2_ref,
    out_ref,
    pad2, pad3, ybuf1, wbuf1, ybuf2, wbuf2, ybuf3, wbuf3, tapbuf, fcbuf,
):
    f32 = jnp.float32
    BB, H, W, _ = patches_ref.shape
    C1 = w1_ref.shape[1]
    C2 = w2_ref.shape[3]
    C3 = w3_ref.shape[3]
    H2, W2 = H // 2, W // 2          # after pool1
    H3, W3 = H2 // 2, W2 // 2        # after pool2
    H4, W4 = H3 // 2, W3 // 2        # after pool3

    # zero borders for the in-kernel 'same' padding of conv2 / conv3
    pad2[...] = jnp.zeros_like(pad2)
    pad3[...] = jnp.zeros_like(pad3)

    # ---------------- conv1 (1 -> C1): single K=9 im2col matmul + BN + ReLU ----
    HC = 4                                    # row chunk keeps values inside the vreg file
    for h0 in range(0, H, HC):
        xc = patches_ref[:, h0:h0 + HC, :, :].reshape(BB * HC * W, 9)
        yc = jnp.dot(xc, w1_ref[...], preferred_element_type=f32)
        yc = jnp.maximum(yc * m1_ref[...] + a1_ref[...], 0.0)
        ybuf1[:, pl.ds(h0 * W, HC * W), :] = yc.reshape(BB, HC * W, C1)

    # ---------------- pool1: 2x2 max -> pad2 interior ---------------------------
    cr = (H * W) // 2                         # rows handled per w-pool chunk
    for s in range(2):
        e = ybuf1[:, pl.ds(s * cr, cr // 2, 2), :]        # even w columns
        o = ybuf1[:, pl.ds(s * cr + 1, cr // 2, 2), :]    # odd  w columns
        wbuf1[:, pl.ds(s * (cr // 2), cr // 2), :] = jnp.maximum(e, o)
    for ho in range(H2):
        a = wbuf1[:, pl.ds((2 * ho) * W2, W2), :]          # conv row 2*ho
        b = wbuf1[:, pl.ds((2 * ho + 1) * W2, W2), :]      # conv row 2*ho+1
        pad2[:, 1 + ho, 1:1 + W2, :] = jnp.maximum(a, b)

    # ---------------- conv2 (C1 -> C2): 9 accumulating matmuls, M = BB*H2*W2 ----
    M2 = BB * H2 * W2
    acc = jnp.zeros((M2, C2), f32)
    for dy in range(3):
        for dx in range(3):
            tap = pad2[:, dy:dy + H2, dx:dx + W2, :].reshape(M2, C1)
            acc = acc + jnp.dot(tap, w2_ref[dy, dx], preferred_element_type=f32)
    y2 = jnp.maximum(acc * m2_ref[...] + a2_ref[...], 0.0)
    ybuf2[...] = y2.reshape(BB, H2 * W2, C2)

    # ---------------- pool2 -> pad3 interior ------------------------------------
    hw2 = H2 * W2
    e = ybuf2[:, pl.ds(0, hw2 // 2, 2), :]
    o = ybuf2[:, pl.ds(1, hw2 // 2, 2), :]
    wbuf2[...] = jnp.maximum(e, o)
    for ho in range(H3):
        a = wbuf2[:, pl.ds((2 * ho) * W3, W3), :]
        b = wbuf2[:, pl.ds((2 * ho + 1) * W3, W3), :]
        pad3[:, 1 + ho, 1:1 + W3, :] = jnp.maximum(a, b)

    # ---------------- conv3 (C2 -> C3): 9 accumulating matmuls, M = BB*H3*W3 ----
    # Taps are staged through a small VMEM buffer so every value reshape stays
    # tile-preserving (H3*W3 = 16 rows) even though W3 < 8 sublanes.
    M3 = BB * H3 * W3
    acc = jnp.zeros((M3, C3), f32)
    for dy in range(3):
        for dx in range(3):
            for h in range(H3):
                tapbuf[:, pl.ds(h * W3, W3), :] = pad3[:, h + dy, dx:dx + W3, :]
            tap = tapbuf[...].reshape(M3, C2)
            acc = acc + jnp.dot(tap, w3_ref[dy, dx], preferred_element_type=f32)
    y3 = jnp.maximum(acc * m3_ref[...] + a3_ref[...], 0.0)
    ybuf3[...] = y3.reshape(BB, H3 * W3, C3)

    # ---------------- pool3 -> FC input (BB, H4*W4, C3) in (h, w, c) order ------
    hw3 = H3 * W3
    e = ybuf3[:, pl.ds(0, hw3 // 2, 2), :]
    o = ybuf3[:, pl.ds(1, hw3 // 2, 2), :]
    wbuf3[...] = jnp.maximum(e, o)
    for ho in range(H4):
        for wo in range(W4):
            a = wbuf3[:, pl.ds((2 * ho) * W4 + wo, 1), :]
            b = wbuf3[:, pl.ds((2 * ho + 1) * W4 + wo, 1), :]
            fcbuf[:, pl.ds(ho * W4 + wo, 1), :] = jnp.maximum(a, b)

    # ---------------- fc1 + ReLU + (dropout = identity in eval) + fc2 -----------
    nh = fb1_ref.shape[1]
    acc = jnp.zeros((BB, nh), f32)
    for j in range(H4 * W4):                  # K-chunked fc1: one 128-wide chunk per pooled pixel
        acc = acc + jnp.dot(fcbuf[:, j, :], fw1_ref[pl.ds(j * C3, C3), :],
                            preferred_element_type=f32)
    h1 = jnp.maximum(acc + fb1_ref[...], 0.0)
    # TODO(synk): nn.Dropout(0.3) training-mode RNG masking not implemented; eval mode is identity.
    out_ref[...] = (jnp.dot(h1, fw2_ref[...], preferred_element_type=f32)
                    + fb2_ref[...]).astype(out_ref.dtype)


# ----------------------------------------------------------------------------
# Host-side parameter preparation (done once, outside the forward pass)
# ----------------------------------------------------------------------------
def prepare_params(p, input_shape, num_classes):
    """Fold BN+bias, reshape conv1 weights, bake the torch flatten order into fc1,
    and pad fc2 to 128 output lanes."""
    _, H, W = input_shape
    C3 = p["w3"].shape[3]
    H4, W4 = H // 8, W // 8

    q = {}
    q["w1r"] = p["w1"].reshape(9, -1)                                   # (9, 32)
    q["m1"] = p["scale1"].reshape(1, -1)
    q["a1"] = (p["cb1"] * p["scale1"] + p["shift1"]).reshape(1, -1)
    q["w2"] = p["w2"]
    q["m2"] = p["scale2"].reshape(1, -1)
    q["a2"] = (p["cb2"] * p["scale2"] + p["shift2"]).reshape(1, -1)
    q["w3"] = p["w3"]
    q["m3"] = p["scale3"].reshape(1, -1)
    q["a3"] = (p["cb3"] * p["scale3"] + p["shift3"]).reshape(1, -1)

    # kernel flattens conv3 output in (h, w, c) order; torch flattens in (c, h, w).
    j = jnp.arange(H4 * W4)
    c = jnp.arange(C3)
    perm = (c[None, :] * (H4 * W4) + j[:, None]).reshape(-1)            # perm[j*C3 + c] = c*(H4*W4) + j
    q["fw1"] = p["fw1"][perm, :]                                        # (512, 256)
    q["fb1"] = p["fb1"].reshape(1, -1)

    ncls = p["fw2"].shape[1]
    ncp = ((ncls + 127) // 128) * 128                                   # lane-dense output (pad 35 -> 128)
    q["fw2"] = jnp.zeros((p["fw2"].shape[0], ncp), jnp.float32).at[:, :ncls].set(p["fw2"])
    q["fb2"] = jnp.zeros((1, ncp), jnp.float32).at[0, :ncls].set(p["fb2"])
    return q


# ----------------------------------------------------------------------------
# Forward wrapper: one tiny XLA op (layer-1 patches) + ONE fused pallas_call
# ----------------------------------------------------------------------------
def lmk_cnn_forward(x_nchw, q, num_classes):
    N, cin, H, W = x_nchw.shape
    assert cin == 1 and H % 8 == 0 and W % 8 == 0

    C1 = q["w1r"].shape[1]
    C2 = q["w2"].shape[3]
    C3 = q["w3"].shape[3]
    H2, W2 = H // 2, W // 2
    H3, W3 = H2 // 2, W2 // 2
    H4, W4 = H3 // 2, W3 // 2
    ncp = q["fw2"].shape[1]

    # layer-1 im2col patches (K=9). Cheap: single fused XLA op on a 2 KB input;
    # lets conv1 be one well-shaped matmul instead of K=1 taps.
    xp = jnp.pad(x_nchw[:, 0], ((0, 0), (1, 1), (1, 1)))
    patches = jnp.stack([xp[:, dy:dy + H, dx:dx + W]
                         for dy in range(3) for dx in range(3)], axis=-1)   # (N, H, W, 9)

    # images per grid step (folds the batch into the matmul M dimension)
    BB = next(b for b in (4, 2, 1) if N % b == 0)
    grid = (N // BB,)

    in_specs = [
        pl.BlockSpec((BB, H, W, 9), lambda n: (n, 0, 0, 0)),
        pl.BlockSpec((9, C1), lambda n: (0, 0)),
        pl.BlockSpec((1, C1), lambda n: (0, 0)),
        pl.BlockSpec((1, C1), lambda n: (0, 0)),
        pl.BlockSpec((3, 3, C1, C2), lambda n: (0, 0, 0, 0)),
        pl.BlockSpec((1, C2), lambda n: (0, 0)),
        pl.BlockSpec((1, C2), lambda n: (0, 0)),
        pl.BlockSpec((3, 3, C2, C3), lambda n: (0, 0, 0, 0)),
        pl.BlockSpec((1, C3), lambda n: (0, 0)),
        pl.BlockSpec((1, C3), lambda n: (0, 0)),
        pl.BlockSpec(q["fw1"].shape, lambda n: (0, 0)),
        pl.BlockSpec((1, q["fb1"].shape[1]), lambda n: (0, 0)),
        pl.BlockSpec(q["fw2"].shape, lambda n: (0, 0)),
        pl.BlockSpec((1, ncp), lambda n: (0, 0)),
    ]
    scratch = [
        pltpu.VMEM((BB, H2 + 2, W2 + 2, C1), jnp.float32),   # pad2 (zero-bordered conv2 input)
        pltpu.VMEM((BB, H3 + 2, W3 + 2, C2), jnp.float32),   # pad3
        pltpu.VMEM((BB, H * W, C1), jnp.float32),            # ybuf1 (conv1 out)
        pltpu.VMEM((BB, (H * W) // 2, C1), jnp.float32),     # wbuf1 (w-pooled)
        pltpu.VMEM((BB, H2 * W2, C2), jnp.float32),          # ybuf2
        pltpu.VMEM((BB, (H2 * W2) // 2, C2), jnp.float32),   # wbuf2
        pltpu.VMEM((BB, H3 * W3, C3), jnp.float32),          # ybuf3
        pltpu.VMEM((BB, (H3 * W3) // 2, C3), jnp.float32),   # wbuf3
        pltpu.VMEM((BB, H3 * W3, C2), jnp.float32),          # tapbuf (conv3 im2col staging)
        pltpu.VMEM((BB, H4 * W4, C3), jnp.float32),          # fcbuf  (flattened fc input)
    ]

    out = pl.pallas_call(
        _lmk_fused_kernel,
        out_shape=jax.ShapeDtypeStruct((N, ncp), jnp.float32),
        grid=grid,
        in_specs=in_specs,
        out_specs=pl.BlockSpec((BB, ncp), lambda n: (n, 0)),
        scratch_shapes=scratch,
        compiler_params=pltpu.CompilerParams(dimension_semantics=("parallel",)),
    )(patches, q["w1r"], q["m1"], q["a1"], q["w2"], q["m2"], q["a2"],
      q["w3"], q["m3"], q["a3"], q["fw1"], q["fb1"], q["fw2"], q["fb2"])

    return out[:, :num_classes]


# ----------------------------------------------------------------------------
# Deterministic parameter init (synthetic; shapes follow the nn.Module)
# ----------------------------------------------------------------------------
def init_params(key, flat_size, num_classes):
    ks = jax.random.split(key, 13)

    def conv_w(k, cin, cout):
        return jax.random.normal(k, (3, 3, cin, cout), jnp.float32) / jnp.sqrt(9.0 * cin)

    def bn_fold(k, c):
        kg, kb, km, kv = jax.random.split(k, 4)
        gamma = 1.0 + 0.1 * jax.random.normal(kg, (c,), jnp.float32)
        beta = 0.1 * jax.random.normal(kb, (c,), jnp.float32)
        mean = 0.1 * jax.random.normal(km, (c,), jnp.float32)
        var = 1.0 + 0.1 * jnp.abs(jax.random.normal(kv, (c,), jnp.float32))
        scale = gamma / jnp.sqrt(var + 1e-5)
        shift = beta - mean * scale
        return scale, shift

    p = {}
    p["w1"] = conv_w(ks[0], 1, 32)
    p["cb1"] = 0.1 * jax.random.normal(ks[1], (32,), jnp.float32)
    p["scale1"], p["shift1"] = bn_fold(ks[2], 32)
    p["w2"] = conv_w(ks[3], 32, 64)
    p["cb2"] = 0.1 * jax.random.normal(ks[4], (64,), jnp.float32)
    p["scale2"], p["shift2"] = bn_fold(ks[5], 64)
    p["w3"] = conv_w(ks[6], 64, 128)
    p["cb3"] = 0.1 * jax.random.normal(ks[7], (128,), jnp.float32)
    p["scale3"], p["shift3"] = bn_fold(ks[8], 128)
    p["fw1"] = jax.random.normal(ks[9], (flat_size, 256), jnp.float32) / jnp.sqrt(float(flat_size))
    p["fb1"] = 0.1 * jax.random.normal(ks[10], (256,), jnp.float32)
    p["fw2"] = jax.random.normal(ks[11], (256, num_classes), jnp.float32) / jnp.sqrt(256.0)
    p["fb2"] = 0.1 * jax.random.normal(ks[12], (num_classes,), jnp.float32)
    return p


# ----------------------------------------------------------------------------
# Pure-JAX reference (for correctness check only)
# ----------------------------------------------------------------------------
def ref_forward(x_nchw, p):
    x = jnp.transpose(x_nchw, (0, 2, 3, 1))

    def block(x, w, b, scale, shift):
        y = lax.conv_general_dilated(x, w, (1, 1), ((1, 1), (1, 1)),
                                     dimension_numbers=("NHWC", "HWIO", "NHWC"))
        y = (y + b) * scale + shift
        y = jnp.maximum(y, 0.0)
        return lax.reduce_window(y, -jnp.inf, lax.max, (1, 2, 2, 1), (1, 2, 2, 1), "VALID")

    x = block(x, p["w1"], p["cb1"], p["scale1"], p["shift1"])
    x = block(x, p["w2"], p["cb2"], p["scale2"], p["shift2"])
    x = block(x, p["w3"], p["cb3"], p["scale3"], p["shift3"])
    x = jnp.transpose(x, (0, 3, 1, 2)).reshape(x.shape[0], -1)   # torch (C,H,W) flatten
    h = jnp.maximum(x @ p["fw1"] + p["fb1"], 0.0)
    return h @ p["fw2"] + p["fb2"]


# ----------------------------------------------------------------------------
if __name__ == "__main__":
    num_classes = 35
    N, H, W = 2, 16, 16                        # input_shape = (1, 16, 16)
    flat_size = 128 * (H // 8) * (W // 8)      # 128 * 2 * 2 = 512

    key = jax.random.PRNGKey(0)
    kx, kp = jax.random.split(key)
    x = jax.random.normal(kx, (N, 1, H, W), jnp.float32)   # NCHW like the torch module
    params = init_params(kp, flat_size, num_classes)
    prepared = prepare_params(params, (1, H, W), num_classes)

    fwd = jax.jit(functools.partial(lmk_cnn_forward, num_classes=num_classes))
    out = jax.block_until_ready(fwd(x, prepared))

    ref = ref_forward(x, params)
    assert out.shape == (N, num_classes), out.shape
    err = float(jnp.max(jnp.abs(out - ref)))
    assert err < 1e-3, f"max abs error vs reference: {err}"

    print("KERNEL_OK")
</pallas_src>

<mosaic_0001>
module attributes {stable_mosaic.version = 11 : i64} {
  func.func @_lmk_fused_kernel(%arg0: i32, %arg1: memref<2x16x16x9xf32, #tpu.memory_space<vmem>>, %arg2: memref<9x32xf32, #tpu.memory_space<vmem>>, %arg3: memref<1x32xf32, #tpu.memory_space<vmem>>, %arg4: memref<1x32xf32, #tpu.memory_space<vmem>>, %arg5: memref<3x3x32x64xf32, #tpu.memory_space<vmem>>, %arg6: memref<1x64xf32, #tpu.memory_space<vmem>>, %arg7: memref<1x64xf32, #tpu.memory_space<vmem>>, %arg8: memref<3x3x64x128xf32, #tpu.memory_space<vmem>>, %arg9: memref<1x128xf32, #tpu.memory_space<vmem>>, %arg10: memref<1x128xf32, #tpu.memory_space<vmem>>, %arg11: memref<512x256xf32, #tpu.memory_space<vmem>>, %arg12: memref<1x256xf32, #tpu.memory_space<vmem>>, %arg13: memref<256x128xf32, #tpu.memory_space<vmem>>, %arg14: memref<1x128xf32, #tpu.memory_space<vmem>>, %arg15: memref<2x128xf32, #tpu.memory_space<vmem>>, %arg16: memref<2x10x10x32xf32, #tpu.memory_space<vmem>>, %arg17: memref<2x6x6x64xf32, #tpu.memory_space<vmem>>, %arg18: memref<2x256x32xf32, #tpu.memory_space<vmem>>, %arg19: memref<2x128x32xf32, #tpu.memory_space<vmem>>, %arg20: memref<2x64x64xf32, #tpu.memory_space<vmem>>, %arg21: memref<2x32x64xf32, #tpu.memory_space<vmem>>, %arg22: memref<2x16x128xf32, #tpu.memory_space<vmem>>, %arg23: memref<2x8x128xf32, #tpu.memory_space<vmem>>, %arg24: memref<2x16x64xf32, #tpu.memory_space<vmem>>, %arg25: memref<2x4x128xf32, #tpu.memory_space<vmem>>) attributes {dimension_semantics = [#tpu.dimension_semantics<parallel>], iteration_bounds = array<i64: 1>, scalar_prefetch = 0 : i64, scratch_operands = 10 : i64, tpu.core_type = #tpu.core_type<tc>, window_params = [{transform_indices = @transform_0, window_bounds = array<i64: 2, 16, 16, 9>}, {pipeline_mode = #tpu.pipeline_mode<synchronous>, transform_indices = @transform_1, window_bounds = array<i64: 9, 32>}, {pipeline_mode = #tpu.pipeline_mode<synchronous>, transform_indices = @transform_2, window_bounds = array<i64: 1, 32>}, {pipeline_mode = #tpu.pipeline_mode<synchronous>, transform_indices = @transform_3, window_bounds = array<i64: 1, 32>}, {pipeline_mode = #tpu.pipeline_mode<synchronous>, transform_indices = @transform_4, window_bounds = array<i64: 3, 3, 32, 64>}, {pipeline_mode = #tpu.pipeline_mode<synchronous>, transform_indices = @transform_5, window_bounds = array<i64: 1, 64>}, {pipeline_mode = #tpu.pipeline_mode<synchronous>, transform_indices = @transform_6, window_bounds = array<i64: 1, 64>}, {pipeline_mode = #tpu.pipeline_mode<synchronous>, transform_indices = @transform_7, window_bounds = array<i64: 3, 3, 64, 128>}, {pipeline_mode = #tpu.pipeline_mode<synchronous>, transform_indices = @transform_8, window_bounds = array<i64: 1, 128>}, {pipeline_mode = #tpu.pipeline_mode<synchronous>, transform_indices = @transform_9, window_bounds = array<i64: 1, 128>}, {pipeline_mode = #tpu.pipeline_mode<synchronous>, transform_indices = @transform_10, window_bounds = array<i64: 512, 256>}, {pipeline_mode = #tpu.pipeline_mode<synchronous>, transform_indices = @transform_11, window_bounds = array<i64: 1, 256>}, {pipeline_mode = #tpu.pipeline_mode<synchronous>, transform_indices = @transform_12, window_bounds = array<i64: 256, 128>}, {pipeline_mode = #tpu.pipeline_mode<synchronous>, transform_indices = @transform_13, window_bounds = array<i64: 1, 128>}, {transform_indices = @transform_14, window_bounds = array<i64: 2, 128>}]} {
    %cst = arith.constant 0.000000e+00 : f32
    %0 = vector.broadcast %cst : f32 to vector<2x10x10x32xf32>
    %c0 = arith.constant 0 : index
    %c0_0 = arith.constant 0 : index
    %c0_1 = arith.constant 0 : index
    %c0_2 = arith.constant 0 : index
    %1 = vector.load %arg16[%c0, %c0_0, %c0_1, %c0_2] : memref<2x10x10x32xf32, #tpu.memory_space<vmem>>, vector<2x10x10x32xf32>
    tpu.vector_store %arg16[%c0, %c0_0, %c0_1, %c0_2], %0 {strides = array<i32>} : memref<2x10x10x32xf32, #tpu.memory_space<vmem>>, vector<2x10x10x32xf32>,
    %cst_3 = arith.constant 0.000000e+00 : f32
    %2 = vector.broadcast %cst_3 : f32 to vector<2x6x6x64xf32>
    %c0_4 = arith.constant 0 : index
    %c0_5 = arith.constant 0 : index
    %c0_6 = arith.constant 0 : index
    %c0_7 = arith.constant 0 : index
    %3 = vector.load %arg17[%c0_4, %c0_5, %c0_6, %c0_7] : memref<2x6x6x64xf32, #tpu.memory_space<vmem>>, vector<2x6x6x64xf32>
    tpu.vector_store %arg17[%c0_4, %c0_5, %c0_6, %c0_7], %2 {strides = array<i32>} : memref<2x6x6x64xf32, #tpu.memory_space<vmem>>, vector<2x6x6x64xf32>,
    %c0_8 = arith.constant 0 : index
    %c0_9 = arith.constant 0 : index
    %c0_10 = arith.constant 0 : index
    %c0_11 = arith.constant 0 : index
    %4 = vector.load %arg1[%c0_8, %c0_9, %c0_10, %c0_11] : memref<2x16x16x9xf32, #tpu.memory_space<vmem>>, vector<2x4x16x9xf32>
    %5 = vector.shape_cast %4 : vector<2x4x16x9xf32> to vector<128x9xf32>
    %c0_12 = arith.constant 0 : index
    %c0_13 = arith.constant 0 : index
    %6 = vector.load %arg2[%c0_12, %c0_13] : memref<9x32xf32, #tpu.memory_space<vmem>>, vector<9x32xf32>
    %cst_14 = arith.constant dense<0.000000e+00> : vector<128x32xf32>
    %7 = tpu.matmul %5, %6, %cst_14 {dimension_numbers = #tpu.dot_dimension_numbers<[1], [0], [0], [1], [0, 0, 1, 1], [], []>} : vector<128x9xf32>, vector<9x32xf32>, vector<128x32xf32> -> vector<128x32xf32>
    %c0_15 = arith.constant 0 : index
    %c0_16 = arith.constant 0 : index
    %8 = vector.load %arg3[%c0_15, %c0_16] : memref<1x32xf32, #tpu.memory_space<vmem>>, vector<1x32xf32>
    %9 = vector.broadcast %8 : vector<1x32xf32> to vector<128x32xf32>
    %10 = arith.mulf %7, %9 : vector<128x32xf32>
    %c0_17 = arith.constant 0 : index
    %c0_18 = arith.constant 0 : index
    %11 = vector.load %arg4[%c0_17, %c0_18] : memref<1x32xf32, #tpu.memory_space<vmem>>, vector<1x32xf32>
    %12 = vector.broadcast %11 : vector<1x32xf32> to vector<128x32xf32>
    %13 = arith.addf %10, %12 : vector<128x32xf32>
    %cst_19 = arith.constant 0.000000e+00 : f32
    %14 = vector.broadcast %cst_19 : f32 to vector<128x32xf32>
    %15 = arith.maximumf %13, %14 : vector<128x32xf32>
    %16 = vector.shape_cast %15 : vector<128x32xf32> to vector<2x64x32xf32>
    %c0_20 = arith.constant 0 : index
    %c0_21 = arith.constant 0 : index
    %c0_22 = arith.constant 0 : index
    %17 = vector.load %arg18[%c0_20, %c0_21, %c0_22] : memref<2x256x32xf32, #tpu.memory_space<vmem>>, vector<2x64x32xf32>
    tpu.vector_store %arg18[%c0_20, %c0_21, %c0_22], %16 {strides = array<i32>} : memref<2x256x32xf32, #tpu.memory_space<vmem>>, vector<2x64x32xf32>,
    %c0_23 = arith.constant 0 : index
    %c4 = arith.constant 4 : index
    %c0_24 = arith.constant 0 : index
    %c0_25 = arith.constant 0 : index
    %18 = vector.load %arg1[%c0_23, %c4, %c0_24, %c0_25] : memref<2x16x16x9xf32, #tpu.memory_space<vmem>>, vector<2x4x16x9xf32>
    %19 = vector.shape_cast %18 : vector<2x4x16x9xf32> to vector<128x9xf32>
    %c0_26 = arith.constant 0 : index
    %c0_27 = arith.constant 0 : index
    %20 = vector.load %arg2[%c0_26, %c0_27] : memref<9x32xf32, #tpu.memory_space<vmem>>, vector<9x32xf32>
    %cst_28 = arith.constant dense<0.000000e+00> : vector<128x32xf32>
    %21 = tpu.matmul %19, %20, %cst_28 {dimension_numbers = #tpu.dot_dimension_numbers<[1], [0], [0], [1], [0, 0, 1, 1], [], []>} : vector<128x9xf32>, vector<9x32xf32>, vector<128x32xf32> -> vector<128x32xf32>
    %c0_29 = arith.constant 0 : index
    %c0_30 = arith.constant 0 : index
    %22 = vector.load %arg3[%c0_29, %c0_30] : memref<1x32xf32, #tpu.memory_space<vmem>>, vector<1x32xf32>
    %23 = vector.broadcast %22 : vector<1x32xf32> to vector<128x32xf32>
    %24 = arith.mulf %21, %23 : vector<128x32xf32>
    %c0_31 = arith.constant 0 : index
    %c0_32 = arith.constant 0 : index
    %25 = vector.load %arg4[%c0_31, %c0_32] : memref<1x32xf32, #tpu.memory_space<vmem>>, vector<1x32xf32>
    %26 = vector.broadcast %25 : vector<1x32xf32> to vector<128x32xf32>
    %27 = arith.addf %24, %26 : vector<128x32xf32>
    %cst_33 = arith.constant 0.000000e+00 : f32
    %28 = vector.broadcast %cst_33 : f32 to vector<128x32xf32>
    %29 = arith.maximumf %27, %28 : vector<128x32xf32>
    %30 = vector.shape_cast %29 : vector<128x32xf32> to vector<2x64x32xf32>
    %c0_34 = arith.constant 0 : index
    %c64 = arith.constant 64 : index
    %c0_35 = arith.constant 0 : index
    %31 = vector.load %arg18[%c0_34, %c64, %c0_35] : memref<2x256x32xf32, #tpu.memory_space<vmem>>, vector<2x64x32xf32>
    tpu.vector_store %arg18[%c0_34, %c64, %c0_35], %30 {strides = array<i32>} : memref<2x256x32xf32, #tpu.memory_space<vmem>>, vector<2x64x32xf32>,
    %c0_36 = arith.constant 0 : index
    %c8 = arith.constant 8 : index
    %c0_37 = arith.constant 0 : index
    %c0_38 = arith.constant 0 : index
    %32 = vector.load %arg1[%c0_36, %c8, %c0_37, %c0_38] : memref<2x16x16x9xf32, #tpu.memory_space<vmem>>, vector<2x4x16x9xf32>
    %33 = vector.shape_cast %32 : vector<2x4x16x9xf32> to vector<128x9xf32>
    %c0_39 = arith.constant 0 : index
    %c0_40 = arith.constant 0 : index
    %34 = vector.load %arg2[%c0_39, %c0_40] : memref<9x32xf32, #tpu.memory_space<vmem>>, vector<9x32xf32>
    %cst_41 = arith.constant dense<0.000000e+00> : vector<128x32xf32>
    %35 = tpu.matmul %33, %34, %cst_41 {dimension_numbers = #tpu.dot_dimension_numbers<[1], [0], [0], [1], [0, 0, 1, 1], [], []>} : vector<128x9xf32>, vector<9x32xf32>, vector<128x32xf32> -> vector<128x32xf32>
    %c0_42 = arith.constant 0 : index
    %c0_43 = arith.constant 0 : index
    %36 = vector.load %arg3[%c0_42, %c0_43] : memref<1x32xf32, #tpu.memory_space<vmem>>, vector<1x32xf32>
    %37 = vector.broadcast %36 : vector<1x32xf32> to vector<128x32xf32>
    %38 = arith.mulf %35, %37 : vector<128x32xf32>
    %c0_44 = arith.constant 0 : index
    %c0_45 = arith.constant 0 : index
    %39 = vector.load %arg4[%c0_44, %c0_45] : memref<1x32xf32, #tpu.memory_space<vmem>>, vector<1x32xf32>
    %40 = vector.broadcast %39 : vector<1x32xf32> to vector<128x32xf32>
    %41 = arith.addf %38, %40 : vector<128x32xf32>
    %cst_46 = arith.constant 0.000000e+00 : f32
    %42 = vector.broadcast %cst_46 : f32 to vector<128x32xf32>
    %43 = arith.maximumf %41, %42 : vector<128x32xf32>
    %44 = vector.shape_cast %43 : vector<128x32xf32> to vector<2x64x32xf32>
    %c0_47 = arith.constant 0 : index
    %c128 = arith.constant 128 : index
    %c0_48 = arith.constant 0 : index
    %45 = vector.load %arg18[%c0_47, %c128, %c0_48] : memref<2x256x32xf32, #tpu.memory_space<vmem>>, vector<2x64x32xf32>
    tpu.vector_store %arg18[%c0_47, %c128, %c0_48], %44 {strides = array<i32>} : memref<2x256x32xf32, #tpu.memory_space<vmem>>, vector<2x64x32xf32>,
    %c0_49 = arith.constant 0 : index
    %c12 = arith.constant 12 : index
    %c0_50 = arith.constant 0 : index
    %c0_51 = arith.constant 0 : index
    %46 = vector.load %arg1[%c0_49, %c12, %c0_50, %c0_51] : memref<2x16x16x9xf32, #tpu.memory_space<vmem>>, vector<2x4x16x9xf32>
    %47 = vector.shape_cast %46 : vector<2x4x16x9xf32> to vector<128x9xf32>
    %c0_52 = arith.constant 0 : index
    %c0_53 = arith.constant 0 : index
    %48 = vector.load %arg2[%c0_52, %c0_53] : memref<9x32xf32, #tpu.memory_space<vmem>>, vector<9x32xf32>
    %cst_54 = arith.constant dense<0.000000e+00> : vector<128x32xf32>
    %49 = tpu.matmul %47, %48, %cst_54 {dimension_numbers = #tpu.dot_dimension_numbers<[1], [0], [0], [1], [0, 0, 1, 1], [], []>} : vector<128x9xf32>, vector<9x32xf32>, vector<128x32xf32> -> vector<128x32xf32>
    %c0_55 = arith.constant 0 : index
    %c0_56 = arith.constant 0 : index
    %50 = vector.load %arg3[%c0_55, %c0_56] : memref<1x32xf32, #tpu.memory_space<vmem>>, vector<1x32xf32>
    %51 = vector.broadcast %50 : vector<1x32xf32> to vector<128x32xf32>
    %52 = arith.mulf %49, %51 : vector<128x32xf32>
    %c0_57 = arith.constant 0 : index
    %c0_58 = arith.constant 0 : index
    %53 = vector.load %arg4[%c0_57, %c0_58] : memref<1x32xf32, #tpu.memory_space<vmem>>, vector<1x32xf32>
    %54 = vector.broadcast %53 : vector<1x32xf32> to vector<128x32xf32>
    %55 = arith.addf %52, %54 : vector<128x32xf32>
    %cst_59 = arith.constant 0.000000e+00 : f32
    %56 = vector.broadcast %cst_59 : f32 to vector<128x32xf32>
    %57 = arith.maximumf %55, %56 : vector<128x32xf32>
    %58 = vector.shape_cast %57 : vector<128x32xf32> to vector<2x64x32xf32>
    %c0_60 = arith.constant 0 : index
    %c192 = arith.constant 192 : index
    %c0_61 = arith.constant 0 : index
    %59 = vector.load %arg18[%c0_60, %c192, %c0_61] : memref<2x256x32xf32, #tpu.memory_space<vmem>>, vector<2x64x32xf32>
    tpu.vector_store %arg18[%c0_60, %c192, %c0_61], %58 {strides = array<i32>} : memref<2x256x32xf32, #tpu.memory_space<vmem>>, vector<2x64x32xf32>,
    %c0_62 = arith.constant 0 : index
    %c0_63 = arith.constant 0 : index
    %c0_64 = arith.constant 0 : index
    %60 = tpu.strided_load %arg18[%c0_62, %c0_63, %c0_64] {strides = array<i32: 1, 2, 1>} : memref<2x256x32xf32, #tpu.memory_space<vmem>>, vector<2x64x32xf32>
    %c0_65 = arith.constant 0 : index
    %c1 = arith.constant 1 : index
    %c0_66 = arith.constant 0 : index
    %61 = tpu.strided_load %arg18[%c0_65, %c1, %c0_66] {strides = array<i32: 1, 2, 1>} : memref<2x256x32xf32, #tpu.memory_space<vmem>>, vector<2x64x32xf32>
    %62 = arith.maximumf %60, %61 : vector<2x64x32xf32>
    %c0_67 = arith.constant 0 : index
    %c0_68 = arith.constant 0 : index
    %c0_69 = arith.constant 0 : index
    %63 = vector.load %arg19[%c0_67, %c0_68, %c0_69] : memref<2x128x32xf32, #tpu.memory_space<vmem>>, vector<2x64x32xf32>
    tpu.vector_store %arg19[%c0_67, %c0_68, %c0_69], %62 {strides = array<i32>} : memref<2x128x32xf32, #tpu.memory_space<vmem>>, vector<2x64x32xf32>,
    %c0_70 = arith.constant 0 : index
    %c128_71 = arith.constant 128 : index
    %c0_72 = arith.constant 0 : index
    %64 = tpu.strided_load %arg18[%c0_70, %c128_71, %c0_72] {strides = array<i32: 1, 2, 1>} : memref<2x256x32xf32, #tpu.memory_space<vmem>>, vector<2x64x32xf32>
    %c0_73 = arith.constant 0 : index
    %c129 = arith.constant 129 : index
    %c0_74 = arith.constant 0 : index
    %65 = tpu.strided_load %arg18[%c0_73, %c129, %c0_74] {strides = array<i32: 1, 2, 1>} : memref<2x256x32xf32, #tpu.memory_space<vmem>>, vector<2x64x32xf32>
    %66 = arith.maximumf %64, %65 : vector<2x64x32xf32>
    %c0_75 = arith.constant 0 : index
    %c64_76 = arith.constant 64 : index
    %c0_77 = arith.constant 0 : index
    %67 = vector.load %arg19[%c0_75, %c64_76, %c0_77] : memref<2x128x32xf32, #tpu.memory_space<vmem>>, vector<2x64x32xf32>
    tpu.vector_store %arg19[%c0_75, %c64_76, %c0_77], %66 {strides = array<i32>} : memref<2x128x32xf32, #tpu.memory_space<vmem>>, vector<2x64x32xf32>,
    %c0_78 = arith.constant 0 : index
    %c0_79 = arith.constant 0 : index
    %c0_80 = arith.constant 0 : index
    %68 = vector.load %arg19[%c0_78, %c0_79, %c0_80] : memref<2x128x32xf32, #tpu.memory_space<vmem>>, vector<2x8x32xf32>
    %c0_81 = arith.constant 0 : index
    %c8_82 = arith.constant 8 : index
    %c0_83 = arith.constant 0 : index
    %69 = vector.load %arg19[%c0_81, %c8_82, %c0_83] : memref<2x128x32xf32, #tpu.memory_space<vmem>>, vector<2x8x32xf32>
    %70 = arith.maximumf %68, %69 : vector<2x8x32xf32>
    %c0_84 = arith.constant 0 : index
    %c1_85 = arith.constant 1 : index
    %c1_86 = arith.constant 1 : index
    %c0_87 = arith.constant 0 : index
    %71 = vector.load %arg16[%c0_84, %c1_85, %c1_86, %c0_87] : memref<2x10x10x32xf32, #tpu.memory_space<vmem>>, vector<2x1x8x32xf32>
    %72 = vector.shape_cast %71 : vector<2x1x8x32xf32> to vector<2x8x32xf32>
    %73 = vector.shape_cast %70 : vector<2x8x32xf32> to vector<2x1x8x32xf32>
    tpu.vector_store %arg16[%c0_84, %c1_85, %c1_86, %c0_87], %73 {strides = array<i32>} : memref<2x10x10x32xf32, #tpu.memory_space<vmem>>, vector<2x1x8x32xf32>,
    %c0_88 = arith.constant 0 : index
    %c16 = arith.constant 16 : index
    %c0_89 = arith.constant 0 : index
    %74 = vector.load %arg19[%c0_88, %c16, %c0_89] : memref<2x128x32xf32, #tpu.memory_space<vmem>>, vector<2x8x32xf32>
    %c0_90 = arith.constant 0 : index
    %c24 = arith.constant 24 : index
    %c0_91 = arith.constant 0 : index
    %75 = vector.load %arg19[%c0_90, %c24, %c0_91] : memref<2x128x32xf32, #tpu.memory_space<vmem>>, vector<2x8x32xf32>
    %76 = arith.maximumf %74, %75 : vector<2x8x32xf32>
    %c0_92 = arith.constant 0 : index
    %c2 = arith.constant 2 : index
    %c1_93 = arith.constant 1 : index
    %c0_94 = arith.constant 0 : index
    %77 = vector.load %arg16[%c0_92, %c2, %c1_93, %c0_94] : memref<2x10x10x32xf32, #tpu.memory_space<vmem>>, vector<2x1x8x32xf32>
    %78 = vector.shape_cast %77 : vector<2x1x8x32xf32> to vector<2x8x32xf32>
    %79 = vector.shape_cast %76 : vector<2x8x32xf32> to vector<2x1x8x32xf32>
    tpu.vector_store %arg16[%c0_92, %c2, %c1_93, %c0_94], %79 {strides = array<i32>} : memref<2x10x10x32xf32, #tpu.memory_space<vmem>>, vector<2x1x8x32xf32>,
    %c0_95 = arith.constant 0 : index
    %c32 = arith.constant 32 : index
    %c0_96 = arith.constant 0 : index
    %80 = vector.load %arg19[%c0_95, %c32, %c0_96] : memref<2x128x32xf32, #tpu.memory_space<vmem>>, vector<2x8x32xf32>
    %c0_97 = arith.constant 0 : index
    %c40 = arith.constant 40 : index
    %c0_98 = arith.constant 0 : index
    %81 = vector.load %arg19[%c0_97, %c40, %c0_98] : memref<2x128x32xf32, #tpu.memory_space<vmem>>, vector<2x8x32xf32>
    %82 = arith.maximumf %80, %81 : vector<2x8x32xf32>
    %c0_99 = arith.constant 0 : index
    %c3 = arith.constant 3 : index
    %c1_100 = arith.constant 1 : index
    %c0_101 = arith.constant 0 : index
    %83 = vector.load %arg16[%c0_99, %c3, %c1_100, %c0_101] : memref<2x10x10x32xf32, #tpu.memory_space<vmem>>, vector<2x1x8x32xf32>
    %84 = vector.shape_cast %83 : vector<2x1x8x32xf32> to vector<2x8x32xf32>
    %85 = vector.shape_cast %82 : vector<2x8x32xf32> to vector<2x1x8x32xf32>
    tpu.vector_store %arg16[%c0_99, %c3, %c1_100, %c0_101], %85 {strides = array<i32>} : memref<2x10x10x32xf32, #tpu.memory_space<vmem>>, vector<2x1x8x32xf32>,
    %c0_102 = arith.constant 0 : index
    %c48 = arith.constant 48 : index
    %c0_103 = arith.constant 0 : index
    %86 = vector.load %arg19[%c0_102, %c48, %c0_103] : memref<2x128x32xf32, #tpu.memory_space<vmem>>, vector<2x8x32xf32>
    %c0_104 = arith.constant 0 : index
    %c56 = arith.constant 56 : index
    %c0_105 = arith.constant 0 : index
    %87 = vector.load %arg19[%c0_104, %c56, %c0_105] : memref<2x128x32xf32, #tpu.memory_space<vmem>>, vector<2x8x32xf32>
    %88 = arith.maximumf %86, %87 : vector<2x8x32xf32>
    %c0_106 = arith.constant 0 : index
    %c4_107 = arith.constant 4 : index
    %c1_108 = arith.constant 1 : index
    %c0_109 = arith.constant 0 : index
    %89 = vector.load %arg16[%c0_106, %c4_107, %c1_108, %c0_109] : memref<2x10x10x32xf32, #tpu.memory_space<vmem>>, vector<2x1x8x32xf32>
    %90 = vector.shape_cast %89 : vector<2x1x8x32xf32> to vector<2x8x32xf32>
    %91 = vector.shape_cast %88 : vector<2x8x32xf32> to vector<2x1x8x32xf32>
    tpu.vector_store %arg16[%c0_106, %c4_107, %c1_108, %c0_109], %91 {strides = array<i32>} : memref<2x10x10x32xf32, #tpu.memory_space<vmem>>, vector<2x1x8x32xf32>,
    %c0_110 = arith.constant 0 : index
    %c64_111 = arith.constant 64 : index
    %c0_112 = arith.constant 0 : index
    %92 = vector.load %arg19[%c0_110, %c64_111, %c0_112] : memref<2x128x32xf32, #tpu.memory_space<vmem>>, vector<2x8x32xf32>
    %c0_113 = arith.constant 0 : index
    %c72 = arith.constant 72 : index
    %c0_114 = arith.constant 0 : index
    %93 = vector.load %arg19[%c0_113, %c72, %c0_114] : memref<2x128x32xf32, #tpu.memory_space<vmem>>, vector<2x8x32xf32>
    %94 = arith.maximumf %92, %93 : vector<2x8x32xf32>
    %c0_115 = arith.constant 0 : index
    %c5 = arith.constant 5 : index
    %c1_116 = arith.constant 1 : index
    %c0_117 = arith.constant 0 : index
    %95 = vector.load %arg16[%c0_115, %c5, %c1_116, %c0_117] : memref<2x10x10x32xf32, #tpu.memory_space<vmem>>, vector<2x1x8x32xf32>
    %96 = vector.shape_cast %95 : vector<2x1x8x32xf32> to vector<2x8x32xf32>
    %97 = vector.shape_cast %94 : vector<2x8x32xf32> to vector<2x1x8x32xf32>
    tpu.vector_store %arg16[%c0_115, %c5, %c1_116, %c0_117], %97 {strides = array<i32>} : memref<2x10x10x32xf32, #tpu.memory_space<vmem>>, vector<2x1x8x32xf32>,
    %c0_118 = arith.constant 0 : index
    %c80 = arith.constant 80 : index
    %c0_119 = arith.constant 0 : index
    %98 = vector.load %arg19[%c0_118, %c80, %c0_119] : memref<2x128x32xf32, #tpu.memory_space<vmem>>, vector<2x8x32xf32>
    %c0_120 = arith.constant 0 : index
    %c88 = arith.constant 88 : index
    %c0_121 = arith.constant 0 : index
    %99 = vector.load %arg19[%c0_120, %c88, %c0_121] : memref<2x128x32xf32, #tpu.memory_space<vmem>>, vector<2x8x32xf32>
    %100 = arith.maximumf %98, %99 : vector<2x8x32xf32>
    %c0_122 = arith.constant 0 : index
    %c6 = arith.constant 6 : index
    %c1_123 = arith.constant 1 : index
    %c0_124 = arith.constant 0 : index
    %101 = vector.load %arg16[%c0_122, %c6, %c1_123, %c0_124] : memref<2x10x10x32xf32, #tpu.memory_space<vmem>>, vector<2x1x8x32xf32>
    %102 = vector.shape_cast %101 : vector<2x1x8x32xf32> to vector<2x8x32xf32>
    %103 = vector.shape_cast %100 : vector<2x8x32xf32> to vector<2x1x8x32xf32>
    tpu.vector_store %arg16[%c0_122, %c6, %c1_123, %c0_124], %103 {strides = array<i32>} : memref<2x10x10x32xf32, #tpu.memory_space<vmem>>, vector<2x1x8x32xf32>,
    %c0_125 = arith.constant 0 : index
    %c96 = arith.constant 96 : index
    %c0_126 = arith.constant 0 : index
    %104 = vector.load %arg19[%c0_125, %c96, %c0_126] : memref<2x128x32xf32, #tpu.memory_space<vmem>>, vector<2x8x32xf32>
    %c0_127 = arith.constant 0 : index
    %c104 = arith.constant 104 : index
    %c0_128 = arith.constant 0 : index
    %105 = vector.load %arg19[%c0_127, %c104, %c0_128] : memref<2x128x32xf32, #tpu.memory_space<vmem>>, vector<2x8x32xf32>
    %106 = arith.maximumf %104, %105 : vector<2x8x32xf32>
    %c0_129 = arith.constant 0 : index
    %c7 = arith.constant 7 : index
    %c1_130 = arith.constant 1 : index
    %c0_131 = arith.constant 0 : index
    %107 = vector.load %arg16[%c0_129, %c7, %c1_130, %c0_131] : memref<2x10x10x32xf32, #tpu.memory_space<vmem>>, vector<2x1x8x32xf32>
    %108 = vector.shape_cast %107 : vector<2x1x8x32xf32> to vector<2x8x32xf32>
    %109 = vector.shape_cast %106 : vector<2x8x32xf32> to vector<2x1x8x32xf32>
    tpu.vector_store %arg16[%c0_129, %c7, %c1_130, %c0_131], %109 {strides = array<i32>} : memref<2x10x10x32xf32, #tpu.memory_space<vmem>>, vector<2x1x8x32xf32>,
    %c0_132 = arith.constant 0 : index
    %c112 = arith.constant 112 : index
    %c0_133 = arith.constant 0 : index
    %110 = vector.load %arg19[%c0_132, %c112, %c0_133] : memref<2x128x32xf32, #tpu.memory_space<vmem>>, vector<2x8x32xf32>
    %c0_134 = arith.constant 0 : index
    %c120 = arith.constant 120 : index
    %c0_135 = arith.constant 0 : index
    %111 = vector.load %arg19[%c0_134, %c120, %c0_135] : memref<2x128x32xf32, #tpu.memory_space<vmem>>, vector<2x8x32xf32>
    %112 = arith.maximumf %110, %111 : vector<2x8x32xf32>
    %c0_136 = arith.constant 0 : index
    %c8_137 = arith.constant 8 : index
    %c1_138 = arith.constant 1 : index
    %c0_139 = arith.constant 0 : index
    %113 = vector.load %arg16[%c0_136, %c8_137, %c1_138, %c0_139] : memref<2x10x10x32xf32, #tpu.memory_space<vmem>>, vector<2x1x8x32xf32>
    %114 = vector.shape_cast %113 : vector<2x1x8x32xf32> to vector<2x8x32xf32>
    %115 = vector.shape_cast %112 : vector<2x8x32xf32> to vector<2x1x8x32xf32>
    tpu.vector_store %arg16[%c0_136, %c8_137, %c1_138, %c0_139], %115 {strides = array<i32>} : memref<2x10x10x32xf32, #tpu.memory_space<vmem>>, vector<2x1x8x32xf32>,
    %cst_140 = arith.constant 0.000000e+00 : f32
    %116 = vector.broadcast %cst_140 : f32 to vector<128x64xf32>
    %c0_141 = arith.constant 0 : index
    %c0_142 = arith.constant 0 : index
    %c0_143 = arith.constant 0 : index
    %c0_144 = arith.constant 0 : index
    %117 = vector.load %arg16[%c0_141, %c0_142, %c0_143, %c0_144] : memref<2x10x10x32xf32, #tpu.memory_space<vmem>>, vector<2x8x8x32xf32>
    %118 = vector.shape_cast %117 : vector<2x8x8x32xf32> to vector<128x32xf32>
    %c0_145 = arith.constant 0 : index
    %c0_146 = arith.constant 0 : index
    %c0_147 = arith.constant 0 : index
    %c0_148 = arith.constant 0 : index
    %119 = vector.load %arg5[%c0_145, %c0_146, %c0_147, %c0_148] : memref<3x3x32x64xf32, #tpu.memory_space<vmem>>, vector<1x1x32x64xf32>
    %120 = vector.shape_cast %119 : vector<1x1x32x64xf32> to vector<32x64xf32>
    %cst_149 = arith.constant dense<0.000000e+00> : vector<128x64xf32>
    %121 = tpu.matmul %118, %120, %cst_149 {dimension_numbers = #tpu.dot_dimension_numbers<[1], [0], [0], [1], [0, 0, 1, 1], [], []>} : vector<128x32xf32>, vector<32x64xf32>, vector<128x64xf32> -> vector<128x64xf32>
    %122 = arith.addf %116, %121 : vector<128x64xf32>
    %c0_150 = arith.constant 0 : index
    %c0_151 = arith.constant 0 : index
    %c1_152 = arith.constant 1 : index
    %c0_153 = arith.constant 0 : index
    %123 = vector.load %arg16[%c0_150, %c0_151, %c1_152, %c0_153] : memref<2x10x10x32xf32, #tpu.memory_space<vmem>>, vector<2x8x8x32xf32>
    %124 = vector.shape_cast %123 : vector<2x8x8x32xf32> to vector<128x32xf32>
    %c0_154 = arith.constant 0 : index
    %c1_155 = arith.constant 1 : index
    %c0_156 = arith.constant 0 : index
    %c0_157 = arith.constant 0 : index
    %125 = vector.load %arg5[%c0_154, %c1_155, %c0_156, %c0_157] : memref<3x3x32x64xf32, #tpu.memory_space<vmem>>, vector<1x1x32x64xf32>
    %126 = vector.shape_cast %125 : vector<1x1x32x64xf32> to vector<32x64xf32>
    %cst_158 = arith.constant dense<0.000000e+00> : vector<128x64xf32>
    %127 = tpu.matmul %124, %126, %cst_158 {dimension_numbers = #tpu.dot_dimension_numbers<[1], [0], [0], [1], [0, 0, 1, 1], [], []>} : vector<128x32xf32>, vector<32x64xf32>, vector<128x64xf32> -> vector<128x64xf32>
    %128 = arith.addf %122, %127 : vector<128x64xf32>
    %c0_159 = arith.constant 0 : index
    %c0_160 = arith.constant 0 : index
    %c2_161 = arith.constant 2 : index
    %c0_162 = arith.constant 0 : index
    %129 = vector.load %arg16[%c0_159, %c0_160, %c2_161, %c0_162] : memref<2x10x10x32xf32, #tpu.memory_space<vmem>>, vector<2x8x8x32xf32>
    %130 = vector.shape_cast %129 : vector<2x8x8x32xf32> to vector<128x32xf32>
    %c0_163 = arith.constant 0 : index
    %c2_164 = arith.constant 2 : index
    %c0_165 = arith.constant 0 : index
    %c0_166 = arith.constant 0 : index
    %131 = vector.load %arg5[%c0_163, %c2_164, %c0_165, %c0_166] : memref<3x3x32x64xf32, #tpu.memory_space<vmem>>, vector<1x1x32x64xf32>
    %132 = vector.shape_cast %131 : vector<1x1x32x64xf32> to vector<32x64xf32>
    %cst_167 = arith.constant dense<0.000000e+00> : vector<128x64xf32>
    %133 = tpu.matmul %130, %132, %cst_167 {dimension_numbers = #tpu.dot_dimension_numbers<[1], [0], [0], [1], [0, 0, 1, 1], [], []>} : vector<128x32xf32>, vector<32x64xf32>, vector<128x64xf32> -> vector<128x64xf32>
    %134 = arith.addf %128, %133 : vector<128x64xf32>
    %c0_168 = arith.constant 0 : index
    %c1_169 = arith.constant 1 : index
    %c0_170 = arith.constant 0 : index
    %c0_171 = arith.constant 0 : index
    %135 = vector.load %arg16[%c0_168, %c1_169, %c0_170, %c0_171] : memref<2x10x10x32xf32, #tpu.memory_space<vmem>>, vector<2x8x8x32xf32>
    %136 = vector.shape_cast %135 : vector<2x8x8x32xf32> to vector<128x32xf32>
    %c1_172 = arith.constant 1 : index
    %c0_173 = arith.constant 0 : index
    %c0_174 = arith.constant 0 : index
    %c0_175 = arith.constant 0 : index
    %137 = vector.load %arg5[%c1_172, %c0_173, %c0_174, %c0_175] : memref<3x3x32x64xf32, #tpu.memory_space<vmem>>, vector<1x1x32x64xf32>
    %138 = vector.shape_cast %137 : vector<1x1x32x64xf32> to vector<32x64xf32>
    %cst_176 = arith.constant dense<0.000000e+00> : vector<128x64xf32>
    %139 = tpu.matmul %136, %138, %cst_176 {dimension_numbers = #tpu.dot_dimension_numbers<[1], [0], [0], [1], [0, 0, 1, 1], [], []>} : vector<128x32xf32>, vector<32x64xf32>, vector<128x64xf32> -> vector<128x64xf32>
    %140 = arith.addf %134, %139 : vector<128x64xf32>
    %c0_177 = arith.constant 0 : index
    %c1_178 = arith.constant 1 : index
    %c1_179 = arith.constant 1 : index
    %c0_180 = arith.constant 0 : index
    %141 = vector.load %arg16[%c0_177, %c1_178, %c1_179, %c0_180] : memref<2x10x10x32xf32, #tpu.memory_space<vmem>>, vector<2x8x8x32xf32>
    %142 = vector.shape_cast %141 : vector<2x8x8x32xf32> to vector<128x32xf32>
    %c1_181 = arith.constant 1 : index
    %c1_182 = arith.constant 1 : index
    %c0_183 = arith.constant 0 : index
    %c0_184 = arith.constant 0 : index
    %143 = vector.load %arg5[%c1_181, %c1_182, %c0_183, %c0_184] : memref<3x3x32x64xf32, #tpu.memory_space<vmem>>, vector<1x1x32x64xf32>
    %144 = vector.shape_cast %143 : vector<1x1x32x64xf32> to vector<32x64xf32>
    %cst_185 = arith.constant dense<0.000000e+00> : vector<128x64xf32>
    %145 = tpu.matmul %142, %144, %cst_185 {dimension_numbers = #tpu.dot_dimension_numbers<[1], [0], [0], [1], [0, 0, 1, 1], [], []>} : vector<128x32xf32>, vector<32x64xf32>, vector<128x64xf32> -> vector<128x64xf32>
    %146 = arith.addf %140, %145 : vector<128x64xf32>
    %c0_186 = arith.constant 0 : index
    %c1_187 = arith.constant 1 : index
    %c2_188 = arith.constant 2 : index
    %c0_189 = arith.constant 0 : index
    %147 = vector.load %arg16[%c0_186, %c1_187, %c2_188, %c0_189] : memref<2x10x10x32xf32, #tpu.memory_space<vmem>>, vector<2x8x8x32xf32>
    %148 = vector.shape_cast %147 : vector<2x8x8x32xf32> to vector<128x32xf32>
    %c1_190 = arith.constant 1 : index
    %c2_191 = arith.constant 2 : index
    %c0_192 = arith.constant 0 : index
    %c0_193 = arith.constant 0 : index
    %149 = vector.load %arg5[%c1_190, %c2_191, %c0_192, %c0_193] : memref<3x3x32x64xf32, #tpu.memory_space<vmem>>, vector<1x1x32x64xf32>
    %150 = vector.shape_cast %149 : vector<1x1x32x64xf32> to vector<32x64xf32>
    %cst_194 = arith.constant dense<0.000000e+00> : vector<128x64xf32>
    %151 = tpu.matmul %148, %150, %cst_194 {dimension_numbers = #tpu.dot_dimension_numbers<[1], [0], [0], [1], [0, 0, 1, 1], [], []>} : vector<128x32xf32>, vector<32x64xf32>, vector<128x64xf32> -> vector<128x64xf32>
    %152 = arith.addf %146, %151 : vector<128x64xf32>
    %c0_195 = arith.constant 0 : index
    %c2_196 = arith.constant 2 : index
    %c0_197 = arith.constant 0 : index
    %c0_198 = arith.constant 0 : index
    %153 = vector.load %arg16[%c0_195, %c2_196, %c0_197, %c0_198] : memref<2x10x10x32xf32, #tpu.memory_space<vmem>>, vector<2x8x8x32xf32>
    %154 = vector.shape_cast %153 : vector<2x8x8x32xf32> to vector<128x32xf32>
    %c2_199 = arith.constant 2 : index
    %c0_200 = arith.constant 0 : index
    %c0_201 = arith.constant 0 : index
    %c0_202 = arith.constant 0 : index
    %155 = vector.load %arg5[%c2_199, %c0_200, %c0_201, %c0_202] : memref<3x3x32x64xf32, #tpu.memory_space<vmem>>, vector<1x1x32x64xf32>
    %156 = vector.shape_cast %155 : vector<1x1x32x64xf32> to vector<32x64xf32>
    %cst_203 = arith.constant dense<0.000000e+00> : vector<128x64xf32>
    %157 = tpu.matmul %154, %156, %cst_203 {dimension_numbers = #tpu.dot_dimension_numbers<[1], [0], [0], [1], [0, 0, 1, 1], [], []>} : vector<128x32xf32>, vector<32x64xf32>, vector<128x64xf32> -> vector<128x64xf32>
    %158 = arith.addf %152, %157 : vector<128x64xf32>
    %c0_204 = arith.constant 0 : index
    %c2_205 = arith.constant 2 : index
    %c1_206 = arith.constant 1 : index
    %c0_207 = arith.constant 0 : index
    %159 = vector.load %arg16[%c0_204, %c2_205, %c1_206, %c0_207] : memref<2x10x10x32xf32, #tpu.memory_space<vmem>>, vector<2x8x8x32xf32>
    %160 = vector.shape_cast %159 : vector<2x8x8x32xf32> to vector<128x32xf32>
    %c2_208 = arith.constant 2 : index
    %c1_209 = arith.constant 1 : index
    %c0_210 = arith.constant 0 : index
    %c0_211 = arith.constant 0 : index
    %161 = vector.load %arg5[%c2_208, %c1_209, %c0_210, %c0_211] : memref<3x3x32x64xf32, #tpu.memory_space<vmem>>, vector<1x1x32x64xf32>
    %162 = vector.shape_cast %161 : vector<1x1x32x64xf32> to vector<32x64xf32>
    %cst_212 = arith.constant dense<0.000000e+00> : vector<128x64xf32>
    %163 = tpu.matmul %160, %162, %cst_212 {dimension_numbers = #tpu.dot_dimension_numbers<[1], [0], [0], [1], [0, 0, 1, 1], [], []>} : vector<128x32xf32>, vector<32x64xf32>, vector<128x64xf32> -> vector<128x64xf32>
    %164 = arith.addf %158, %163 : vector<128x64xf32>
    %c0_213 = arith.constant 0 : index
    %c2_214 = arith.constant 2 : index
    %c2_215 = arith.constant 2 : index
    %c0_216 = arith.constant 0 : index
    %165 = vector.load %arg16[%c0_213, %c2_214, %c2_215, %c0_216] : memref<2x10x10x32xf32, #tpu.memory_space<vmem>>, vector<2x8x8x32xf32>
    %166 = vector.shape_cast %165 : vector<2x8x8x32xf32> to vector<128x32xf32>
    %c2_217 = arith.constant 2 : index
    %c2_218 = arith.constant 2 : index
    %c0_219 = arith.constant 0 : index
    %c0_220 = arith.constant 0 : index
    %167 = vector.load %arg5[%c2_217, %c2_218, %c0_219, %c0_220] : memref<3x3x32x64xf32, #tpu.memory_space<vmem>>, vector<1x1x32x64xf32>
    %168 = vector.shape_cast %167 : vector<1x1x32x64xf32> to vector<32x64xf32>
    %cst_221 = arith.constant dense<0.000000e+00> : vector<128x64xf32>
    %169 = tpu.matmul %166, %168, %cst_221 {dimension_numbers = #tpu.dot_dimension_numbers<[1], [0], [0], [1], [0, 0, 1, 1], [], []>} : vector<128x32xf32>, vector<32x64xf32>, vector<128x64xf32> -> vector<128x64xf32>
    %170 = arith.addf %164, %169 : vector<128x64xf32>
    %c0_222 = arith.constant 0 : index
    %c0_223 = arith.constant 0 : index
    %171 = vector.load %arg6[%c0_222, %c0_223] : memref<1x64xf32, #tpu.memory_space<vmem>>, vector<1x64xf32>
    %172 = vector.broadcast %171 : vector<1x64xf32> to vector<128x64xf32>
    %173 = arith.mulf %170, %172 : vector<128x64xf32>
    %c0_224 = arith.constant 0 : index
    %c0_225 = arith.constant 0 : index
    %174 = vector.load %arg7[%c0_224, %c0_225] : memref<1x64xf32, #tpu.memory_space<vmem>>, vector<1x64xf32>
    %175 = vector.broadcast %174 : vector<1x64xf32> to vector<128x64xf32>
    %176 = arith.addf %173, %175 : vector<128x64xf32>
    %cst_226 = arith.constant 0.000000e+00 : f32
    %177 = vector.broadcast %cst_226 : f32 to vector<128x64xf32>
    %178 = arith.maximumf %176, %177 : vector<128x64xf32>
    %179 = vector.shape_cast %178 : vector<128x64xf32> to vector<2x64x64xf32>
    %c0_227 = arith.constant 0 : index
    %c0_228 = arith.constant 0 : index
    %c0_229 = arith.constant 0 : index
    %180 = vector.load %arg20[%c0_227, %c0_228, %c0_229] : memref<2x64x64xf32, #tpu.memory_space<vmem>>, vector<2x64x64xf32>
    tpu.vector_store %arg20[%c0_227, %c0_228, %c0_229], %179 {strides = array<i32>} : memref<2x64x64xf32, #tpu.memory_space<vmem>>, vector<2x64x64xf32>,
    %c0_230 = arith.constant 0 : index
    %c0_231 = arith.constant 0 : index
    %c0_232 = arith.constant 0 : index
    %181 = tpu.strided_load %arg20[%c0_230, %c0_231, %c0_232] {strides = array<i32: 1, 2, 1>} : memref<2x64x64xf32, #tpu.memory_space<vmem>>, vector<2x32x64xf32>
    %c0_233 = arith.constant 0 : index
    %c1_234 = arith.constant 1 : index
    %c0_235 = arith.constant 0 : index
    %182 = tpu.strided_load %arg20[%c0_233, %c1_234, %c0_235] {strides = array<i32: 1, 2, 1>} : memref<2x64x64xf32, #tpu.memory_space<vmem>>, vector<2x32x64xf32>
    %183 = arith.maximumf %181, %182 : vector<2x32x64xf32>
    %c0_236 = arith.constant 0 : index
    %c0_237 = arith.constant 0 : index
    %c0_238 = arith.constant 0 : index
    %184 = vector.load %arg21[%c0_236, %c0_237, %c0_238] : memref<2x32x64xf32, #tpu.memory_space<vmem>>, vector<2x32x64xf32>
    tpu.vector_store %arg21[%c0_236, %c0_237, %c0_238], %183 {strides = array<i32>} : memref<2x32x64xf32, #tpu.memory_space<vmem>>, vector<2x32x64xf32>,
    %c0_239 = arith.constant 0 : index
    %c0_240 = arith.constant 0 : index
    %c0_241 = arith.constant 0 : index
    %185 = vector.load %arg21[%c0_239, %c0_240, %c0_241] : memref<2x32x64xf32, #tpu.memory_space<vmem>>, vector<2x4x64xf32>
    %c0_242 = arith.constant 0 : index
    %c4_243 = arith.constant 4 : index
    %c0_244 = arith.constant 0 : index
    %186 = vector.load %arg21[%c0_242, %c4_243, %c0_244] : memref<2x32x64xf32, #tpu.memory_space<vmem>>, vector<2x4x64xf32>
    %187 = arith.maximumf %185, %186 : vector<2x4x64xf32>
    %c0_245 = arith.constant 0 : index
    %c1_246 = arith.constant 1 : index
    %c1_247 = arith.constant 1 : index
    %c0_248 = arith.constant 0 : index
    %188 = vector.load %arg17[%c0_245, %c1_246, %c1_247, %c0_248] : memref<2x6x6x64xf32, #tpu.memory_space<vmem>>, vector<2x1x4x64xf32>
    %189 = vector.shape_cast %188 : vector<2x1x4x64xf32> to vector<2x4x64xf32>
    %190 = vector.shape_cast %187 : vector<2x4x64xf32> to vector<2x1x4x64xf32>
    tpu.vector_store %arg17[%c0_245, %c1_246, %c1_247, %c0_248], %190 {strides = array<i32>} : memref<2x6x6x64xf32, #tpu.memory_space<vmem>>, vector<2x1x4x64xf32>,
    %c0_249 = arith.constant 0 : index
    %c8_250 = arith.constant 8 : index
    %c0_251 = arith.constant 0 : index
    %191 = vector.load %arg21[%c0_249, %c8_250, %c0_251] : memref<2x32x64xf32, #tpu.memory_space<vmem>>, vector<2x4x64xf32>
    %c0_252 = arith.constant 0 : index
    %c12_253 = arith.constant 12 : index
    %c0_254 = arith.constant 0 : index
    %192 = vector.load %arg21[%c0_252, %c12_253, %c0_254] : memref<2x32x64xf32, #tpu.memory_space<vmem>>, vector<2x4x64xf32>
    %193 = arith.maximumf %191, %192 : vector<2x4x64xf32>
    %c0_255 = arith.constant 0 : index
    %c2_256 = arith.constant 2 : index
    %c1_257 = arith.constant 1 : index
    %c0_258 = arith.constant 0 : index
    %194 = vector.load %arg17[%c0_255, %c2_256, %c1_257, %c0_258] : memref<2x6x6x64xf32, #tpu.memory_space<vmem>>, vector<2x1x4x64xf32>
    %195 = vector.shape_cast %194 : vector<2x1x4x64xf32> to vector<2x4x64xf32>
    %196 = vector.shape_cast %193 : vector<2x4x64xf32> to vector<2x1x4x64xf32>
    tpu.vector_store %arg17[%c0_255, %c2_256, %c1_257, %c0_258], %196 {strides = array<i32>} : memref<2x6x6x64xf32, #tpu.memory_space<vmem>>, vector<2x1x4x64xf32>,
    %c0_259 = arith.constant 0 : index
    %c16_260 = arith.constant 16 : index
    %c0_261 = arith.constant 0 : index
    %197 = vector.load %arg21[%c0_259, %c16_260, %c0_261] : memref<2x32x64xf32, #tpu.memory_space<vmem>>, vector<2x4x64xf32>
    %c0_262 = arith.constant 0 : index
    %c20 = arith.constant 20 : index
    %c0_263 = arith.constant 0 : index
    %198 = vector.load %arg21[%c0_262, %c20, %c0_263] : memref<2x32x64xf32, #tpu.memory_space<vmem>>, vector<2x4x64xf32>
    %199 = arith.maximumf %197, %198 : vector<2x4x64xf32>
    %c0_264 = arith.constant 0 : index
    %c3_265 = arith.constant 3 : index
    %c1_266 = arith.constant 1 : index
    %c0_267 = arith.constant 0 : index
    %200 = vector.load %arg17[%c0_264, %c3_265, %c1_266, %c0_267] : memref<2x6x6x64xf32, #tpu.memory_space<vmem>>, vector<2x1x4x64xf32>
    %201 = vector.shape_cast %200 : vector<2x1x4x64xf32> to vector<2x4x64xf32>
    %202 = vector.shape_cast %199 : vector<2x4x64xf32> to vector<2x1x4x64xf32>
    tpu.vector_store %arg17[%c0_264, %c3_265, %c1_266, %c0_267], %202 {strides = array<i32>} : memref<2x6x6x64xf32, #tpu.memory_space<vmem>>, vector<2x1x4x64xf32>,
    %c0_268 = arith.constant 0 : index
    %c24_269 = arith.constant 24 : index
    %c0_270 = arith.constant 0 : index
    %203 = vector.load %arg21[%c0_268, %c24_269, %c0_270] : memref<2x32x64xf32, #tpu.memory_space<vmem>>, vector<2x4x64xf32>
    %c0_271 = arith.constant 0 : index
    %c28 = arith.constant 28 : index
    %c0_272 = arith.constant 0 : index
    %204 = vector.load %arg21[%c0_271, %c28, %c0_272] : memref<2x32x64xf32, #tpu.memory_space<vmem>>, vector<2x4x64xf32>
    %205 = arith.maximumf %203, %204 : vector<2x4x64xf32>
    %c0_273 = arith.constant 0 : index
    %c4_274 = arith.constant 4 : index
    %c1_275 = arith.constant 1 : index
    %c0_276 = arith.constant 0 : index
    %206 = vector.load %arg17[%c0_273, %c4_274, %c1_275, %c0_276] : memref<2x6x6x64xf32, #tpu.memory_space<vmem>>, vector<2x1x4x64xf32>
    %207 = vector.shape_cast %206 : vector<2x1x4x64xf32> to vector<2x4x64xf32>
    %208 = vector.shape_cast %205 : vector<2x4x64xf32> to vector<2x1x4x64xf32>
    tpu.vector_store %arg17[%c0_273, %c4_274, %c1_275, %c0_276], %208 {strides = array<i32>} : memref<2x6x6x64xf32, #tpu.memory_space<vmem>>, vector<2x1x4x64xf32>,
    %cst_277 = arith.constant 0.000000e+00 : f32
    %209 = vector.broadcast %cst_277 : f32 to vector<32x128xf32>
    %c0_278 = arith.constant 0 : index
    %c0_279 = arith.constant 0 : index
    %c0_280 = arith.constant 0 : index
    %c0_281 = arith.constant 0 : index
    %210 = vector.load %arg17[%c0_278, %c0_279, %c0_280, %c0_281] : memref<2x6x6x64xf32, #tpu.memory_space<vmem>>, vector<2x1x4x64xf32>
    %211 = vector.shape_cast %210 : vector<2x1x4x64xf32> to vector<2x4x64xf32>
    %c0_282 = arith.constant 0 : index
    %c0_283 = arith.constant 0 : index
    %c0_284 = arith.constant 0 : index
    %212 = vector.load %arg24[%c0_282, %c0_283, %c0_284] : memref<2x16x64xf32, #tpu.memory_space<vmem>>, vector<2x4x64xf32>
    tpu.vector_store %arg24[%c0_282, %c0_283, %c0_284], %211 {strides = array<i32>} : memref<2x16x64xf32, #tpu.memory_space<vmem>>, vector<2x4x64xf32>,
    %c0_285 = arith.constant 0 : index
    %c1_286 = arith.constant 1 : index
    %c0_287 = arith.constant 0 : index
    %c0_288 = arith.constant 0 : index
    %213 = vector.load %arg17[%c0_285, %c1_286, %c0_287, %c0_288] : memref<2x6x6x64xf32, #tpu.memory_space<vmem>>, vector<2x1x4x64xf32>
    %214 = vector.shape_cast %213 : vector<2x1x4x64xf32> to vector<2x4x64xf32>
    %c0_289 = arith.constant 0 : index
    %c4_290 = arith.constant 4 : index
    %c0_291 = arith.constant 0 : index
    %215 = vector.load %arg24[%c0_289, %c4_290, %c0_291] : memref<2x16x64xf32, #tpu.memory_space<vmem>>, vector<2x4x64xf32>
    tpu.vector_store %arg24[%c0_289, %c4_290, %c0_291], %214 {strides = array<i32>} : memref<2x16x64xf32, #tpu.memory_space<vmem>>, vector<2x4x64xf32>,
    %c0_292 = arith.constant 0 : index
    %c2_293 = arith.constant 2 : index
    %c0_294 = arith.constant 0 : index
    %c0_295 = arith.constant 0 : index
    %216 = vector.load %arg17[%c0_292, %c2_293, %c0_294, %c0_295] : memref<2x6x6x64xf32, #tpu.memory_space<vmem>>, vector<2x1x4x64xf32>
    %217 = vector.shape_cast %216 : vector<2x1x4x64xf32> to vector<2x4x64xf32>
    %c0_296 = arith.constant 0 : index
    %c8_297 = arith.constant 8 : index
    %c0_298 = arith.constant 0 : index
    %218 = vector.load %arg24[%c0_296, %c8_297, %c0_298] : memref<2x16x64xf32, #tpu.memory_space<vmem>>, vector<2x4x64xf32>
    tpu.vector_store %arg24[%c0_296, %c8_297, %c0_298], %217 {strides = array<i32>} : memref<2x16x64xf32, #tpu.memory_space<vmem>>, vector<2x4x64xf32>,
    %c0_299 = arith.constant 0 : index
    %c3_300 = arith.constant 3 : index
    %c0_301 = arith.constant 0 : index
    %c0_302 = arith.constant 0 : index
    %219 = vector.load %arg17[%c0_299, %c3_300, %c0_301, %c0_302] : memref<2x6x6x64xf32, #tpu.memory_space<vmem>>, vector<2x1x4x64xf32>
    %220 = vector.shape_cast %219 : vector<2x1x4x64xf32> to vector<2x4x64xf32>
    %c0_303 = arith.constant 0 : index
    %c12_304 = arith.constant 12 : index
    %c0_305 = arith.constant 0 : index
    %221 = vector.load %arg24[%c0_303, %c12_304, %c0_305] : memref<2x16x64xf32, #tpu.memory_space<vmem>>, vector<2x4x64xf32>
    tpu.vector_store %arg24[%c0_303, %c12_304, %c0_305], %220 {strides = array<i32>} : memref<2x16x64xf32, #tpu.memory_space<vmem>>, vector<2x4x64xf32>,
    %c0_306 = arith.constant 0 : index
    %c0_307 = arith.constant 0 : index
    %c0_308 = arith.constant 0 : index
    %222 = vector.load %arg24[%c0_306, %c0_307, %c0_308] : memref<2x16x64xf32, #tpu.memory_space<vmem>>, vector<2x16x64xf32>
    %223 = vector.shape_cast %222 : vector<2x16x64xf32> to vector<32x64xf32>
    %c0_309 = arith.constant 0 : index
    %c0_310 = arith.constant 0 : index
    %c0_311 = arith.constant 0 : index
    %c0_312 = arith.constant 0 : index
    %224 = vector.load %arg8[%c0_309, %c0_310, %c0_311, %c0_312] : memref<3x3x64x128xf32, #tpu.memory_space<vmem>>, vector<1x1x64x128xf32>
    %225 = vector.shape_cast %224 : vector<1x1x64x128xf32> to vector<64x128xf32>
    %cst_313 = arith.constant dense<0.000000e+00> : vector<32x128xf32>
    %226 = tpu.matmul %223, %225, %cst_313 {dimension_numbers = #tpu.dot_dimension_numbers<[1], [0], [0], [1], [0, 0, 1, 1], [], []>} : vector<32x64xf32>, vector<64x128xf32>, vector<32x128xf32> -> vector<32x128xf32>
    %227 = arith.addf %209, %226 : vector<32x128xf32>
    %c0_314 = arith.constant 0 : index
    %c0_315 = arith.constant 0 : index
    %c1_316 = arith.constant 1 : index
    %c0_317 = arith.constant 0 : index
    %228 = vector.load %arg17[%c0_314, %c0_315, %c1_316, %c0_317] : memref<2x6x6x64xf32, #tpu.memory_space<vmem>>, vector<2x1x4x64xf32>
    %229 = vector.shape_cast %228 : vector<2x1x4x64xf32> to vector<2x4x64xf32>
    %c0_318 = arith.constant 0 : index
    %c0_319 = arith.constant 0 : index
    %c0_320 = arith.constant 0 : index
    %230 = vector.load %arg24[%c0_318, %c0_319, %c0_320] : memref<2x16x64xf32, #tpu.memory_space<vmem>>, vector<2x4x64xf32>
    tpu.vector_store %arg24[%c0_318, %c0_319, %c0_320], %229 {strides = array<i32>} : memref<2x16x64xf32, #tpu.memory_space<vmem>>, vector<2x4x64xf32>,
    %c0_321 = arith.constant 0 : index
    %c1_322 = arith.constant 1 : index
    %c1_323 = arith.constant 1 : index
    %c0_324 = arith.constant 0 : index
    %231 = vector.load %arg17[%c0_321, %c1_322, %c1_323, %c0_324] : memref<2x6x6x64xf32, #tpu.memory_space<vmem>>, vector<2x1x4x64xf32>
    %232 = vector.shape_cast %231 : vector<2x1x4x64xf32> to vector<2x4x64xf32>
    %c0_325 = arith.constant 0 : index
    %c4_326 = arith.constant 4 : index
    %c0_327 = arith.constant 0 : index
    %233 = vector.load %arg24[%c0_325, %c4_326, %c0_327] : memref<2x16x64xf32, #tpu.memory_space<vmem>>, vector<2x4x64xf32>
    tpu.vector_store %arg24[%c0_325, %c4_326, %c0_327], %232 {strides = array<i32>} : memref<2x16x64xf32, #tpu.memory_space<vmem>>, vector<2x4x64xf32>,
    %c0_328 = arith.constant 0 : index
    %c2_329 = arith.constant 2 : index
    %c1_330 = arith.constant 1 : index
    %c0_331 = arith.constant 0 : index
    %234 = vector.load %arg17[%c0_328, %c2_329, %c1_330, %c0_331] : memref<2x6x6x64xf32, #tpu.memory_space<vmem>>, vector<2x1x4x64xf32>
    %235 = vector.shape_cast %234 : vector<2x1x4x64xf32> to vector<2x4x64xf32>
    %c0_332 = arith.constant 0 : index
    %c8_333 = arith.constant 8 : index
    %c0_334 = arith.constant 0 : index
    %236 = vector.load %arg24[%c0_332, %c8_333, %c0_334] : memref<2x16x64xf32, #tpu.memory_space<vmem>>, vector<2x4x64xf32>
    tpu.vector_store %arg24[%c0_332, %c8_333, %c0_334], %235 {strides = array<i32>} : memref<2x16x64xf32, #tpu.memory_space<vmem>>, vector<2x4x64xf32>,
    %c0_335 = arith.constant 0 : index
    %c3_336 = arith.constant 3 : index
    %c1_337 = arith.constant 1 : index
    %c0_338 = arith.constant 0 : index
    %237 = vector.load %arg17[%c0_335, %c3_336, %c1_337, %c0_338] : memref<2x6x6x64xf32, #tpu.memory_space<vmem>>, vector<2x1x4x64xf32>
    %238 = vector.shape_cast %237 : vector<2x1x4x64xf32> to vector<2x4x64xf32>
    %c0_339 = arith.constant 0 : index
    %c12_340 = arith.constant 12 : index
    %c0_341 = arith.constant 0 : index
    %239 = vector.load %arg24[%c0_339, %c12_340, %c0_341] : memref<2x16x64xf32, #tpu.memory_space<vmem>>, vector<2x4x64xf32>
    tpu.vector_store %arg24[%c0_339, %c12_340, %c0_341], %238 {strides = array<i32>} : memref<2x16x64xf32, #tpu.memory_space<vmem>>, vector<2x4x64xf32>,
    %c0_342 = arith.constant 0 : index
    %c0_343 = arith.constant 0 : index
    %c0_344 = arith.constant 0 : index
    %240 = vector.load %arg24[%c0_342, %c0_343, %c0_344] : memref<2x16x64xf32, #tpu.memory_space<vmem>>, vector<2x16x64xf32>
    %241 = vector.shape_cast %240 : vector<2x16x64xf32> to vector<32x64xf32>
    %c0_345 = arith.constant 0 : index
    %c1_346 = arith.constant 1 : index
    %c0_347 = arith.constant 0 : index
    %c0_348 = arith.constant 0 : index
    %242 = vector.load %arg8[%c0_345, %c1_346, %c0_347, %c0_348] : memref<3x3x64x128xf32, #tpu.memory_space<vmem>>, vector<1x1x64x128xf32>
    %243 = vector.shape_cast %242 : vector<1x1x64x128xf32> to vector<64x128xf32>
    %cst_349 = arith.constant dense<0.000000e+00> : vector<32x128xf32>
    %244 = tpu.matmul %241, %243, %cst_349 {dimension_numbers = #tpu.dot_dimension_numbers<[1], [0], [0], [1], [0, 0, 1, 1], [], []>} : vector<32x64xf32>, vector<64x128xf32>, vector<32x128xf32> -> vector<32x128xf32>
    %245 = arith.addf %227, %244 : vector<32x128xf32>
    %c0_350 = arith.constant 0 : index
    %c0_351 = arith.constant 0 : index
    %c2_352 = arith.constant 2 : index
    %c0_353 = arith.constant 0 : index
    %246 = vector.load %arg17[%c0_350, %c0_351, %c2_352, %c0_353] : memref<2x6x6x64xf32, #tpu.memory_space<vmem>>, vector<2x1x4x64xf32>
    %247 = vector.shape_cast %246 : vector<2x1x4x64xf32> to vector<2x4x64xf32>
    %c0_354 = arith.constant 0 : index
    %c0_355 = arith.constant 0 : index
    %c0_356 = arith.constant 0 : index
    %248 = vector.load %arg24[%c0_354, %c0_355, %c0_356] : memref<2x16x64xf32, #tpu.memory_space<vmem>>, vector<2x4x64xf32>
    tpu.vector_store %arg24[%c0_354, %c0_355, %c0_356], %247 {strides = array<i32>} : memref<2x16x64xf32, #tpu.memory_space<vmem>>, vector<2x4x64xf32>,
    %c0_357 = arith.constant 0 : index
    %c1_358 = arith.constant 1 : index
    %c2_359 = arith.constant 2 : index
    %c0_360 = arith.constant 0 : index
    %249 = vector.load %arg17[%c0_357, %c1_358, %c2_359, %c0_360] : memref<2x6x6x64xf32, #tpu.memory_space<vmem>>, vector<2x1x4x64xf32>
    %250 = vector.shape_cast %249 : vector<2x1x4x64xf32> to vector<2x4x64xf32>
    %c0_361 = arith.constant 0 : index
    %c4_362 = arith.constant 4 : index
    %c0_363 = arith.constant 0 : index
    %251 = vector.load %arg24[%c0_361, %c4_362, %c0_363] : memref<2x16x64xf32, #tpu.memory_space<vmem>>, vector<2x4x64xf32>
    tpu.vector_store %arg24[%c0_361, %c4_362, %c0_363], %250 {strides = array<i32>} : memref<2x16x64xf32, #tpu.memory_space<vmem>>, vector<2x4x64xf32>,
    %c0_364 = arith.constant 0 : index
    %c2_365 = arith.constant 2 : index
    %c2_366 = arith.constant 2 : index
    %c0_367 = arith.constant 0 : index
    %252 = vector.load %arg17[%c0_364, %c2_365, %c2_366, %c0_367] : memref<2x6x6x64xf32, #tpu.memory_space<vmem>>, vector<2x1x4x64xf32>
    %253 = vector.shape_cast %252 : vector<2x1x4x64xf32> to vector<2x4x64xf32>
    %c0_368 = arith.constant 0 : index
    %c8_369 = arith.constant 8 : index
    %c0_370 = arith.constant 0 : index
    %254 = vector.load %arg24[%c0_368, %c8_369, %c0_370] : memref<2x16x64xf32, #tpu.memory_space<vmem>>, vector<2x4x64xf32>
    tpu.vector_store %arg24[%c0_368, %c8_369, %c0_370], %253 {strides = array<i32>} : memref<2x16x64xf32, #tpu.memory_space<vmem>>, vector<2x4x64xf32>,
    %c0_371 = arith.constant 0 : index
    %c3_372 = arith.constant 3 : index
    %c2_373 = arith.constant 2 : index
    %c0_374 = arith.constant 0 : index
    %255 = vector.load %arg17[%c0_371, %c3_372, %c2_373, %c0_374] : memref<2x6x6x64xf32, #tpu.memory_space<vmem>>, vector<2x1x4x64xf32>
    %256 = vector.shape_cast %255 : vector<2x1x4x64xf32> to vector<2x4x64xf32>
    %c0_375 = arith.constant 0 : index
    %c12_376 = arith.constant 12 : index
    %c0_377 = arith.constant 0 : index
    %257 = vector.load %arg24[%c0_375, %c12_376, %c0_377] : memref<2x16x64xf32, #tpu.memory_space<vmem>>, vector<2x4x64xf32>
    tpu.vector_store %arg24[%c0_375, %c12_376, %c0_377], %256 {strides = array<i32>} : memref<2x16x64xf32, #tpu.memory_space<vmem>>, vector<2x4x64xf32>,
    %c0_378 = arith.constant 0 : index
    %c0_379 = arith.constant 0 : index
    %c0_380 = arith.constant 0 : index
    %258 = vector.load %arg24[%c0_378, %c0_379, %c0_380] : memref<2x16x64xf32, #tpu.memory_space<vmem>>, vector<2x16x64xf32>
    %259 = vector.shape_cast %258 : vector<2x16x64xf32> to vector<32x64xf32>
    %c0_381 = arith.constant 0 : index
    %c2_382 = arith.constant 2 : index
    %c0_383 = arith.constant 0 : index
    %c0_384 = arith.constant 0 : index
    %260 = vector.load %arg8[%c0_381, %c2_382, %c0_383, %c0_384] : memref<3x3x64x128xf32, #tpu.memory_space<vmem>>, vector<1x1x64x128xf32>
    %261 = vector.shape_cast %260 : vector<1x1x64x128xf32> to vector<64x128xf32>
    %cst_385 = arith.constant dense<0.000000e+00> : vector<32x128xf32>
    %262 = tpu.matmul %259, %261, %cst_385 {dimension_numbers = #tpu.dot_dimension_numbers<[1], [0], [0], [1], [0, 0, 1, 1], [], []>} : vector<32x64xf32>, vector<64x128xf32>, vector<32x128xf32> -> vector<32x128xf32>
    %263 = arith.addf %245, %262 : vector<32x128xf32>
    %c0_386 = arith.constant 0 : index
    %c1_387 = arith.constant 1 : index
    %c0_388 = arith.constant 0 : index
    %c0_389 = arith.constant 0 : index
    %264 = vector.load %arg17[%c0_386, %c1_387, %c0_388, %c0_389] : memref<2x6x6x64xf32, #tpu.memory_space<vmem>>, vector<2x1x4x64xf32>
    %265 = vector.shape_cast %264 : vector<2x1x4x64xf32> to vector<2x4x64xf32>
    %c0_390 = arith.constant 0 : index
    %c0_391 = arith.constant 0 : index
    %c0_392 = arith.constant 0 : index
    %266 = vector.load %arg24[%c0_390, %c0_391, %c0_392] : memref<2x16x64xf32, #tpu.memory_space<vmem>>, vector<2x4x64xf32>
    tpu.vector_store %arg24[%c0_390, %c0_391, %c0_392], %265 {strides = array<i32>} : memref<2x16x64xf32, #tpu.memory_space<vmem>>, vector<2x4x64xf32>,
    %c0_393 = arith.constant 0 : index
    %c2_394 = arith.constant 2 : index
    %c0_395 = arith.constant 0 : index
    %c0_396 = arith.constant 0 : index
    %267 = vector.load %arg17[%c0_393, %c2_394, %c0_395, %c0_396] : memref<2x6x6x64xf32, #tpu.memory_space<vmem>>, vector<2x1x4x64xf32>
    %268 = vector.shape_cast %267 : vector<2x1x4x64xf32> to vector<2x4x64xf32>
    %c0_397 = arith.constant 0 : index
    %c4_398 = arith.constant 4 : index
    %c0_399 = arith.constant 0 : index
    %269 = vector.load %arg24[%c0_397, %c4_398, %c0_399] : memref<2x16x64xf32, #tpu.memory_space<vmem>>, vector<2x4x64xf32>
    tpu.vector_store %arg24[%c0_397, %c4_398, %c0_399], %268 {strides = array<i32>} : memref<2x16x64xf32, #tpu.memory_space<vmem>>, vector<2x4x64xf32>,
    %c0_400 = arith.constant 0 : index
    %c3_401 = arith.constant 3 : index
    %c0_402 = arith.constant 0 : index
    %c0_403 = arith.constant 0 : index
    %270 = vector.load %arg17[%c0_400, %c3_401, %c0_402, %c0_403] : memref<2x6x6x64xf32, #tpu.memory_space<vmem>>, vector<2x1x4x64xf32>
    %271 = vector.shape_cast %270 : vector<2x1x4x64xf32> to vector<2x4x64xf32>
    %c0_404 = arith.constant 0 : index
    %c8_405 = arith.constant 8 : index
    %c0_406 = arith.constant 0 : index
    %272 = vector.load %arg24[%c0_404, %c8_405, %c0_406] : memref<2x16x64xf32, #tpu.memory_space<vmem>>, vector<2x4x64xf32>
    tpu.vector_store %arg24[%c0_404, %c8_405, %c0_406], %271 {strides = array<i32>} : memref<2x16x64xf32, #tpu.memory_space<vmem>>, vector<2x4x64xf32>,
    %c0_407 = arith.constant 0 : index
    %c4_408 = arith.constant 4 : index
    %c0_409 = arith.constant 0 : index
    %c0_410 = arith.constant 0 : index
    %273 = vector.load %arg17[%c0_407, %c4_408, %c0_409, %c0_410] : memref<2x6x6x64xf32, #tpu.memory_space<vmem>>, vector<2x1x4x64xf32>
    %274 = vector.shape_cast %273 : vector<2x1x4x64xf32> to vector<2x4x64xf32>
    %c0_411 = arith.constant 0 : index
    %c12_412 = arith.constant 12 : index
    %c0_413 = arith.constant 0 : index
    %275 = vector.load %arg24[%c0_411, %c12_412, %c0_413] : memref<2x16x64xf32, #tpu.memory_space<vmem>>, vector<2x4x64xf32>
    tpu.vector_store %arg24[%c0_411, %c12_412, %c0_413], %274 {strides = array<i32>} : memref<2x16x64xf32, #tpu.memory_space<vmem>>, vector<2x4x64xf32>,
    %c0_414 = arith.constant 0 : index
    %c0_415 = arith.constant 0 : index
    %c0_416 = arith.constant 0 : index
    %276 = vector.load %arg24[%c0_414, %c0_415, %c0_416] : memref<2x16x64xf32, #tpu.memory_space<vmem>>, vector<2x16x64xf32>
    %277 = vector.shape_cast %276 : vector<2x16x64xf32> to vector<32x64xf32>
    %c1_417 = arith.constant 1 : index
    %c0_418 = arith.constant 0 : index
    %c0_419 = arith.constant 0 : index
    %c0_420 = arith.constant 0 : index
    %278 = vector.load %arg8[%c1_417, %c0_418, %c0_419, %c0_420] : memref<3x3x64x128xf32, #tpu.memory_space<vmem>>, vector<1x1x64x128xf32>
    %279 = vector.shape_cast %278 : vector<1x1x64x128xf32> to vector<64x128xf32>
    %cst_421 = arith.constant dense<0.000000e+00> : vector<32x128xf32>
    %280 = tpu.matmul %277, %279, %cst_421 {dimension_numbers = #tpu.dot_dimension_numbers<[1], [0], [0], [1], [0, 0, 1, 1], [], []>} : vector<32x64xf32>, vector<64x128xf32>, vector<32x128xf32> -> vector<32x128xf32>
    %281 = arith.addf %263, %280 : vector<32x128xf32>
    %c0_422 = arith.constant 0 : index
    %c1_423 = arith.constant 1 : index
    %c1_424 = arith.constant 1 : index
    %c0_425 = arith.constant 0 : index
    %282 = vector.load %arg17[%c0_422, %c1_423, %c1_424, %c0_425] : memref<2x6x6x64xf32, #tpu.memory_space<vmem>>, vector<2x1x4x64xf32>
    %283 = vector.shape_cast %282 : vector<2x1x4x64xf32> to vector<2x4x64xf32>
    %c0_426 = arith.constant 0 : index
    %c0_427 = arith.constant 0 : index
    %c0_428 = arith.constant 0 : index
    %284 = vector.load %arg24[%c0_426, %c0_427, %c0_428] : memref<2x16x64xf32, #tpu.memory_space<vmem>>, vector<2x4x64xf32>
    tpu.vector_store %arg24[%c0_426, %c0_427, %c0_428], %283 {strides = array<i32>} : memref<2x16x64xf32, #tpu.memory_space<vmem>>, vector<2x4x64xf32>,
    %c0_429 = arith.constant 0 : index
    %c2_430 = arith.constant 2 : index
    %c1_431 = arith.constant 1 : index
    %c0_432 = arith.constant 0 : index
    %285 = vector.load %arg17[%c0_429, %c2_430, %c1_431, %c0_432] : memref<2x6x6x64xf32, #tpu.memory_space<vmem>>, vector<2x1x4x64xf32>
    %286 = vector.shape_cast %285 : vector<2x1x4x64xf32> to vector<2x4x64xf32>
    %c0_433 = arith.constant 0 : index
    %c4_434 = arith.constant 4 : index
    %c0_435 = arith.constant 0 : index
    %287 = vector.load %arg24[%c0_433, %c4_434, %c0_435] : memref<2x16x64xf32, #tpu.memory_space<vmem>>, vector<2x4x64xf32>
    tpu.vector_store %arg24[%c0_433, %c4_434, %c0_435], %286 {strides = array<i32>} : memref<2x16x64xf32, #tpu.memory_space<vmem>>, vector<2x4x64xf32>,
    %c0_436 = arith.constant 0 : index
    %c3_437 = arith.constant 3 : index
    %c1_438 = arith.constant 1 : index
    %c0_439 = arith.constant 0 : index
    %288 = vector.load %arg17[%c0_436, %c3_437, %c1_438, %c0_439] : memref<2x6x6x64xf32, #tpu.memory_space<vmem>>, vector<2x1x4x64xf32>
    %289 = vector.shape_cast %288 : vector<2x1x4x64xf32> to vector<2x4x64xf32>
    %c0_440 = arith.constant 0 : index
    %c8_441 = arith.constant 8 : index
    %c0_442 = arith.constant 0 : index
    %290 = vector.load %arg24[%c0_440, %c8_441, %c0_442] : memref<2x16x64xf32, #tpu.memory_space<vmem>>, vector<2x4x64xf32>
    tpu.vector_store %arg24[%c0_440, %c8_441, %c0_442], %289 {strides = array<i32>} : memref<2x16x64xf32, #tpu.memory_space<vmem>>, vector<2x4x64xf32>,
    %c0_443 = arith.constant 0 : index
    %c4_444 = arith.constant 4 : index
    %c1_445 = arith.constant 1 : index
    %c0_446 = arith.constant 0 : index
    %291 = vector.load %arg17[%c0_443, %c4_444, %c1_445, %c0_446] : memref<2x6x6x64xf32, #tpu.memory_space<vmem>>, vector<2x1x4x64xf32>
    %292 = vector.shape_cast %291 : vector<2x1x4x64xf32> to vector<2x4x64xf32>
    %c0_447 = arith.constant 0 : index
    %c12_448 = arith.constant 12 : index
    %c0_449 = arith.constant 0 : index
    %293 = vector.load %arg24[%c0_447, %c12_448, %c0_449] : memref<2x16x64xf32, #tpu.memory_space<vmem>>, vector<2x4x64xf32>
    tpu.vector_store %arg24[%c0_447, %c12_448, %c0_449], %292 {strides = array<i32>} : memref<2x16x64xf32, #tpu.memory_space<vmem>>, vector<2x4x64xf32>,
    %c0_450 = arith.constant 0 : index
    %c0_451 = arith.constant 0 : index
    %c0_452 = arith.constant 0 : index
    %294 = vector.load %arg24[%c0_450, %c0_451, %c0_452] : memref<2x16x64xf32, #tpu.memory_space<vmem>>, vector<2x16x64xf32>
    %295 = vector.shape_cast %294 : vector<2x16x64xf32> to vector<32x64xf32>
    %c1_453 = arith.constant 1 : index
    %c1_454 = arith.constant 1 : index
    %c0_455 = arith.constant 0 : index
    %c0_456 = arith.constant 0 : index
    %296 = vector.load %arg8[%c1_453, %c1_454, %c0_455, %c0_456] : memref<3x3x64x128xf32, #tpu.memory_space<vmem>>, vector<1x1x64x128xf32>
    %297 = vector.shape_cast %296 : vector<1x1x64x128xf32> to vector<64x128xf32>
    %cst_457 = arith.constant dense<0.000000e+00> : vector<32x128xf32>
    %298 = tpu.matmul %295, %297, %cst_457 {dimension_numbers = #tpu.dot_dimension_numbers<[1], [0], [0], [1], [0, 0, 1, 1], [], []>} : vector<32x64xf32>, vector<64x128xf32>, vector<32x128xf32> -> vector<32x128xf32>
    %299 = arith.addf %281, %298 : vector<32x128xf32>
    %c0_458 = arith.constant 0 : index
    %c1_459 = arith.constant 1 : index
    %c2_460 = arith.constant 2 : index
    %c0_461 = arith.constant 0 : index
    %300 = vector.load %arg17[%c0_458, %c1_459, %c2_460, %c0_461] : memref<2x6x6x64xf32, #tpu.memory_space<vmem>>, vector<2x1x4x64xf32>
    %301 = vector.shape_cast %300 : vector<2x1x4x64xf32> to vector<2x4x64xf32>
    %c0_462 = arith.constant 0 : index
    %c0_463 = arith.constant 0 : index
    %c0_464 = arith.constant 0 : index
    %302 = vector.load %arg24[%c0_462, %c0_463, %c0_464] : memref<2x16x64xf32, #tpu.memory_space<vmem>>, vector<2x4x64xf32>
    tpu.vector_store %arg24[%c0_462, %c0_463, %c0_464], %301 {strides = array<i32>} : memref<2x16x64xf32, #tpu.memory_space<vmem>>, vector<2x4x64xf32>,
    %c0_465 = arith.constant 0 : index
    %c2_466 = arith.constant 2 : index
    %c2_467 = arith.constant 2 : index
    %c0_468 = arith.constant 0 : index
    %303 = vector.load %arg17[%c0_465, %c2_466, %c2_467, %c0_468] : memref<2x6x6x64xf32, #tpu.memory_space<vmem>>, vector<2x1x4x64xf32>
    %304 = vector.shape_cast %303 : vector<2x1x4x64xf32> to vector<2x4x64xf32>
    %c0_469 = arith.constant 0 : index
    %c4_470 = arith.constant 4 : index
    %c0_471 = arith.constant 0 : index
    %305 = vector.load %arg24[%c0_469, %c4_470, %c0_471] : memref<2x16x64xf32, #tpu.memory_space<vmem>>, vector<2x4x64xf32>
    tpu.vector_store %arg24[%c0_469, %c4_470, %c0_471], %304 {strides = array<i32>} : memref<2x16x64xf32, #tpu.memory_space<vmem>>, vector<2x4x64xf32>,
    %c0_472 = arith.constant 0 : index
    %c3_473 = arith.constant 3 : index
    %c2_474 = arith.constant 2 : index
    %c0_475 = arith.constant 0 : index
    %306 = vector.load %arg17[%c0_472, %c3_473, %c2_474, %c0_475] : memref<2x6x6x64xf32, #tpu.memory_space<vmem>>, vector<2x1x4x64xf32>
    %307 = vector.shape_cast %306 : vector<2x1x4x64xf32> to vector<2x4x64xf32>
    %c0_476 = arith.constant 0 : index
    %c8_477 = arith.constant 8 : index
    %c0_478 = arith.constant 0 : index
    %308 = vector.load %arg24[%c0_476, %c8_477, %c0_478] : memref<2x16x64xf32, #tpu.memory_space<vmem>>, vector<2x4x64xf32>
    tpu.vector_store %arg24[%c0_476, %c8_477, %c0_478], %307 {strides = array<i32>} : memref<2x16x64xf32, #tpu.memory_space<vmem>>, vector<2x4x64xf32>,
    %c0_479 = arith.constant 0 : index
    %c4_480 = arith.constant 4 : index
    %c2_481 = arith.constant 2 : index
    %c0_482 = arith.constant 0 : index
    %309 = vector.load %arg17[%c0_479, %c4_480, %c2_481, %c0_482] : memref<2x6x6x64xf32, #tpu.memory_space<vmem>>, vector<2x1x4x64xf32>
    %310 = vector.shape_cast %309 : vector<2x1x4x64xf32> to vector<2x4x64xf32>
    %c0_483 = arith.constant 0 : index
    %c12_484 = arith.constant 12 : index
    %c0_485 = arith.constant 0 : index
    %311 = vector.load %arg24[%c0_483, %c12_484, %c0_485] : memref<2x16x64xf32, #tpu.memory_space<vmem>>, vector<2x4x64xf32>
    tpu.vector_store %arg24[%c0_483, %c12_484, %c0_485], %310 {strides = array<i32>} : memref<2x16x64xf32, #tpu.memory_space<vmem>>, vector<2x4x64xf32>,
    %c0_486 = arith.constant 0 : index
    %c0_487 = arith.constant 0 : index
    %c0_488 = arith.constant 0 : index
    %312 = vector.load %arg24[%c0_486, %c0_487, %c0_488] : memref<2x16x64xf32, #tpu.memory_space<vmem>>, vector<2x16x64xf32>
    %313 = vector.shape_cast %312 : vector<2x16x64xf32> to vector<32x64xf32>
    %c1_489 = arith.constant 1 : index
    %c2_490 = arith.constant 2 : index
    %c0_491 = arith.constant 0 : index
    %c0_492 = arith.constant 0 : index
    %314 = vector.load %arg8[%c1_489, %c2_490, %c0_491, %c0_492] : memref<3x3x64x128xf32, #tpu.memory_space<vmem>>, vector<1x1x64x128xf32>
    %315 = vector.shape_cast %314 : vector<1x1x64x128xf32> to vector<64x128xf32>
    %cst_493 = arith.constant dense<0.000000e+00> : vector<32x128xf32>
    %316 = tpu.matmul %313, %315, %cst_493 {dimension_numbers = #tpu.dot_dimension_numbers<[1], [0], [0], [1], [0, 0, 1, 1], [], []>} : vector<32x64xf32>, vector<64x128xf32>, vector<32x128xf32> -> vector<32x128xf32>
    %317 = arith.addf %299, %316 : vector<32x128xf32>
    %c0_494 = arith.constant 0 : index
    %c2_495 = arith.constant 2 : index
    %c0_496 = arith.constant 0 : index
    %c0_497 = arith.constant 0 : index
    %318 = vector.load %arg17[%c0_494, %c2_495, %c0_496, %c0_497] : memref<2x6x6x64xf32, #tpu.memory_space<vmem>>, vector<2x1x4x64xf32>
    %319 = vector.shape_cast %318 : vector<2x1x4x64xf32> to vector<2x4x64xf32>
    %c0_498 = arith.constant 0 : index
    %c0_499 = arith.constant 0 : index
    %c0_500 = arith.constant 0 : index
    %320 = vector.load %arg24[%c0_498, %c0_499, %c0_500] : memref<2x16x64xf32, #tpu.memory_space<vmem>>, vector<2x4x64xf32>
    tpu.vector_store %arg24[%c0_498, %c0_499, %c0_500], %319 {strides = array<i32>} : memref<2x16x64xf32, #tpu.memory_space<vmem>>, vector<2x4x64xf32>,
    %c0_501 = arith.constant 0 : index
    %c3_502 = arith.constant 3 : index
    %c0_503 = arith.constant 0 : index
    %c0_504 = arith.constant 0 : index
    %321 = vector.load %arg17[%c0_501, %c3_502, %c0_503, %c0_504] : memref<2x6x6x64xf32, #tpu.memory_space<vmem>>, vector<2x1x4x64xf32>
    %322 = vector.shape_cast %321 : vector<2x1x4x64xf32> to vector<2x4x64xf32>
    %c0_505 = arith.constant 0 : index
    %c4_506 = arith.constant 4 : index
    %c0_507 = arith.constant 0 : index
    %323 = vector.load %arg24[%c0_505, %c4_506, %c0_507] : memref<2x16x64xf32, #tpu.memory_space<vmem>>, vector<2x4x64xf32>
    tpu.vector_store %arg24[%c0_505, %c4_506, %c0_507], %322 {strides = array<i32>} : memref<2x16x64xf32, #tpu.memory_space<vmem>>, vector<2x4x64xf32>,
    %c0_508 = arith.constant 0 : index
    %c4_509 = arith.constant 4 : index
    %c0_510 = arith.constant 0 : index
    %c0_511 = arith.constant 0 : index
    %324 = vector.load %arg17[%c0_508, %c4_509, %c0_510, %c0_511] : memref<2x6x6x64xf32, #tpu.memory_space<vmem>>, vector<2x1x4x64xf32>
    %325 = vector.shape_cast %324 : vector<2x1x4x64xf32> to vector<2x4x64xf32>
    %c0_512 = arith.constant 0 : index
    %c8_513 = arith.constant 8 : index
    %c0_514 = arith.constant 0 : index
    %326 = vector.load %arg24[%c0_512, %c8_513, %c0_514] : memref<2x16x64xf32, #tpu.memory_space<vmem>>, vector<2x4x64xf32>
    tpu.vector_store %arg24[%c0_512, %c8_513, %c0_514], %325 {strides = array<i32>} : memref<2x16x64xf32, #tpu.memory_space<vmem>>, vector<2x4x64xf32>,
    %c0_515 = arith.constant 0 : index
    %c5_516 = arith.constant 5 : index
    %c0_517 = arith.constant 0 : index
    %c0_518 = arith.constant 0 : index
    %327 = vector.load %arg17[%c0_515, %c5_516, %c0_517, %c0_518] : memref<2x6x6x64xf32, #tpu.memory_space<vmem>>, vector<2x1x4x64xf32>
    %328 = vector.shape_cast %327 : vector<2x1x4x64xf32> to vector<2x4x64xf32>
    %c0_519 = arith.constant 0 : index
    %c12_520 = arith.constant 12 : index
    %c0_521 = arith.constant 0 : index
    %329 = vector.load %arg24[%c0_519, %c12_520, %c0_521] : memref<2x16x64xf32, #tpu.memory_space<vmem>>, vector<2x4x64xf32>
    tpu.vector_store %arg24[%c0_519, %c12_520, %c0_521], %328 {strides = array<i32>} : memref<2x16x64xf32, #tpu.memory_space<vmem>>, vector<2x4x64xf32>,
    %c0_522 = arith.constant 0 : index
    %c0_523 = arith.constant 0 : index
    %c0_524 = arith.constant 0 : index
    %330 = vector.load %arg24[%c0_522, %c0_523, %c0_524] : memref<2x16x64xf32, #tpu.memory_space<vmem>>, vector<2x16x64xf32>
    %331 = vector.shape_cast %330 : vector<2x16x64xf32> to vector<32x64xf32>
    %c2_525 = arith.constant 2 : index
    %c0_526 = arith.constant 0 : index
    %c0_527 = arith.constant 0 : index
    %c0_528 = arith.constant 0 : index
    %332 = vector.load %arg8[%c2_525, %c0_526, %c0_527, %c0_528] : memref<3x3x64x128xf32, #tpu.memory_space<vmem>>, vector<1x1x64x128xf32>
    %333 = vector.shape_cast %332 : vector<1x1x64x128xf32> to vector<64x128xf32>
    %cst_529 = arith.constant dense<0.000000e+00> : vector<32x128xf32>
    %334 = tpu.matmul %331, %333, %cst_529 {dimension_numbers = #tpu.dot_dimension_numbers<[1], [0], [0], [1], [0, 0, 1, 1], [], []>} : vector<32x64xf32>, vector<64x128xf32>, vector<32x128xf32> -> vector<32x128xf32>
    %335 = arith.addf %317, %334 : vector<32x128xf32>
    %c0_530 = arith.constant 0 : index
    %c2_531 = arith.constant 2 : index
    %c1_532 = arith.constant 1 : index
    %c0_533 = arith.constant 0 : index
    %336 = vector.load %arg17[%c0_530, %c2_531, %c1_532, %c0_533] : memref<2x6x6x64xf32, #tpu.memory_space<vmem>>, vector<2x1x4x64xf32>
    %337 = vector.shape_cast %336 : vector<2x1x4x64xf32> to vector<2x4x64xf32>
    %c0_534 = arith.constant 0 : index
    %c0_535 = arith.constant 0 : index
    %c0_536 = arith.constant 0 : index
    %338 = vector.load %arg24[%c0_534, %c0_535, %c0_536] : memref<2x16x64xf32, #tpu.memory_space<vmem>>, vector<2x4x64xf32>
    tpu.vector_store %arg24[%c0_534, %c0_535, %c0_536], %337 {strides = array<i32>} : memref<2x16x64xf32, #tpu.memory_space<vmem>>, vector<2x4x64xf32>,
    %c0_537 = arith.constant 0 : index
    %c3_538 = arith.constant 3 : index
    %c1_539 = arith.constant 1 : index
    %c0_540 = arith.constant 0 : index
    %339 = vector.load %arg17[%c0_537, %c3_538, %c1_539, %c0_540] : memref<2x6x6x64xf32, #tpu.memory_space<vmem>>, vector<2x1x4x64xf32>
    %340 = vector.shape_cast %339 : vector<2x1x4x64xf32> to vector<2x4x64xf32>
    %c0_541 = arith.constant 0 : index
    %c4_542 = arith.constant 4 : index
    %c0_543 = arith.constant 0 : index
    %341 = vector.load %arg24[%c0_541, %c4_542, %c0_543] : memref<2x16x64xf32, #tpu.memory_space<vmem>>, vector<2x4x64xf32>
    tpu.vector_store %arg24[%c0_541, %c4_542, %c0_543], %340 {strides = array<i32>} : memref<2x16x64xf32, #tpu.memory_space<vmem>>, vector<2x4x64xf32>,
    %c0_544 = arith.constant 0 : index
    %c4_545 = arith.constant 4 : index
    %c1_546 = arith.constant 1 : index
    %c0_547 = arith.constant 0 : index
    %342 = vector.load %arg17[%c0_544, %c4_545, %c1_546, %c0_547] : memref<2x6x6x64xf32, #tpu.memory_space<vmem>>, vector<2x1x4x64xf32>
    %343 = vector.shape_cast %342 : vector<2x1x4x64xf32> to vector<2x4x64xf32>
    %c0_548 = arith.constant 0 : index
    %c8_549 = arith.constant 8 : index
    %c0_550 = arith.constant 0 : index
    %344 = vector.load %arg24[%c0_548, %c8_549, %c0_550] : memref<2x16x64xf32, #tpu.memory_space<vmem>>, vector<2x4x64xf32>
    tpu.vector_store %arg24[%c0_548, %c8_549, %c0_550], %343 {strides = array<i32>} : memref<2x16x64xf32, #tpu.memory_space<vmem>>, vector<2x4x64xf32>,
    %c0_551 = arith.constant 0 : index
    %c5_552 = arith.constant 5 : index
    %c1_553 = arith.constant 1 : index
    %c0_554 = arith.constant 0 : index
    %345 = vector.load %arg17[%c0_551, %c5_552, %c1_553, %c0_554] : memref<2x6x6x64xf32, #tpu.memory_space<vmem>>, vector<2x1x4x64xf32>
    %346 = vector.shape_cast %345 : vector<2x1x4x64xf32> to vector<2x4x64xf32>
    %c0_555 = arith.constant 0 : index
    %c12_556 = arith.constant 12 : index
    %c0_557 = arith.constant 0 : index
    %347 = vector.load %arg24[%c0_555, %c12_556, %c0_557] : memref<2x16x64xf32, #tpu.memory_space<vmem>>, vector<2x4x64xf32>
    tpu.vector_store %arg24[%c0_555, %c12_556, %c0_557], %346 {strides = array<i32>} : memref<2x16x64xf32, #tpu.memory_space<vmem>>, vector<2x4x64xf32>,
    %c0_558 = arith.constant 0 : index
    %c0_559 = arith.constant 0 : index
    %c0_560 = arith.constant 0 : index
    %348 = vector.load %arg24[%c0_558, %c0_559, %c0_560] : memref<2x16x64xf32, #tpu.memory_space<vmem>>, vector<2x16x64xf32>
    %349 = vector.shape_cast %348 : vector<2x16x64xf32> to vector<32x64xf32>
    %c2_561 = arith.constant 2 : index
    %c1_562 = arith.constant 1 : index
    %c0_563 = arith.constant 0 : index
    %c0_564 = arith.constant 0 : index
    %350 = vector.load %arg8[%c2_561, %c1_562, %c0_563, %c0_564] : memref<3x3x64x128xf32, #tpu.memory_space<vmem>>, vector<1x1x64x128xf32>
    %351 = vector.shape_cast %350 : vector<1x1x64x128xf32> to vector<64x128xf32>
    %cst_565 = arith.constant dense<0.000000e+00> : vector<32x128xf32>
    %352 = tpu.matmul %349, %351, %cst_565 {dimension_numbers = #tpu.dot_dimension_numbers<[1], [0], [0], [1], [0, 0, 1, 1], [], []>} : vector<32x64xf32>, vector<64x128xf32>, vector<32x128xf32> -> vector<32x128xf32>
    %353 = arith.addf %335, %352 : vector<32x128xf32>
    %c0_566 = arith.constant 0 : index
    %c2_567 = arith.constant 2 : index
    %c2_568 = arith.constant 2 : index
    %c0_569 = arith.constant 0 : index
    %354 = vector.load %arg17[%c0_566, %c2_567, %c2_568, %c0_569] : memref<2x6x6x64xf32, #tpu.memory_space<vmem>>, vector<2x1x4x64xf32>
    %355 = vector.shape_cast %354 : vector<2x1x4x64xf32> to vector<2x4x64xf32>
    %c0_570 = arith.constant 0 : index
    %c0_571 = arith.constant 0 : index
    %c0_572 = arith.constant 0 : index
    %356 = vector.load %arg24[%c0_570, %c0_571, %c0_572] : memref<2x16x64xf32, #tpu.memory_space<vmem>>, vector<2x4x64xf32>
    tpu.vector_store %arg24[%c0_570, %c0_571, %c0_572], %355 {strides = array<i32>} : memref<2x16x64xf32, #tpu.memory_space<vmem>>, vector<2x4x64xf32>,
    %c0_573 = arith.constant 0 : index
    %c3_574 = arith.constant 3 : index
    %c2_575 = arith.constant 2 : index
    %c0_576 = arith.constant 0 : index
    %357 = vector.load %arg17[%c0_573, %c3_574, %c2_575, %c0_576] : memref<2x6x6x64xf32, #tpu.memory_space<vmem>>, vector<2x1x4x64xf32>
    %358 = vector.shape_cast %357 : vector<2x1x4x64xf32> to vector<2x4x64xf32>
    %c0_577 = arith.constant 0 : index
    %c4_578 = arith.constant 4 : index
    %c0_579 = arith.constant 0 : index
    %359 = vector.load %arg24[%c0_577, %c4_578, %c0_579] : memref<2x16x64xf32, #tpu.memory_space<vmem>>, vector<2x4x64xf32>
    tpu.vector_store %arg24[%c0_577, %c4_578, %c0_579], %358 {strides = array<i32>} : memref<2x16x64xf32, #tpu.memory_space<vmem>>, vector<2x4x64xf32>,
    %c0_580 = arith.constant 0 : index
    %c4_581 = arith.constant 4 : index
    %c2_582 = arith.constant 2 : index
    %c0_583 = arith.constant 0 : index
    %360 = vector.load %arg17[%c0_580, %c4_581, %c2_582, %c0_583] : memref<2x6x6x64xf32, #tpu.memory_space<vmem>>, vector<2x1x4x64xf32>
    %361 = vector.shape_cast %360 : vector<2x1x4x64xf32> to vector<2x4x64xf32>
    %c0_584 = arith.constant 0 : index
    %c8_585 = arith.constant 8 : index
    %c0_586 = arith.constant 0 : index
    %362 = vector.load %arg24[%c0_584, %c8_585, %c0_586] : memref<2x16x64xf32, #tpu.memory_space<vmem>>, vector<2x4x64xf32>
    tpu.vector_store %arg24[%c0_584, %c8_585, %c0_586], %361 {strides = array<i32>} : memref<2x16x64xf32, #tpu.memory_space<vmem>>, vector<2x4x64xf32>,
    %c0_587 = arith.constant 0 : index
    %c5_588 = arith.constant 5 : index
    %c2_589 = arith.constant 2 : index
    %c0_590 = arith.constant 0 : index
    %363 = vector.load %arg17[%c0_587, %c5_588, %c2_589, %c0_590] : memref<2x6x6x64xf32, #tpu.memory_space<vmem>>, vector<2x1x4x64xf32>
    %364 = vector.shape_cast %363 : vector<2x1x4x64xf32> to vector<2x4x64xf32>
    %c0_591 = arith.constant 0 : index
    %c12_592 = arith.constant 12 : index
    %c0_593 = arith.constant 0 : index
    %365 = vector.load %arg24[%c0_591, %c12_592, %c0_593] : memref<2x16x64xf32, #tpu.memory_space<vmem>>, vector<2x4x64xf32>
    tpu.vector_store %arg24[%c0_591, %c12_592, %c0_593], %364 {strides = array<i32>} : memref<2x16x64xf32, #tpu.memory_space<vmem>>, vector<2x4x64xf32>,
    %c0_594 = arith.constant 0 : index
    %c0_595 = arith.constant 0 : index
    %c0_596 = arith.constant 0 : index
    %366 = vector.load %arg24[%c0_594, %c0_595, %c0_596] : memref<2x16x64xf32, #tpu.memory_space<vmem>>, vector<2x16x64xf32>
    %367 = vector.shape_cast %366 : vector<2x16x64xf32> to vector<32x64xf32>
    %c2_597 = arith.constant 2 : index
    %c2_598 = arith.constant 2 : index
    %c0_599 = arith.constant 0 : index
    %c0_600 = arith.constant 0 : index
    %368 = vector.load %arg8[%c2_597, %c2_598, %c0_599, %c0_600] : memref<3x3x64x128xf32, #tpu.memory_space<vmem>>, vector<1x1x64x128xf32>
    %369 = vector.shape_cast %368 : vector<1x1x64x128xf32> to vector<64x128xf32>
    %cst_601 = arith.constant dense<0.000000e+00> : vector<32x128xf32>
    %370 = tpu.matmul %367, %369, %cst_601 {dimension_numbers = #tpu.dot_dimension_numbers<[1], [0], [0], [1], [0, 0, 1, 1], [], []>} : vector<32x64xf32>, vector<64x128xf32>, vector<32x128xf32> -> vector<32x128xf32>
    %371 = arith.addf %353, %370 : vector<32x128xf32>
    %c0_602 = arith.constant 0 : index
    %c0_603 = arith.constant 0 : index
    %372 = vector.load %arg9[%c0_602, %c0_603] : memref<1x128xf32, #tpu.memory_space<vmem>>, vector<1x128xf32>
    %373 = vector.broadcast %372 : vector<1x128xf32> to vector<32x128xf32>
    %374 = arith.mulf %371, %373 : vector<32x128xf32>
    %c0_604 = arith.constant 0 : index
    %c0_605 = arith.constant 0 : index
    %375 = vector.load %arg10[%c0_604, %c0_605] : memref<1x128xf32, #tpu.memory_space<vmem>>, vector<1x128xf32>
    %376 = vector.broadcast %375 : vector<1x128xf32> to vector<32x128xf32>
    %377 = arith.addf %374, %376 : vector<32x128xf32>
    %cst_606 = arith.constant 0.000000e+00 : f32
    %378 = vector.broadcast %cst_606 : f32 to vector<32x128xf32>
    %379 = arith.maximumf %377, %378 : vector<32x128xf32>
    %380 = vector.shape_cast %379 : vector<32x128xf32> to vector<2x16x128xf32>
    %c0_607 = arith.constant 0 : index
    %c0_608 = arith.constant 0 : index
    %c0_609 = arith.constant 0 : index
    %381 = vector.load %arg22[%c0_607, %c0_608, %c0_609] : memref<2x16x128xf32, #tpu.memory_space<vmem>>, vector<2x16x128xf32>
    tpu.vector_store %arg22[%c0_607, %c0_608, %c0_609], %380 {strides = array<i32>} : memref<2x16x128xf32, #tpu.memory_space<vmem>>, vector<2x16x128xf32>,
    %c0_610 = arith.constant 0 : index
    %c0_611 = arith.constant 0 : index
    %c0_612 = arith.constant 0 : index
    %382 = tpu.strided_load %arg22[%c0_610, %c0_611, %c0_612] {strides = array<i32: 1, 2, 1>} : memref<2x16x128xf32, #tpu.memory_space<vmem>>, vector<2x8x128xf32>
    %c0_613 = arith.constant 0 : index
    %c1_614 = arith.constant 1 : index
    %c0_615 = arith.constant 0 : index
    %383 = tpu.strided_load %arg22[%c0_613, %c1_614, %c0_615] {strides = array<i32: 1, 2, 1>} : memref<2x16x128xf32, #tpu.memory_space<vmem>>, vector<2x8x128xf32>
    %384 = arith.maximumf %382, %383 : vector<2x8x128xf32>
    %c0_616 = arith.constant 0 : index
    %c0_617 = arith.constant 0 : index
    %c0_618 = arith.constant 0 : index
    %385 = vector.load %arg23[%c0_616, %c0_617, %c0_618] : memref<2x8x128xf32, #tpu.memory_space<vmem>>, vector<2x8x128xf32>
    tpu.vector_store %arg23[%c0_616, %c0_617, %c0_618], %384 {strides = array<i32>} : memref<2x8x128xf32, #tpu.memory_space<vmem>>, vector<2x8x128xf32>,
    %c0_619 = arith.constant 0 : index
    %c0_620 = arith.constant 0 : index
    %c0_621 = arith.constant 0 : index
    %386 = vector.load %arg23[%c0_619, %c0_620, %c0_621] : memref<2x8x128xf32, #tpu.memory_space<vmem>>, vector<2x1x128xf32>
    %c0_622 = arith.constant 0 : index
    %c2_623 = arith.constant 2 : index
    %c0_624 = arith.constant 0 : index
    %387 = vector.load %arg23[%c0_622, %c2_623, %c0_624] : memref<2x8x128xf32, #tpu.memory_space<vmem>>, vector<2x1x128xf32>
    %388 = arith.maximumf %386, %387 : vector<2x1x128xf32>
    %c0_625 = arith.constant 0 : index
    %c0_626 = arith.constant 0 : index
    %c0_627 = arith.constant 0 : index
    %389 = vector.load %arg25[%c0_625, %c0_626, %c0_627] : memref<2x4x128xf32, #tpu.memory_space<vmem>>, vector<2x1x128xf32>
    tpu.vector_store %arg25[%c0_625, %c0_626, %c0_627], %388 {strides = array<i32>} : memref<2x4x128xf32, #tpu.memory_space<vmem>>, vector<2x1x128xf32>,
    %c0_628 = arith.constant 0 : index
    %c1_629 = arith.constant 1 : index
    %c0_630 = arith.constant 0 : index
    %390 = vector.load %arg23[%c0_628, %c1_629, %c0_630] : memref<2x8x128xf32, #tpu.memory_space<vmem>>, vector<2x1x128xf32>
    %c0_631 = arith.constant 0 : index
    %c3_632 = arith.constant 3 : index
    %c0_633 = arith.constant 0 : index
    %391 = vector.load %arg23[%c0_631, %c3_632, %c0_633] : memref<2x8x128xf32, #tpu.memory_space<vmem>>, vector<2x1x128xf32>
    %392 = arith.maximumf %390, %391 : vector<2x1x128xf32>
    %c0_634 = arith.constant 0 : index
    %c1_635 = arith.constant 1 : index
    %c0_636 = arith.constant 0 : index
    %393 = vector.load %arg25[%c0_634, %c1_635, %c0_636] : memref<2x4x128xf32, #tpu.memory_space<vmem>>, vector<2x1x128xf32>
    tpu.vector_store %arg25[%c0_634, %c1_635, %c0_636], %392 {strides = array<i32>} : memref<2x4x128xf32, #tpu.memory_space<vmem>>, vector<2x1x128xf32>,
    %c0_637 = arith.constant 0 : index
    %c4_638 = arith.constant 4 : index
    %c0_639 = arith.constant 0 : index
    %394 = vector.load %arg23[%c0_637, %c4_638, %c0_639] : memref<2x8x128xf32, #tpu.memory_space<vmem>>, vector<2x1x128xf32>
    %c0_640 = arith.constant 0 : index
    %c6_641 = arith.constant 6 : index
    %c0_642 = arith.constant 0 : index
    %395 = vector.load %arg23[%c0_640, %c6_641, %c0_642] : memref<2x8x128xf32, #tpu.memory_space<vmem>>, vector<2x1x128xf32>
    %396 = arith.maximumf %394, %395 : vector<2x1x128xf32>
    %c0_643 = arith.constant 0 : index
    %c2_644 = arith.constant 2 : index
    %c0_645 = arith.constant 0 : index
    %397 = vector.load %arg25[%c0_643, %c2_644, %c0_645] : memref<2x4x128xf32, #tpu.memory_space<vmem>>, vector<2x1x128xf32>
    tpu.vector_store %arg25[%c0_643, %c2_644, %c0_645], %396 {strides = array<i32>} : memref<2x4x128xf32, #tpu.memory_space<vmem>>, vector<2x1x128xf32>,
    %c0_646 = arith.constant 0 : index
    %c5_647 = arith.constant 5 : index
    %c0_648 = arith.constant 0 : index
    %398 = vector.load %arg23[%c0_646, %c5_647, %c0_648] : memref<2x8x128xf32, #tpu.memory_space<vmem>>, vector<2x1x128xf32>
    %c0_649 = arith.constant 0 : index
    %c7_650 = arith.constant 7 : index
    %c0_651 = arith.constant 0 : index
    %399 = vector.load %arg23[%c0_649, %c7_650, %c0_651] : memref<2x8x128xf32, #tpu.memory_space<vmem>>, vector<2x1x128xf32>
    %400 = arith.maximumf %398, %399 : vector<2x1x128xf32>
    %c0_652 = arith.constant 0 : index
    %c3_653 = arith.constant 3 : index
    %c0_654 = arith.constant 0 : index
    %401 = vector.load %arg25[%c0_652, %c3_653, %c0_654] : memref<2x4x128xf32, #tpu.memory_space<vmem>>, vector<2x1x128xf32>
    tpu.vector_store %arg25[%c0_652, %c3_653, %c0_654], %400 {strides = array<i32>} : memref<2x4x128xf32, #tpu.memory_space<vmem>>, vector<2x1x128xf32>,
    %cst_655 = arith.constant 0.000000e+00 : f32
    %402 = vector.broadcast %cst_655 : f32 to vector<2x256xf32>
    %c0_656 = arith.constant 0 : index
    %c0_657 = arith.constant 0 : index
    %c0_658 = arith.constant 0 : index
    %403 = vector.load %arg25[%c0_656, %c0_657, %c0_658] : memref<2x4x128xf32, #tpu.memory_space<vmem>>, vector<2x1x128xf32>
    %404 = vector.shape_cast %403 : vector<2x1x128xf32> to vector<2x128xf32>
    %c0_659 = arith.constant 0 : index
    %c0_660 = arith.constant 0 : index
    %405 = vector.load %arg11[%c0_659, %c0_660] : memref<512x256xf32, #tpu.memory_space<vmem>>, vector<128x256xf32>
    %cst_661 = arith.constant dense<0.000000e+00> : vector<2x256xf32>
    %406 = tpu.matmul %404, %405, %cst_661 {dimension_numbers = #tpu.dot_dimension_numbers<[1], [0], [0], [1], [0, 0, 1, 1], [], []>} : vector<2x128xf32>, vector<128x256xf32>, vector<2x256xf32> -> vector<2x256xf32>
    %407 = arith.addf %402, %406 : vector<2x256xf32>
    %c0_662 = arith.constant 0 : index
    %c1_663 = arith.constant 1 : index
    %c0_664 = arith.constant 0 : index
    %408 = vector.load %arg25[%c0_662, %c1_663, %c0_664] : memref<2x4x128xf32, #tpu.memory_space<vmem>>, vector<2x1x128xf32>
    %409 = vector.shape_cast %408 : vector<2x1x128xf32> to vector<2x128xf32>
    %c128_665 = arith.constant 128 : index
    %c0_666 = arith.constant 0 : index
    %410 = vector.load %arg11[%c128_665, %c0_666] : memref<512x256xf32, #tpu.memory_space<vmem>>, vector<128x256xf32>
    %cst_667 = arith.constant dense<0.000000e+00> : vector<2x256xf32>
    %411 = tpu.matmul %409, %410, %cst_667 {dimension_numbers = #tpu.dot_dimension_numbers<[1], [0], [0], [1], [0, 0, 1, 1], [], []>} : vector<2x128xf32>, vector<128x256xf32>, vector<2x256xf32> -> vector<2x256xf32>
    %412 = arith.addf %407, %411 : vector<2x256xf32>
    %c0_668 = arith.constant 0 : index
    %c2_669 = arith.constant 2 : index
    %c0_670 = arith.constant 0 : index
    %413 = vector.load %arg25[%c0_668, %c2_669, %c0_670] : memref<2x4x128xf32, #tpu.memory_space<vmem>>, vector<2x1x128xf32>
    %414 = vector.shape_cast %413 : vector<2x1x128xf32> to vector<2x128xf32>
    %c256 = arith.constant 256 : index
    %c0_671 = arith.constant 0 : index
    %415 = vector.load %arg11[%c256, %c0_671] : memref<512x256xf32, #tpu.memory_space<vmem>>, vector<128x256xf32>
    %cst_672 = arith.constant dense<0.000000e+00> : vector<2x256xf32>
    %416 = tpu.matmul %414, %415, %cst_672 {dimension_numbers = #tpu.dot_dimension_numbers<[1], [0], [0], [1], [0, 0, 1, 1], [], []>} : vector<2x128xf32>, vector<128x256xf32>, vector<2x256xf32> -> vector<2x256xf32>
    %417 = arith.addf %412, %416 : vector<2x256xf32>
    %c0_673 = arith.constant 0 : index
    %c3_674 = arith.constant 3 : index
    %c0_675 = arith.constant 0 : index
    %418 = vector.load %arg25[%c0_673, %c3_674, %c0_675] : memref<2x4x128xf32, #tpu.memory_space<vmem>>, vector<2x1x128xf32>
    %419 = vector.shape_cast %418 : vector<2x1x128xf32> to vector<2x128xf32>
    %c384 = arith.constant 384 : index
    %c0_676 = arith.constant 0 : index
    %420 = vector.load %arg11[%c384, %c0_676] : memref<512x256xf32, #tpu.memory_space<vmem>>, vector<128x256xf32>
    %cst_677 = arith.constant dense<0.000000e+00> : vector<2x256xf32>
    %421 = tpu.matmul %419, %420, %cst_677 {dimension_numbers = #tpu.dot_dimension_numbers<[1], [0], [0], [1], [0, 0, 1, 1], [], []>} : vector<2x128xf32>, vector<128x256xf32>, vector<2x256xf32> -> vector<2x256xf32>
    %422 = arith.addf %417, %421 : vector<2x256xf32>
    %c0_678 = arith.constant 0 : index
    %c0_679 = arith.constant 0 : index
    %423 = vector.load %arg12[%c0_678, %c0_679] : memref<1x256xf32, #tpu.memory_space<vmem>>, vector<1x256xf32>
    %424 = vector.broadcast %423 : vector<1x256xf32> to vector<2x256xf32>
    %425 = arith.addf %422, %424 : vector<2x256xf32>
    %cst_680 = arith.constant 0.000000e+00 : f32
    %426 = vector.broadcast %cst_680 : f32 to vector<2x256xf32>
    %427 = arith.maximumf %425, %426 : vector<2x256xf32>
    %c0_681 = arith.constant 0 : index
    %c0_682 = arith.constant 0 : index
    %428 = vector.load %arg13[%c0_681, %c0_682] : memref<256x128xf32, #tpu.memory_space<vmem>>, vector<256x128xf32>
    %cst_683 = arith.constant dense<0.000000e+00> : vector<2x128xf32>
    %429 = tpu.matmul %427, %428, %cst_683 {dimension_numbers = #tpu.dot_dimension_numbers<[1], [0], [0], [1], [0, 0, 1, 1], [], []>} : vector<2x256xf32>, vector<256x128xf32>, vector<2x128xf32> -> vector<2x128xf32>
    %c0_684 = arith.constant 0 : index
    %c0_685 = arith.constant 0 : index
    %430 = vector.load %arg14[%c0_684, %c0_685] : memref<1x128xf32, #tpu.memory_space<vmem>>, vector<1x128xf32>
    %431 = vector.broadcast %430 : vector<1x128xf32> to vector<2x128xf32>
    %432 = arith.addf %429, %431 : vector<2x128xf32>
    %c0_686 = arith.constant 0 : index
    %c0_687 = arith.constant 0 : index
    %433 = vector.load %arg15[%c0_686, %c0_687] : memref<2x128xf32, #tpu.memory_space<vmem>>, vector<2x128xf32>
    tpu.vector_store %arg15[%c0_686, %c0_687], %432 {strides = array<i32>} : memref<2x128xf32, #tpu.memory_space<vmem>>, vector<2x128xf32>,
    return
  }
  func.func @transform_0(%arg0: i32) -> (i32, i32, i32, i32) {
    %c0_i32 = arith.constant 0 : i32
    %c0_i32_0 = arith.constant 0 : i32
    %c0_i32_1 = arith.constant 0 : i32
    %c0_i32_2 = arith.constant 0 : i32
    return %arg0, %c0_i32, %c0_i32_0, %c0_i32_1 : i32, i32, i32, i32
  }
  func.func @transform_1(%arg0: i32) -> (i32, i32) {
    %c0_i32 = arith.constant 0 : i32
    %c0_i32_0 = arith.constant 0 : i32
    %c0_i32_1 = arith.constant 0 : i32
    return %c0_i32, %c0_i32_0 : i32, i32
  }
  func.func @transform_2(%arg0: i32) -> (i32, i32) {
    %c0_i32 = arith.constant 0 : i32
    %c0_i32_0 = arith.constant 0 : i32
    %c0_i32_1 = arith.constant 0 : i32
    return %c0_i32, %c0_i32_0 : i32, i32
  }
  func.func @transform_3(%arg0: i32) -> (i32, i32) {
    %c0_i32 = arith.constant 0 : i32
    %c0_i32_0 = arith.constant 0 : i32
    %c0_i32_1 = arith.constant 0 : i32
    return %c0_i32, %c0_i32_0 : i32, i32
  }
  func.func @transform_4(%arg0: i32) -> (i32, i32, i32, i32) {
    %c0_i32 = arith.constant 0 : i32
    %c0_i32_0 = arith.constant 0 : i32
    %c0_i32_1 = arith.constant 0 : i32
    %c0_i32_2 = arith.constant 0 : i32
    %c0_i32_3 = arith.constant 0 : i32
    return %c0_i32, %c0_i32_0, %c0_i32_1, %c0_i32_2 : i32, i32, i32, i32
  }
  func.func @transform_5(%arg0: i32) -> (i32, i32) {
    %c0_i32 = arith.constant 0 : i32
    %c0_i32_0 = arith.constant 0 : i32
    %c0_i32_1 = arith.constant 0 : i32
    return %c0_i32, %c0_i32_0 : i32, i32
  }
  func.func @transform_6(%arg0: i32) -> (i32, i32) {
    %c0_i32 = arith.constant 0 : i32
    %c0_i32_0 = arith.constant 0 : i32
    %c0_i32_1 = arith.constant 0 : i32
    return %c0_i32, %c0_i32_0 : i32, i32
  }
  func.func @transform_7(%arg0: i32) -> (i32, i32, i32, i32) {
    %c0_i32 = arith.constant 0 : i32
    %c0_i32_0 = arith.constant 0 : i32
    %c0_i32_1 = arith.constant 0 : i32
    %c0_i32_2 = arith.constant 0 : i32
    %c0_i32_3 = arith.constant 0 : i32
    return %c0_i32, %c0_i32_0, %c0_i32_1, %c0_i32_2 : i32, i32, i32, i32
  }
  func.func @transform_8(%arg0: i32) -> (i32, i32) {
    %c0_i32 = arith.constant 0 : i32
    %c0_i32_0 = arith.constant 0 : i32
    %c0_i32_1 = arith.constant 0 : i32
    return %c0_i32, %c0_i32_0 : i32, i32
  }
  func.func @transform_9(%arg0: i32) -> (i32, i32) {
    %c0_i32 = arith.constant 0 : i32
    %c0_i32_0 = arith.constant 0 : i32
    %c0_i32_1 = arith.constant 0 : i32
    return %c0_i32, %c0_i32_0 : i32, i32
  }
  func.func @transform_10(%arg0: i32) -> (i32, i32) {
    %c0_i32 = arith.constant 0 : i32
    %c0_i32_0 = arith.constant 0 : i32
    %c0_i32_1 = arith.constant 0 : i32
    return %c0_i32, %c0_i32_0 : i32, i32
  }
  func.func @transform_11(%arg0: i32) -> (i32, i32) {
    %c0_i32 = arith.constant 0 : i32
    %c0_i32_0 = arith.constant 0 : i32
    %c0_i32_1 = arith.constant 0 : i32
    return %c0_i32, %c0_i32_0 : i32, i32
  }
  func.func @transform_12(%arg0: i32) -> (i32, i32) {
    %c0_i32 = arith.constant 0 : i32
    %c0_i32_0 = arith.constant 0 : i32
    %c0_i32_1 = arith.constant 0 : i32
    return %c0_i32, %c0_i32_0 : i32, i32
  }
  func.func @transform_13(%arg0: i32) -> (i32, i32) {
    %c0_i32 = arith.constant 0 : i32
    %c0_i32_0 = arith.constant 0 : i32
    %c0_i32_1 = arith.constant 0 : i32
    return %c0_i32, %c0_i32_0 : i32, i32
  }
  func.func @transform_14(%arg0: i32) -> (i32, i32) {
    %c0_i32 = arith.constant 0 : i32
    %c0_i32_0 = arith.constant 0 : i32
    return %arg0, %c0_i32 : i32, i32
  }
}

</mosaic_0001>

<bundles_post_ra>
// kernel: lmk_cnn_forward.1
= control target key start
LH: loop header
LB: loop body
LE: loop exit
PB: predicated region body
PF: predicated region fallthrough
CT: control target
= control target key end

     0   :  { %vm170_vm0 = vcmask 1040384   ;;  %vm7552_vm1 = vmmov 1   ;;  %vm121_vm3 = vcmask 72704   ;;  %s9754_s0 = inlined_call_operand.vmem [shape: f32[2,16,16,9], index: 0, kind: input, shape index: {}]   ;;  %s9755_s1 = inlined_call_operand.vmem [shape: f32[9,32], index: 1, kind: input, shape index: {}]   ;;  %s9756_s2 = inlined_call_operand.vmem [shape: f32[1,32], index: 2, kind: input, shape index: {}]   ;;  %s9757_s3 = inlined_call_operand.vmem [shape: f32[1,32], index: 3, kind: input, shape index: {}]   ;;  %s9758_s4 = inlined_call_operand.vmem [shape: f32[3,3,32,64], index: 4, kind: input, shape index: {}]   ;;  %s9759_s5 = inlined_call_operand.vmem [shape: f32[1,64], index: 5, kind: input, shape index: {}]   ;;  %s9760_s6 = inlined_call_operand.vmem [shape: f32[1,64], index: 6, kind: input, shape index: {}]   ;;  %s9761_s7 = inlined_call_operand.vmem [shape: f32[3,3,64,128], index: 7, kind: input, shape index: {}]   ;;  %s9762_s8 = inlined_call_operand.vmem [shape: f32[1,128], index: 8, kind: input, shape index: {}]   ;;  %s9763_s9 = inlined_call_operand.vmem [shape: f32[1,128], index: 9, kind: input, shape index: {}]   ;;  %s9764_s10 = inlined_call_operand.vmem [shape: f32[512,256], index: 10, kind: input, shape index: {}]   ;;  %s9765_s11 = inlined_call_operand.vmem [shape: f32[1,256], index: 11, kind: input, shape index: {}]   ;;  %s9766_s12 = inlined_call_operand.vmem [shape: f32[256,128], index: 12, kind: input, shape index: {}]   ;;  %s9767_s13 = inlined_call_operand.vmem [shape: f32[1,128], index: 13, kind: input, shape index: {}]   ;;  %s9768_s14 = inlined_call_operand.hbm [shape: f32[2,128], index: 14, kind: output, shape index: {}]  }
   0x1   :  { %v119_v0 = vld [vmem:[%s9755_s1] sm:$0xff]  ;;  %v120_v1 = vld [vmem:[%s9755_s1 + $0x8] sm:$0x1]  ;;  %vm7639_vm2 = vmpackc.low %vm170_vm0, %vm7552_vm1 }
   0x2   :  { %v111_v2 = vld [vmem:[%s9754_s0 + $0x100] sm:$0xff]  ;;  %v6957_v3 = vpack.c.bf16 %v120_v1, %v119_v0  ;;  %v415_v5 = vld [vmem:[%s9755_s1 + $0x8] sm:$0x1]  ;;  %v113_v10 = vld [vmem:[%s9754_s0 + $0x110] sm:$0xff] }
   0x3   :  { %6375 = vmatprep.mubr.msk.f32.mxu1 %vm121_vm3, %v111_v2  ;;  %v6963_v6 = vpack.c.bf16 %v415_v5, %v119_v0  ;;  %v103_v7 = vld [vmem:[%s9754_s0] sm:$0xff]  ;;  %v112_v8 = vld [vmem:[%s9754_s0 + $0x108] sm:$0xff]  ;;  %v105_v11 = vld [vmem:[%s9754_s0 + $0x10] sm:$0xff] }
   0x4   :  { %7357 = vmatprep.subr.msk.bf16.mxu1 %vm7639_vm2, %v6957_v3  ;;  %6959 = vmatprep.subr.msk.bf16.mxu0 %vm7639_vm2, %v6957_v3  ;;  %v104_v9 = vld [vmem:[%s9754_s0 + $0x8] sm:$0xff]  ;;  %v114_v14 = vld [vmem:[%s9754_s0 + $0x118] sm:$0xff]  ;;  %v115_v17 = vld [vmem:[%s9754_s0 + $0x120] sm:$0xff] }
   0x5   :  { %7358 = vmatpush3.bf16.msk.msra.mxu1 %vm7639_vm2, %v6957_v3  ;;  %6962 = vmatpush3.bf16.msk.msra.mxu0 %vm7639_vm2, %v6957_v3  ;;  %v1001_v12 = vld [vmem:[%s9755_s1 + $0x8] sm:$0x1]  ;;  %v106_v15 = vld [vmem:[%s9754_s0 + $0x18] sm:$0xff]  ;;  %v107_v18 = vld [vmem:[%s9754_s0 + $0x20] sm:$0xff] }
   0x6   :  { %6965 = vmatprep.subr.msk.bf16.mxu1 %vm7639_vm2, %v6963_v6  ;;  %6363 = vmatprep.mubr.msk.f32.mxu0 %vm121_vm3, %v103_v7  ;;  %v6975_v13 = vpack.c.bf16 %v1001_v12, %v119_v0  ;;  %v708_v16 = vld [vmem:[%s9755_s1 + $0x8] sm:$0x1]  ;;  %v117_v22 = vld [vmem:[%s9754_s0 + $0x130] sm:$0xff]  ;;  %v118_v24 = vld [vmem:[%s9754_s0 + $0x138] sm:$0xff] }
   0x7   :  { %v6969_v19 = vpack.c.bf16 %v708_v16, %v119_v0  ;;  %v116_v20 = vld [vmem:[%s9754_s0 + $0x128] sm:$0xff]  ;;  %v109_v23 = vld [vmem:[%s9754_s0 + $0x30] sm:$0xff]  ;;  %v110_v25 = vld [vmem:[%s9754_s0 + $0x38] sm:$0xff] }
   0x8   :  { %6376 = vmatmul.mubr.msk.f32.vlgmr.msra.gmra.mrb[0].mxu1 %vm121_vm3, %v112_v8  ;;  %6364 = vmatmul.mubr.msk.f32.vlgmr.msra.gmra.mrb[0].mxu0 %vm121_vm3, %v104_v9  ;;  %v108_v21 = vld [vmem:[%s9754_s0 + $0x28] sm:$0xff]  ;;  %v5578_v26 = vld [vmem:[%s9754_s0 + $0x40] sm:$0xff]  ;;  %v5580_v30 = vld [vmem:[%s9754_s0 + $0x50] sm:$0xff] }
   0x9   :  { %6968 = vmatpush3.bf16.msk.msra.mxu1 %vm7639_vm2, %v6963_v6  ;;  %6378 = vmatprep.mubr.msk.f32.mxu1 %vm121_vm3, %v113_v10  ;;  %v5613_v27 = vld [vmem:[%s9754_s0 + $0x80] sm:$0xff]  ;;  %v5579_v28 = vld [vmem:[%s9754_s0 + $0x48] sm:$0xff]  ;;  %v5615_v31 = vld [vmem:[%s9754_s0 + $0x90] sm:$0xff] }
   0xa   :  { %6366 = vmatprep.mubr.msk.f32.mxu0 %vm121_vm3, %v105_v11  ;;  %6977 = vmatprep.subr.msk.bf16.mxu1 %vm7639_vm2, %v6975_v13  ;;  %v5614_v29 = vld [vmem:[%s9754_s0 + $0x88] sm:$0xff] }
   0xb   :  { %6971 = vmatprep.subr.msk.bf16.mxu0 %vm7639_vm2, %v6969_v19 }
   0xc   :  { %6379 = vmatmul.mubr.msk.f32.gmra.mrb[2].mxu1 %vm121_vm3, %v114_v14  ;;  %6367 = vmatmul.mubr.msk.f32.gmra.mrb[2].mxu0 %vm121_vm3, %v106_v15 }
   0xd   :  { %6381 = vmatprep.mubr.msk.f32.mxu1 %vm121_vm3, %v115_v17  ;;  %6369 = vmatprep.mubr.msk.f32.mxu0 %vm121_vm3, %v107_v18 }
   0xe   :  { %6974 = vmatpush3.bf16.msk.msra.mxu0 %vm7639_vm2, %v6969_v19 }
  0x10   :  { %6382 = vmatmul.mubr.msk.f32.gmra.mrb[4].mxu1 %vm121_vm3, %v116_v20  ;;  %6370 = vmatmul.mubr.msk.f32.gmra.mrb[4].mxu0 %vm121_vm3, %v108_v21 }
  0x11   :  { %6384 = vmatprep.mubr.msk.f32.mxu1 %vm121_vm3, %v117_v22  ;;  %6372 = vmatprep.mubr.msk.f32.mxu0 %vm121_vm3, %v109_v23 }
  0x14   :  { %6385 = vmatmul.mubr.msk.f32.gmra.mrb[6].mxu1 %vm121_vm3, %v118_v24  ;;  %6373 = vmatmul.mubr.msk.f32.gmra.mrb[6].mxu0 %vm121_vm3, %v110_v25 }
  0x15   :  { %6391 = vmatprep.mubr.msk.f32.mxu1 %vm121_vm3, %v5578_v26  ;;  %6419 = vmatprep.mubr.msk.f32.mxu0 %vm121_vm3, %v5613_v27 }
  0x18   :  { %6392 = vmatmul.mubr.msk.f32.vlgmr.msra.gmra.mrb[8].mxu1 %vm121_vm3, %v5579_v28  ;;  %6420 = vmatmul.mubr.msk.f32.vlgmr.msra.gmra.mrb[8].mxu0 %vm121_vm3, %v5614_v29 }
  0x19   :  { %19 = vsyncpa [#allocation13], 0  ;;  %6980 = vmatpush3.bf16.msk.msra.mxu1 %vm7639_vm2, %v6975_v13  ;;  %6394 = vmatprep.mubr.msk.f32.mxu1 %vm121_vm3, %v5580_v30  ;;  %v5581_v32 = vld [vmem:[%s9754_s0 + $0x58] sm:$0xff]  ;;  %v5582_v34 = vld [vmem:[%s9754_s0 + $0x60] sm:$0xff]  ;;  %vm48_vm4 = vcmask 261120   ;;  %vm50_vm5 = vcmask 254976  }
  0x1a   :  { %v5616_v33 = vld [vmem:[%s9754_s0 + $0x98] sm:$0xff]  ;;  %6422 = vmatprep.mubr.msk.f32.mxu0 %vm121_vm3, %v5615_v31  ;;  %v5617_v35 = vld [vmem:[%s9754_s0 + $0xa0] sm:$0xff]  ;;  %v5583_v36 = vld [vmem:[%s9754_s0 + $0x68] sm:$0xff]  ;;  %v7553_v10 = vmov 0.0   ;;  %vm90_vm6 = vcmask 521216   ;;  %vm3709_vm7 = vcmask 519168  }
  0x1b   :  { %v5618_v37 = vld [vmem:[%s9754_s0 + $0xa8] sm:$0xff]  ;;  %v5584_v38 = vld [vmem:[%s9754_s0 + $0x70] sm:$0xff]  ;;  %v5585_v40 = vld [vmem:[%s9754_s0 + $0x78] sm:$0xff]  ;;  %49 = vst.msk [vmem:[#allocation2] sm:$0xff] %vm48_vm4, %v7553_v10  ;;  %vm3638_vm8 = vcmask 523264   ;;  %vm5045_vm9 = vcmask 1041409  }
  0x1c   :  { %6395 = vmatmul.mubr.msk.f32.gmra.mrb[10].mxu1 %vm121_vm3, %v5581_v32  ;;  %6423 = vmatmul.mubr.msk.f32.gmra.mrb[10].mxu0 %vm121_vm3, %v5616_v33  ;;  %v5619_v39 = vld [vmem:[%s9754_s0 + $0xb0] sm:$0xff]  ;;  %v5620_v41 = vld [vmem:[%s9754_s0 + $0xb8] sm:$0xff]  ;;  %v5586_v42 = vld [vmem:[%s9754_s0 + $0x140] sm:$0xff]  ;;  %51 = vst.msk [vmem:[#allocation2 + $0x8] sm:$0x3] %vm50_vm5, %v7553_v10  ;;  %s7554_s15 = smov [#allocation12]  }
  0x1d   :  { %6397 = vmatprep.mubr.msk.f32.mxu1 %vm121_vm3, %v5582_v34  ;;  %6425 = vmatprep.mubr.msk.f32.mxu0 %vm121_vm3, %v5617_v35  ;;  %v5621_v43 = vld [vmem:[%s9754_s0 + $0x180] sm:$0xff]  ;;  %v5587_v44 = vld [vmem:[%s9754_s0 + $0x148] sm:$0xff]  ;;  %v5588_v46 = vld [vmem:[%s9754_s0 + $0x150] sm:$0xff]  ;;  %52 = vst.msk [vmem:[#allocation2 + $0x10] sm:$0xff] %vm48_vm4, %v7553_v10 }
  0x1e   :  { %v5622_v45 = vld [vmem:[%s9754_s0 + $0x188] sm:$0xff]  ;;  %v5623_v47 = vld [vmem:[%s9754_s0 + $0x190] sm:$0xff]  ;;  %v5589_v48 = vld [vmem:[%s9754_s0 + $0x158] sm:$0xff]  ;;  %53 = vst.msk [vmem:[#allocation2 + $0x18] sm:$0x3] %vm50_vm5, %v7553_v10 }
  0x1f   :  { %v5624_v49 = vld [vmem:[%s9754_s0 + $0x198] sm:$0xff]  ;;  %v5590_v50 = vld [vmem:[%s9754_s0 + $0x160] sm:$0xff]  ;;  %v5591_v52 = vld [vmem:[%s9754_s0 + $0x168] sm:$0xff]  ;;  %54 = vst.msk [vmem:[#allocation2 + $0x20] sm:$0xff] %vm48_vm4, %v7553_v10 }
  0x20   :  { %6398 = vmatmul.mubr.msk.f32.gmra.mrb[12].mxu1 %vm121_vm3, %v5583_v36  ;;  %6426 = vmatmul.mubr.msk.f32.gmra.mrb[12].mxu0 %vm121_vm3, %v5618_v37  ;;  %v5625_v51 = vld [vmem:[%s9754_s0 + $0x1a0] sm:$0xff]  ;;  %v5626_v53 = vld [vmem:[%s9754_s0 + $0x1a8] sm:$0xff]  ;;  %v5592_v54 = vld [vmem:[%s9754_s0 + $0x170] sm:$0xff]  ;;  %55 = vst.msk [vmem:[#allocation2 + $0x28] sm:$0x3] %vm50_vm5, %v7553_v10 }
  0x21   :  { %6400 = vmatprep.mubr.msk.f32.mxu1 %vm121_vm3, %v5584_v38  ;;  %6428 = vmatprep.mubr.msk.f32.mxu0 %vm121_vm3, %v5619_v39  ;;  %v5627_v55 = vld [vmem:[%s9754_s0 + $0x1b0] sm:$0xff]  ;;  %v5593_v56 = vld [vmem:[%s9754_s0 + $0x178] sm:$0xff]  ;;  %v5648_v58 = vld [vmem:[%s9754_s0 + $0xc0] sm:$0xff]  ;;  %56 = vst.msk [vmem:[#allocation2 + $0x30] sm:$0xff] %vm48_vm4, %v7553_v10 }
  0x22   :  { %v5628_v57 = vld [vmem:[%s9754_s0 + $0x1b8] sm:$0xff]  ;;  %v5649_v59 = vld [vmem:[%s9754_s0 + $0xc8] sm:$0xff]  ;;  %v5650_v60 = vld [vmem:[%s9754_s0 + $0xd0] sm:$0xff]  ;;  %57 = vst.msk [vmem:[#allocation2 + $0x38] sm:$0x3] %vm50_vm5, %v7553_v10 }
  0x23   :  { %v5651_v61 = vld [vmem:[%s9754_s0 + $0xd8] sm:$0xff]  ;;  %v5652_v62 = vld [vmem:[%s9754_s0 + $0xe0] sm:$0xff]  ;;  %v5653_v63 = vld [vmem:[%s9754_s0 + $0xe8] sm:$0xff]  ;;  %58 = vst.msk [vmem:[#allocation2 + $0x40] sm:$0xff] %vm48_vm4, %v7553_v10 }
  0x24   :  { %6401 = vmatmul.mubr.msk.f32.gmra.mrb[14].mxu1 %vm121_vm3, %v5585_v40  ;;  %6429 = vmatmul.mubr.msk.f32.gmra.mrb[14].mxu0 %vm121_vm3, %v5620_v41  ;;  %v5654_v0 = vld [vmem:[%s9754_s0 + $0xf0] sm:$0xff]  ;;  %v5655_v1 = vld [vmem:[%s9754_s0 + $0xf8] sm:$0xff]  ;;  %v5656_v2 = vld [vmem:[%s9754_s0 + $0x1c0] sm:$0xff]  ;;  %59 = vst.msk [vmem:[#allocation2 + $0x48] sm:$0x3] %vm50_vm5, %v7553_v10 }
  0x25   :  { %6403 = vmatprep.mubr.msk.f32.mxu1 %vm121_vm3, %v5586_v42  ;;  %6431 = vmatprep.mubr.msk.f32.mxu0 %vm121_vm3, %v5621_v43  ;;  %v5657_v3 = vld [vmem:[%s9754_s0 + $0x1c8] sm:$0xff]  ;;  %v5658_v4 = vld [vmem:[%s9754_s0 + $0x1d0] sm:$0xff]  ;;  %v5659_v5 = vld [vmem:[%s9754_s0 + $0x1d8] sm:$0xff]  ;;  %60 = vst.msk [vmem:[#allocation2 + $0x50] sm:$0xff] %vm48_vm4, %v7553_v10 }
  0x26   :  { %v5660_v6 = vld [vmem:[%s9754_s0 + $0x1e0] sm:$0xff]  ;;  %v5661_v7 = vld [vmem:[%s9754_s0 + $0x1e8] sm:$0xff]  ;;  %v5662_v8 = vld [vmem:[%s9754_s0 + $0x1f0] sm:$0xff]  ;;  %61 = vst.msk [vmem:[#allocation2 + $0x58] sm:$0x3] %vm50_vm5, %v7553_v10 }
  0x27   :  { %v5663_v9 = vld [vmem:[%s9754_s0 + $0x1f8] sm:$0xff]  ;;  %62 = vst.msk [vmem:[#allocation2 + $0x60] sm:$0xff] %vm48_vm4, %v7553_v10  ;;  %64 = vst.msk [vmem:[#allocation2 + $0x70] sm:$0xff] %vm48_vm4, %v7553_v10  ;;  %v5683_v11 = vld [vmem:[%s9758_s4 + $0x20] sm:$0xff]  ;;  %s5551_s0 = sshll.u32 %s7554_s15, 4  ;;  %s5552_s0 = int_to_ptr.vmem [resolvable:$true] %s5551_s0 }
  0x28   :  { %6404 = vmatmul.mubr.msk.f32.gmra.mrb[16].mxu1 %vm121_vm3, %v5587_v44  ;;  %6432 = vmatmul.mubr.msk.f32.gmra.mrb[16].mxu0 %vm121_vm3, %v5622_v45  ;;  %63 = vst.msk [vmem:[#allocation2 + $0x68] sm:$0x3] %vm50_vm5, %v7553_v10  ;;  %65 = vst.msk [vmem:[#allocation2 + $0x78] sm:$0x3] %vm50_vm5, %v7553_v10  ;;  %v5684_v12 = vld [vmem:[%s9758_s4 + $0x28] sm:$0xff]  ;;  %v5685_v14 = vld [vmem:[%s9758_s4 + $0x30] sm:$0xff]  ;;  %p7533_p1 = scmp.lt.s32.totalorder %s5552_s0, %s5552_s0 }
  0x29   :  { %6406 = vmatprep.mubr.msk.f32.mxu1 %vm121_vm3, %v5588_v46  ;;  %6434 = vmatprep.mubr.msk.f32.mxu0 %vm121_vm3, %v5623_v47  ;;  %66 = vst.msk [vmem:[#allocation2 + $0x80] sm:$0xff] %vm48_vm4, %v7553_v10  ;;  %68 = vst.msk [vmem:[#allocation2 + $0x90] sm:$0xff] %vm48_vm4, %v7553_v10  ;;  %v6981_v13 = vpack.c.bf16 %v5684_v12, %v5683_v11  ;;  %v5686_v15 = vld [vmem:[%s9758_s4 + $0x38] sm:$0xff]  ;;  %v1559_v17 = vld [vmem:[#allocation2 + $0x1] sm:$0xff] }
  0x2a   :  { %67 = vst.msk [vmem:[#allocation2 + $0x88] sm:$0x3] %vm50_vm5, %v7553_v10  ;;  %69 = vst.msk [vmem:[#allocation2 + $0x98] sm:$0x3] %vm50_vm5, %v7553_v10  ;;  %v6985_v16 = vpack.c.bf16 %v5686_v15, %v5685_v14  ;;  %v1555_v18 = vld [vmem:[%s9758_s4] sm:$0xff]  ;;  %v1556_v19 = vld [vmem:[%s9758_s4 + $0x8] sm:$0xff] }
  0x2b   :  { %70 = vst.msk [vmem:[#allocation2 + $0xa0] sm:$0xff] %vm48_vm4, %v7553_v10  ;;  %72 = vst.msk [vmem:[#allocation2 + $0xb0] sm:$0xff] %vm48_vm4, %v7553_v10  ;;  %6982 = vmatprep.subr.bf16.mxu0 %v6981_v13  ;;  %v8024_v20 = vpack.c.bf16 %v1556_v19, %v1555_v18  ;;  %v8030_v21 = vld [vmem:[%s9756_s2] ss:$0 sm:$0xff] }
  0x2c   :  { %6407 = vmatmul.mubr.msk.f32.gmra.mrb[18].mxu1 %vm121_vm3, %v5589_v48  ;;  %6435 = vmatmul.mubr.msk.f32.gmra.mrb[18].mxu0 %vm121_vm3, %v5624_v49  ;;  %71 = vst.msk [vmem:[#allocation2 + $0xa8] sm:$0x3] %vm50_vm5, %v7553_v10  ;;  %73 = vst.msk [vmem:[#allocation2 + $0xb8] sm:$0x3] %vm50_vm5, %v7553_v10  ;;  %v8035_v23 = vld [vmem:[%s9757_s3] ss:$0 sm:$0xff] }
  0x2d   :  { %6409 = vmatprep.mubr.msk.f32.mxu1 %vm121_vm3, %v5590_v50  ;;  %6437 = vmatprep.mubr.msk.f32.mxu0 %vm121_vm3, %v5625_v51  ;;  %74 = vst.msk [vmem:[#allocation2 + $0xc0] sm:$0xff] %vm48_vm4, %v7553_v10  ;;  %76 = vst.msk [vmem:[#allocation2 + $0xd0] sm:$0xff] %vm48_vm4, %v7553_v10 }
  0x2e   :  { %75 = vst.msk [vmem:[#allocation2 + $0xc8] sm:$0x3] %vm50_vm5, %v7553_v10  ;;  %77 = vst.msk [vmem:[#allocation2 + $0xd8] sm:$0x3] %vm50_vm5, %v7553_v10  ;;  %6984 = vmatpush3.bf16.msra.mxu0 %v6981_v13 }
  0x2f   :  { %78 = vst.msk [vmem:[#allocation2 + $0xe0] sm:$0xff] %vm48_vm4, %v7553_v10  ;;  %80 = vst.msk [vmem:[#allocation2 + $0xf0] sm:$0xff] %vm48_vm4, %v7553_v10  ;;  %6986 = vmatprep.subr.bf16.mxu0 %v6985_v16 }
  0x30   :  { %6410 = vmatmul.mubr.msk.f32.gmra.mrb[20].mxu1 %vm121_vm3, %v5591_v52  ;;  %6438 = vmatmul.mubr.msk.f32.gmra.mrb[20].mxu0 %vm121_vm3, %v5626_v53  ;;  %79 = vst.msk [vmem:[#allocation2 + $0xe8] sm:$0x3] %vm50_vm5, %v7553_v10  ;;  %81 = vst.msk [vmem:[#allocation2 + $0xf8] sm:$0x3] %vm50_vm5, %v7553_v10 }
  0x31   :  { %6412 = vmatprep.mubr.msk.f32.mxu1 %vm121_vm3, %v5592_v54  ;;  %6440 = vmatprep.mubr.msk.f32.mxu0 %vm121_vm3, %v5627_v55  ;;  %82 = vst.msk [vmem:[#allocation2 + $0x100] sm:$0xff] %vm48_vm4, %v7553_v10  ;;  %84 = vst.msk [vmem:[#allocation2 + $0x110] sm:$0xff] %vm48_vm4, %v7553_v10 }
  0x32   :  { %83 = vst.msk [vmem:[#allocation2 + $0x108] sm:$0x3] %vm50_vm5, %v7553_v10  ;;  %85 = vst.msk [vmem:[#allocation2 + $0x118] sm:$0x3] %vm50_vm5, %v7553_v10  ;;  %6988 = vmatpush3.bf16.msra.mxu0 %v6985_v16 }
  0x33   :  { %86 = vst.msk [vmem:[#allocation2 + $0x120] sm:$0xff] %vm48_vm4, %v7553_v10  ;;  %88 = vst.msk [vmem:[#allocation2 + $0x130] sm:$0xff] %vm48_vm4, %v7553_v10  ;;  %6990 = vmatprep.subr.bf16.mxu0 %v8024_v20 }
  0x34   :  { %6413 = vmatmul.mubr.msk.f32.gmra.mrb[22].mxu1 %vm121_vm3, %v5593_v56  ;;  %6441 = vmatmul.mubr.msk.f32.gmra.mrb[22].mxu0 %vm121_vm3, %v5628_v57  ;;  %87 = vst.msk [vmem:[#allocation2 + $0x128] sm:$0x3] %vm50_vm5, %v7553_v10  ;;  %89 = vst.msk [vmem:[#allocation2 + $0x138] sm:$0x3] %vm50_vm5, %v7553_v10 }
  0x35   :  { %6447 = vmatprep.mubr.msk.f32.mxu1 %vm121_vm3, %v5648_v58  ;;  %6479 = vmatprep.mubr.msk.f32.mxu0 %vm48_vm4, %v1559_v17  ;;  %92 = vst.msk [vmem:[#allocation3 + $0x8] sm:$0x3f] %vm90_vm6, %v7553_v10  ;;  %91 = vst.msk [vmem:[#allocation3] sm:$0x3f] %vm90_vm6, %v7553_v10 }
  0x36   :  { %93 = vst.msk [vmem:[#allocation3 + $0x10] sm:$0x3f] %vm90_vm6, %v7553_v10  ;;  %94 = vst.msk [vmem:[#allocation3 + $0x18] sm:$0x3f] %vm90_vm6, %v7553_v10 }
  0x37   :  { %95 = vst.msk [vmem:[#allocation3 + $0x20] sm:$0x3f] %vm90_vm6, %v7553_v10  ;;  %96 = vst.msk [vmem:[#allocation3 + $0x28] sm:$0x3f] %vm90_vm6, %v7553_v10 }
  0x38   :  { %6448 = vmatmul.mubr.msk.f32.vlgmr.msra.gmra.mrb[24].mxu1 %vm121_vm3, %v5649_v59  ;;  %97 = vst.msk [vmem:[#allocation3 + $0x30] sm:$0x3f] %vm90_vm6, %v7553_v10  ;;  %98 = vst.msk [vmem:[#allocation3 + $0x38] sm:$0x3f] %vm90_vm6, %v7553_v10 }
  0x39   :  { %6450 = vmatprep.mubr.msk.f32.mxu1 %vm121_vm3, %v5650_v60  ;;  %99 = vst.msk [vmem:[#allocation3 + $0x40] sm:$0x3f] %vm90_vm6, %v7553_v10  ;;  %100 = vst.msk [vmem:[#allocation3 + $0x48] sm:$0x3f] %vm90_vm6, %v7553_v10 }
  0x3a   :  { %101 = vst.msk [vmem:[#allocation3 + $0x50] sm:$0x3f] %vm90_vm6, %v7553_v10  ;;  %102 = vst.msk [vmem:[#allocation3 + $0x58] sm:$0x3f] %vm90_vm6, %v7553_v10 }
  0x3c   :  { %6451 = vmatmul.mubr.msk.f32.gmra.mrb[26].mxu1 %vm121_vm3, %v5651_v61 }
  0x3d   :  { %6453 = vmatprep.mubr.msk.f32.mxu1 %vm121_vm3, %v5652_v62 }
  0x40   :  { %6454 = vmatmul.mubr.msk.f32.gmra.mrb[28].mxu1 %vm121_vm3, %v5653_v63 }
  0x41   :  { %6456 = vmatprep.mubr.msk.f32.mxu1 %vm121_vm3, %v5654_v0 }
  0x44   :  { %6457 = vmatmul.mubr.msk.f32.gmra.mrb[30].mxu1 %vm121_vm3, %v5655_v1 }
  0x45   :  { %6459 = vmatprep.mubr.msk.f32.mxu1 %vm121_vm3, %v5656_v2 }
  0x48   :  { %6460 = vmatmul.mubr.msk.f32.gmra.mrb[32].mxu1 %vm121_vm3, %v5657_v3 }
  0x49   :  { %6462 = vmatprep.mubr.msk.f32.mxu1 %vm121_vm3, %v5658_v4 }
  0x4c   :  { %6463 = vmatmul.mubr.msk.f32.gmra.mrb[34].mxu1 %vm121_vm3, %v5659_v5 }
  0x4d   :  { %6465 = vmatprep.mubr.msk.f32.mxu1 %vm121_vm3, %v5660_v6 }
  0x50   :  { %6466 = vmatmul.mubr.msk.f32.gmra.mrb[36].mxu1 %vm121_vm3, %v5661_v7 }
  0x51   :  { %6468 = vmatprep.mubr.msk.f32.mxu1 %vm121_vm3, %v5662_v8 }
  0x54   :  { %6469 = vmatmul.mubr.msk.f32.gmra.mrb[38].mxu1 %vm121_vm3, %v5663_v9 }
  0xdb   :  { %v6377_v22 = vpop.f32.mrb[0].mxu1  ;;  %v6365_v24 = vpop.f32.mrb[0].mxu0 }
  0xdc   :  { %v335_v25 = vmul.f32 %v6377_v22, %v8030_v21  ;;  %v280_v26 = vpop.f32.mrb[1].mxu1  ;;  %v327_v27 = vmul.f32 %v6365_v24, %v8030_v21  ;;  %v240_v28 = vpop.f32.mrb[1].mxu0 }
  0xdd   :  { %v334_v29 = vmul.f32 %v8030_v21, %v280_v26  ;;  %v326_v30 = vmul.f32 %v8030_v21, %v240_v28 }
  0xde   :  { %v358_v31 = vadd.f32 %v8035_v23, %v335_v25  ;;  %v350_v32 = vadd.f32 %v8035_v23, %v327_v27 }
  0xdf   :  { %v357_v33 = vadd.f32 %v8035_v23, %v334_v29  ;;  %v6380_v34 = vpop.f32.mrb[2].mxu1  ;;  %v349_v35 = vadd.f32 %v8035_v23, %v326_v30  ;;  %v6368_v36 = vpop.f32.mrb[2].mxu0 }
  0xe0   :  { %v374_v37 = vmax.f32 %v358_v31, 0.0  ;;  %v337_v38 = vmul.f32 %v6380_v34, %v8030_v21  ;;  %v290_v39 = vpop.f32.mrb[3].mxu1  ;;  %v366_v40 = vmax.f32 %v350_v32, 0.0  ;;  %v329_v41 = vmul.f32 %v6368_v36, %v8030_v21  ;;  %v250_v42 = vpop.f32.mrb[3].mxu0 }
  0xe1   :  { %v373_v43 = vmax.f32 %v357_v33, 0.0  ;;  %v336_v44 = vmul.f32 %v8030_v21, %v290_v39  ;;  %v365_v45 = vmax.f32 %v349_v35, 0.0  ;;  %v328_v46 = vmul.f32 %v8030_v21, %v250_v42 }
  0xe2   :  { %390 = vst.msk [vmem:[#allocation4 + $0x108] sm:$0xff] %vm48_vm4, %v374_v37  ;;  %v360_v47 = vadd.f32 %v8035_v23, %v337_v38  ;;  %382 = vst.msk [vmem:[#allocation4 + $0x8] sm:$0xff] %vm48_vm4, %v366_v40  ;;  %v352_v48 = vadd.f32 %v8035_v23, %v329_v41 }
  0xe3   :  { %389 = vst.msk [vmem:[#allocation4 + $0x100] sm:$0xff] %vm48_vm4, %v373_v43  ;;  %v359_v49 = vadd.f32 %v8035_v23, %v336_v44  ;;  %v6383_v50 = vpop.f32.mrb[4].mxu1  ;;  %381 = vst.msk [vmem:[#allocation4] sm:$0xff] %vm48_vm4, %v365_v45  ;;  %v351_v51 = vadd.f32 %v8035_v23, %v328_v46  ;;  %v6371_v52 = vpop.f32.mrb[4].mxu0 }
  0xe4   :  { %v376_v53 = vmax.f32 %v360_v47, 0.0  ;;  %v339_v54 = vmul.f32 %v6383_v50, %v8030_v21  ;;  %v300_v55 = vpop.f32.mrb[5].mxu1  ;;  %v368_v56 = vmax.f32 %v352_v48, 0.0  ;;  %v331_v57 = vmul.f32 %v6371_v52, %v8030_v21  ;;  %v260_v58 = vpop.f32.mrb[5].mxu0 }
  0xe5   :  { %v375_v59 = vmax.f32 %v359_v49, 0.0  ;;  %v338_v60 = vmul.f32 %v8030_v21, %v300_v55  ;;  %v367_v61 = vmax.f32 %v351_v51, 0.0  ;;  %v330_v62 = vmul.f32 %v8030_v21, %v260_v58 }
  0xe6   :  { %392 = vst.msk [vmem:[#allocation4 + $0x118] sm:$0xff] %vm48_vm4, %v376_v53  ;;  %v362_v63 = vadd.f32 %v8035_v23, %v339_v54  ;;  %384 = vst.msk [vmem:[#allocation4 + $0x18] sm:$0xff] %vm48_vm4, %v368_v56  ;;  %v354_v0 = vadd.f32 %v8035_v23, %v331_v57 }
  0xe7   :  { %391 = vst.msk [vmem:[#allocation4 + $0x110] sm:$0xff] %vm48_vm4, %v375_v59  ;;  %v361_v1 = vadd.f32 %v8035_v23, %v338_v60  ;;  %v6386_v2 = vpop.f32.mrb[6].mxu1  ;;  %383 = vst.msk [vmem:[#allocation4 + $0x10] sm:$0xff] %vm48_vm4, %v367_v61  ;;  %v353_v3 = vadd.f32 %v8035_v23, %v330_v62  ;;  %v6374_v4 = vpop.f32.mrb[6].mxu0 }
  0xe8   :  { %v378_v5 = vmax.f32 %v362_v63, 0.0  ;;  %v341_v6 = vmul.f32 %v6386_v2, %v8030_v21  ;;  %v310_v7 = vpop.f32.mrb[7].mxu1  ;;  %v370_v8 = vmax.f32 %v354_v0, 0.0  ;;  %v333_v9 = vmul.f32 %v6374_v4, %v8030_v21  ;;  %v270_v11 = vpop.f32.mrb[7].mxu0 }
  0xe9   :  { %v377_v12 = vmax.f32 %v361_v1, 0.0  ;;  %v340_v13 = vmul.f32 %v8030_v21, %v310_v7  ;;  %v369_v14 = vmax.f32 %v353_v3, 0.0  ;;  %v332_v15 = vmul.f32 %v8030_v21, %v270_v11 }
  0xea   :  { %v1292_v16 = vld [vmem:[#allocation4 + $0x100] ss:$2 sm:$0xff]  ;;  %v1324_v17 = vld [vmem:[#allocation4 + $0x101] ss:$2 sm:$0xff]  ;;  %394 = vst.msk [vmem:[#allocation4 + $0x128] sm:$0xff] %vm48_vm4, %v378_v5  ;;  %v364_v18 = vadd.f32 %v8035_v23, %v341_v6  ;;  %386 = vst.msk [vmem:[#allocation4 + $0x28] sm:$0xff] %vm48_vm4, %v370_v8  ;;  %v356_v22 = vadd.f32 %v8035_v23, %v333_v9 }
  0xeb   :  { %v1276_v19 = vld [vmem:[#allocation4] ss:$2 sm:$0xff]  ;;  %v1347_v24 = vmax.f32 %v1292_v16, %v1324_v17  ;;  %393 = vst.msk [vmem:[#allocation4 + $0x120] sm:$0xff] %vm48_vm4, %v377_v12  ;;  %v363_v25 = vadd.f32 %v8035_v23, %v340_v13  ;;  %v1308_v26 = vld [vmem:[#allocation4 + $0x1] ss:$2 sm:$0xff]  ;;  %v6393_v27 = vpop.f32.mrb[8].mxu1  ;;  %v355_v28 = vadd.f32 %v8035_v23, %v332_v15 }
  0xec   :  { %385 = vst.msk [vmem:[#allocation4 + $0x20] sm:$0xff] %vm48_vm4, %v369_v14  ;;  %v6421_v29 = vpop.f32.mrb[8].mxu0  ;;  %v380_v30 = vmax.f32 %v364_v18, 0.0  ;;  %v1339_v31 = vmax.f32 %v1276_v19, %v1308_v26  ;;  %v620_v32 = vmul.f32 %v6393_v27, %v8030_v21  ;;  %v533_v33 = vpop.f32.mrb[9].mxu1  ;;  %v372_v34 = vmax.f32 %v356_v22, 0.0 }
  0xed   :  { %v826_v35 = vpop.f32.mrb[9].mxu0  ;;  %1363 = vst.msk [vmem:[#allocation5 + $0x80] sm:$0xff] %vm48_vm4, %v1347_v24  ;;  %v379_v36 = vmax.f32 %v363_v25, 0.0  ;;  %v619_v37 = vmul.f32 %v8030_v21, %v533_v33  ;;  %v371_v38 = vmax.f32 %v355_v28, 0.0  ;;  %v913_v39 = vmul.f32 %v6421_v29, %v8030_v21 }
  0xee   :  { %v1294_v40 = vld [vmem:[#allocation4 + $0x110] ss:$2 sm:$0xff]  ;;  %v1326_v41 = vld [vmem:[#allocation4 + $0x111] ss:$2 sm:$0xff]  ;;  %396 = vst.msk [vmem:[#allocation4 + $0x138] sm:$0xff] %vm48_vm4, %v380_v30  ;;  %1355 = vst.msk [vmem:[#allocation5] sm:$0xff] %vm48_vm4, %v1339_v31  ;;  %v643_v43 = vadd.f32 %v8035_v23, %v620_v32  ;;  %v912_v44 = vmul.f32 %v8030_v21, %v826_v35 }
  0xef   :  { %v1278_v42 = vld [vmem:[#allocation4 + $0x10] ss:$2 sm:$0xff]  ;;  %388 = vst.msk [vmem:[#allocation4 + $0x38] sm:$0xff] %vm48_vm4, %v372_v34  ;;  %v1348_v45 = vmax.f32 %v1294_v40, %v1326_v41  ;;  %395 = vst.msk [vmem:[#allocation4 + $0x130] sm:$0xff] %vm48_vm4, %v379_v36  ;;  %v1310_v46 = vld [vmem:[#allocation4 + $0x11] ss:$2 sm:$0xff]  ;;  %v642_v47 = vadd.f32 %v8035_v23, %v619_v37  ;;  %v936_v49 = vadd.f32 %v8035_v23, %v913_v39 }
  0xf0   :  { %387 = vst.msk [vmem:[#allocation4 + $0x30] sm:$0xff] %vm48_vm4, %v371_v38  ;;  %v6396_v48 = vpop.f32.mrb[10].mxu1  ;;  %v6424_v50 = vpop.f32.mrb[10].mxu0  ;;  %v1340_v51 = vmax.f32 %v1278_v42, %v1310_v46  ;;  %v659_v52 = vmax.f32 %v643_v43, 0.0  ;;  %v935_v55 = vadd.f32 %v8035_v23, %v912_v44 }
  0xf1   :  { %v622_v53 = vmul.f32 %v6396_v48, %v8030_v21  ;;  %v543_v54 = vpop.f32.mrb[11].mxu1  ;;  %v836_v56 = vpop.f32.mrb[11].mxu0  ;;  %1364 = vst.msk [vmem:[#allocation5 + $0x88] sm:$0xff] %vm48_vm4, %v1348_v45  ;;  %v658_v57 = vmax.f32 %v642_v47, 0.0  ;;  %v952_v59 = vmax.f32 %v936_v49, 0.0  ;;  %v915_v60 = vmul.f32 %v6424_v50, %v8030_v21 }
  0xf2   :  { %v621_v58 = vmul.f32 %v8030_v21, %v543_v54  ;;  %v1296_v61 = vld [vmem:[#allocation4 + $0x120] ss:$2 sm:$0xff]  ;;  %v1328_v62 = vld [vmem:[#allocation4 + $0x121] ss:$2 sm:$0xff]  ;;  %1356 = vst.msk [vmem:[#allocation5 + $0x8] sm:$0xff] %vm48_vm4, %v1340_v51  ;;  %675 = vst.msk [vmem:[#allocation4 + $0x48] sm:$0xff] %vm48_vm4, %v659_v52  ;;  %v914_v1 = vmul.f32 %v8030_v21, %v836_v56 }
  0xf3   :  { %v1280_v63 = vld [vmem:[#allocation4 + $0x20] ss:$2 sm:$0xff]  ;;  %v645_v0 = vadd.f32 %v8035_v23, %v622_v53  ;;  %v1349_v2 = vmax.f32 %v1296_v61, %v1328_v62  ;;  %674 = vst.msk [vmem:[#allocation4 + $0x40] sm:$0xff] %vm48_vm4, %v658_v57  ;;  %v1312_v3 = vld [vmem:[#allocation4 + $0x21] ss:$2 sm:$0xff]  ;;  %v6399_v5 = vpop.f32.mrb[12].mxu1  ;;  %v938_v7 = vadd.f32 %v8035_v23, %v915_v60 }
  0xf4   :  { %v644_v4 = vadd.f32 %v8035_v23, %v621_v58  ;;  %968 = vst.msk [vmem:[#allocation4 + $0x88] sm:$0xff] %vm48_vm4, %v952_v59  ;;  %v951_v6 = vmax.f32 %v935_v55, 0.0  ;;  %v6427_v8 = vpop.f32.mrb[12].mxu0  ;;  %v1341_v9 = vmax.f32 %v1280_v63, %v1312_v3  ;;  %v624_v12 = vmul.f32 %v6399_v5, %v8030_v21  ;;  %v553_v13 = vpop.f32.mrb[13].mxu1  ;;  %v1468_v54 = vld [vmem:[#allocation5 + $0x80] sm:$0xff]  ;;  %v1557_v61 = vld [vmem:[%s9758_s4 + $0x10] sm:$0xff] }
  0xf5   :  { %v661_v11 = vmax.f32 %v645_v0, 0.0  ;;  %v937_v14 = vadd.f32 %v8035_v23, %v914_v1  ;;  %v846_v15 = vpop.f32.mrb[13].mxu0  ;;  %1365 = vst.msk [vmem:[#allocation5 + $0x90] sm:$0xff] %vm48_vm4, %v1349_v2  ;;  %v623_v17 = vmul.f32 %v8030_v21, %v553_v13  ;;  %v954_v18 = vmax.f32 %v938_v7, 0.0  ;;  %v1467_v35 = vld [vmem:[#allocation5] sm:$0xff]  ;;  %v1558_v62 = vld [vmem:[%s9758_s4 + $0x18] sm:$0xff] }
  0xf6   :  { %v660_v16 = vmax.f32 %v644_v4, 0.0  ;;  %967 = vst.msk [vmem:[#allocation4 + $0x80] sm:$0xff] %vm48_vm4, %v951_v6  ;;  %v917_v19 = vmul.f32 %v6427_v8, %v8030_v21  ;;  %v1298_v22 = vld [vmem:[#allocation4 + $0x130] ss:$2 sm:$0xff]  ;;  %v1330_v24 = vld [vmem:[#allocation4 + $0x131] ss:$2 sm:$0xff]  ;;  %v647_v26 = vadd.f32 %v8035_v23, %v624_v12  ;;  %v916_v27 = vmul.f32 %v8030_v21, %v846_v15 }
  0xf7   :  { %1357 = vst.msk [vmem:[#allocation5 + $0x10] sm:$0xff] %vm48_vm4, %v1341_v9  ;;  %v1282_v25 = vld [vmem:[#allocation4 + $0x30] ss:$2 sm:$0xff]  ;;  %677 = vst.msk [vmem:[#allocation4 + $0x58] sm:$0xff] %vm48_vm4, %v661_v11  ;;  %v1350_v28 = vmax.f32 %v1298_v22, %v1330_v24  ;;  %v1314_v29 = vld [vmem:[#allocation4 + $0x31] ss:$2 sm:$0xff]  ;;  %v646_v30 = vadd.f32 %v8035_v23, %v623_v17 }
  0xf8   :  { %676 = vst.msk [vmem:[#allocation4 + $0x50] sm:$0xff] %vm48_vm4, %v660_v16  ;;  %v6402_v31 = vpop.f32.mrb[14].mxu1  ;;  %970 = vst.msk [vmem:[#allocation4 + $0x98] sm:$0xff] %vm48_vm4, %v954_v18  ;;  %v953_v32 = vmax.f32 %v937_v14, 0.0  ;;  %v940_v33 = vadd.f32 %v8035_v23, %v917_v19  ;;  %v6430_v34 = vpop.f32.mrb[14].mxu0  ;;  %v1342_v36 = vmax.f32 %v1282_v25, %v1314_v29  ;;  %v663_v37 = vmax.f32 %v647_v26, 0.0 }
  0xf9   :  { %v626_v38 = vmul.f32 %v6402_v31, %v8030_v21  ;;  %v563_v39 = vpop.f32.mrb[15].mxu1  ;;  %v939_v40 = vadd.f32 %v8035_v23, %v916_v27  ;;  %v856_v41 = vpop.f32.mrb[15].mxu0  ;;  %v1470_v42 = vld [vmem:[#allocation5 + $0x88] sm:$0xff]  ;;  %1366 = vst.msk [vmem:[#allocation5 + $0x98] sm:$0xff] %vm48_vm4, %v1350_v28  ;;  %v662_v43 = vmax.f32 %v646_v30, 0.0  ;;  %v919_v46 = vmul.f32 %v6430_v34, %v8030_v21 }
  0xfa   :  { %v625_v44 = vmul.f32 %v8030_v21, %v563_v39  ;;  %969 = vst.msk [vmem:[#allocation4 + $0x90] sm:$0xff] %vm48_vm4, %v953_v32  ;;  %v956_v45 = vmax.f32 %v940_v33, 0.0  ;;  %v1469_v47 = vld [vmem:[#allocation5 + $0x8] sm:$0xff]  ;;  %1358 = vst.msk [vmem:[#allocation5 + $0x18] sm:$0xff] %vm48_vm4, %v1342_v36  ;;  %v918_v52 = vmul.f32 %v8030_v21, %v856_v41  ;;  %v1472_v60 = vmax.f32 %v1468_v54, %v1470_v42  ;;  %v5719_v41 = vld [vmem:[%s9758_s4 + $0x40] sm:$0xff] }
  0xfb   :  { %v1284_v48 = vld [vmem:[#allocation4 + $0x40] ss:$2 sm:$0xff]  ;;  %v1316_v49 = vld [vmem:[#allocation4 + $0x41] ss:$2 sm:$0xff]  ;;  %679 = vst.msk [vmem:[#allocation4 + $0x68] sm:$0xff] %vm48_vm4, %v663_v37  ;;  %v649_v50 = vadd.f32 %v8035_v23, %v626_v38  ;;  %v955_v51 = vmax.f32 %v939_v40, 0.0  ;;  %v1471_v53 = vmax.f32 %v1467_v35, %v1469_v47  ;;  %v942_v58 = vadd.f32 %v8035_v23, %v919_v46 }
  0xfc   :  { %v1343_v55 = vmax.f32 %v1284_v48, %v1316_v49  ;;  %678 = vst.msk [vmem:[#allocation4 + $0x60] sm:$0xff] %vm48_vm4, %v662_v43  ;;  %v648_v56 = vadd.f32 %v8035_v23, %v625_v44  ;;  %v6405_v57 = vpop.f32.mrb[16].mxu1  ;;  %972 = vst.msk [vmem:[#allocation4 + $0xa8] sm:$0xff] %vm48_vm4, %v956_v45  ;;  %v6433_v59 = vpop.f32.mrb[16].mxu0  ;;  %v941_v4 = vadd.f32 %v8035_v23, %v918_v52  ;;  %v5720_v42 = vld [vmem:[%s9758_s4 + $0x48] sm:$0xff]  ;;  %v1477_v49 = vld [vmem:[#allocation5 + $0x90] sm:$0xff] }
  0xfd   :  { %v665_v63 = vmax.f32 %v649_v50, 0.0  ;;  %v628_v0 = vmul.f32 %v6405_v57, %v8030_v21  ;;  %v573_v1 = vpop.f32.mrb[17].mxu1  ;;  %v1372_v2 = vld [vmem:[#allocation4 + $0x80] ss:$2 sm:$0xff]  ;;  %v1404_v3 = vld [vmem:[#allocation4 + $0x81] ss:$2 sm:$0xff]  ;;  %v921_v5 = vmul.f32 %v6433_v59, %v8030_v21  ;;  %v8157_v26 = vpack.c.bf16 %v1558_v62, %v1557_v61 }
  0xfe   :  { %971 = vst.msk [vmem:[#allocation4 + $0xa0] sm:$0xff] %vm48_vm4, %v955_v51  ;;  %1474 = vst.msk [vmem:[#allocation2 + $0x11] sm:$0xff] %vm48_vm4, %v1471_v53  ;;  %v664_v6 = vmax.f32 %v648_v56, 0.0  ;;  %v627_v7 = vmul.f32 %v8030_v21, %v573_v1  ;;  %v1435_v8 = vmax.f32 %v1372_v2, %v1404_v3  ;;  %v958_v9 = vmax.f32 %v942_v58, 0.0  ;;  %v866_v11 = vpop.f32.mrb[17].mxu0  ;;  %v1476_v25 = vld [vmem:[#allocation5 + $0x10] sm:$0xff] }
  0xff   :  { %1359 = vst.msk [vmem:[#allocation5 + $0x20] sm:$0xff] %vm48_vm4, %v1343_v55  ;;  %1475 = vst.msk [vmem:[#allocation2 + $0xb1] sm:$0xff] %vm48_vm4, %v1472_v60  ;;  %v1286_v12 = vld [vmem:[#allocation4 + $0x50] ss:$2 sm:$0xff]  ;;  %v1318_v13 = vld [vmem:[#allocation4 + $0x51] ss:$2 sm:$0xff]  ;;  %v651_v14 = vadd.f32 %v8035_v23, %v628_v0  ;;  %v944_v16 = vadd.f32 %v8035_v23, %v921_v5  ;;  %v920_v17 = vmul.f32 %v8030_v21, %v866_v11 }
 0x100   :  { %681 = vst.msk [vmem:[#allocation4 + $0x78] sm:$0xff] %vm48_vm4, %v665_v63  ;;  %v957_v15 = vmax.f32 %v941_v4, 0.0  ;;  %v1344_v18 = vmax.f32 %v1286_v12, %v1318_v13  ;;  %680 = vst.msk [vmem:[#allocation4 + $0x70] sm:$0xff] %vm48_vm4, %v664_v6  ;;  %v650_v19 = vadd.f32 %v8035_v23, %v627_v7  ;;  %v6408_v22 = vpop.f32.mrb[18].mxu1  ;;  %v6436_v24 = vpop.f32.mrb[18].mxu0  ;;  %v1479_v40 = vld [vmem:[#allocation5 + $0x98] sm:$0xff] }
 0x101   :  { %1451 = vst.msk [vmem:[#allocation5 + $0x40] sm:$0xff] %vm48_vm4, %v1435_v8  ;;  %974 = vst.msk [vmem:[#allocation4 + $0xb8] sm:$0xff] %vm48_vm4, %v958_v9  ;;  %v667_v27 = vmax.f32 %v651_v14, 0.0  ;;  %v630_v28 = vmul.f32 %v6408_v22, %v8030_v21  ;;  %v583_v29 = vpop.f32.mrb[19].mxu1  ;;  %v1374_v30 = vld [vmem:[#allocation4 + $0x90] ss:$2 sm:$0xff]  ;;  %v943_v32 = vadd.f32 %v8035_v23, %v920_v17  ;;  %v923_v33 = vmul.f32 %v6436_v24, %v8030_v21 }
 0x102   :  { %v1406_v31 = vld [vmem:[#allocation4 + $0x91] ss:$2 sm:$0xff]  ;;  %973 = vst.msk [vmem:[#allocation4 + $0xb0] sm:$0xff] %vm48_vm4, %v957_v15  ;;  %1360 = vst.msk [vmem:[#allocation5 + $0x28] sm:$0xff] %vm48_vm4, %v1344_v18  ;;  %v666_v34 = vmax.f32 %v650_v19, 0.0  ;;  %v629_v35 = vmul.f32 %v8030_v21, %v583_v29  ;;  %v960_v37 = vmax.f32 %v944_v16, 0.0  ;;  %v1481_v57 = vmax.f32 %v1477_v49, %v1479_v40 }
 0x103   :  { %v1436_v36 = vmax.f32 %v1374_v30, %v1406_v31  ;;  %v1478_v38 = vld [vmem:[#allocation5 + $0x18] sm:$0xff]  ;;  %v876_v39 = vpop.f32.mrb[19].mxu0  ;;  %v1288_v43 = vld [vmem:[#allocation4 + $0x60] ss:$2 sm:$0xff]  ;;  %v1320_v44 = vld [vmem:[#allocation4 + $0x61] ss:$2 sm:$0xff]  ;;  %v653_v45 = vadd.f32 %v8035_v23, %v630_v28  ;;  %v946_v47 = vadd.f32 %v8035_v23, %v923_v33  ;;  %v8198_v9 = vpack.c.bf16 %v5720_v42, %v5719_v41 }
 0x104   :  { %683 = vst.msk [vmem:[#allocation4 + $0x148] sm:$0xff] %vm48_vm4, %v667_v27  ;;  %v959_v46 = vmax.f32 %v943_v32, 0.0  ;;  %v1480_v48 = vmax.f32 %v1476_v25, %v1478_v38  ;;  %v1345_v50 = vmax.f32 %v1288_v43, %v1320_v44  ;;  %682 = vst.msk [vmem:[#allocation4 + $0x140] sm:$0xff] %vm48_vm4, %v666_v34  ;;  %v652_v51 = vadd.f32 %v8035_v23, %v629_v35  ;;  %v6411_v52 = vpop.f32.mrb[20].mxu1  ;;  %v6439_v63 = vpop.f32.mrb[20].mxu0 }
 0x105   :  { %1452 = vst.msk [vmem:[#allocation5 + $0x48] sm:$0xff] %vm48_vm4, %v1436_v36  ;;  %v1376_v53 = vld [vmem:[#allocation4 + $0xa0] ss:$2 sm:$0xff]  ;;  %v1408_v54 = vld [vmem:[#allocation4 + $0xa1] ss:$2 sm:$0xff]  ;;  %v8177_v55 = vld [vmem:[#allocation2 + $0x11] sm:$0xff]  ;;  %v922_v56 = vmul.f32 %v8030_v21, %v876_v39  ;;  %v632_v59 = vmul.f32 %v6411_v52, %v8030_v21  ;;  %v925_v3 = vmul.f32 %v6439_v63, %v8030_v21 }
 0x106   :  { %976 = vst.msk [vmem:[#allocation4 + $0x188] sm:$0xff] %vm48_vm4, %v960_v37  ;;  %v669_v58 = vmax.f32 %v653_v45, 0.0  ;;  %v593_v60 = vpop.f32.mrb[21].mxu1  ;;  %v1437_v61 = vmax.f32 %v1376_v53, %v1408_v54  ;;  %6480 = vmatmul.mubr.msk.f32.vlgmr.msra.gmra.mrb[24].mxu0 %vm48_vm4, %v8177_v55  ;;  %975 = vst.msk [vmem:[#allocation4 + $0x180] sm:$0xff] %vm48_vm4, %v959_v46  ;;  %v962_v62 = vmax.f32 %v946_v47, 0.0  ;;  %v668_v0 = vmax.f32 %v652_v51, 0.0 }
 0x107   :  { %1483 = vst.msk [vmem:[#allocation2 + $0x21] sm:$0xff] %vm48_vm4, %v1480_v48  ;;  %1361 = vst.msk [vmem:[#allocation5 + $0x30] sm:$0xff] %vm48_vm4, %v1345_v50  ;;  %v631_v1 = vmul.f32 %v8030_v21, %v593_v60  ;;  %v945_v2 = vadd.f32 %v8035_v23, %v922_v56  ;;  %v886_v4 = vpop.f32.mrb[21].mxu0  ;;  %6992 = vmatpush3.bf16.msra.mxu0 %v8024_v20  ;;  %v1290_v5 = vld [vmem:[#allocation4 + $0x70] ss:$2 sm:$0xff]  ;;  %v655_v7 = vadd.f32 %v8035_v23, %v632_v59  ;;  %v6414_v12 = vpop.f32.mrb[22].mxu1 }
 0x108   :  { %1484 = vst.msk [vmem:[#allocation2 + $0xc1] sm:$0xff] %vm48_vm4, %v1481_v57  ;;  %v1322_v6 = vld [vmem:[#allocation4 + $0x71] ss:$2 sm:$0xff]  ;;  %685 = vst.msk [vmem:[#allocation4 + $0x158] sm:$0xff] %vm48_vm4, %v669_v58  ;;  %v924_v8 = vmul.f32 %v8030_v21, %v886_v4  ;;  %6994 = vmatprep.subr.bf16.mxu0 %v8157_v26  ;;  %v948_v16 = vadd.f32 %v8035_v23, %v925_v3  ;;  %v634_v18 = vmul.f32 %v6414_v12, %v8030_v21  ;;  %v603_v19 = vpop.f32.mrb[23].mxu1  ;;  %v1485_v24 = vld [vmem:[#allocation5 + $0x20] sm:$0xff] }
 0x109   :  { %1453 = vst.msk [vmem:[#allocation5 + $0x50] sm:$0xff] %vm48_vm4, %v1437_v61  ;;  %978 = vst.msk [vmem:[#allocation4 + $0x198] sm:$0xff] %vm48_vm4, %v962_v62  ;;  %v1346_v11 = vmax.f32 %v1290_v5, %v1322_v6  ;;  %v654_v20 = vadd.f32 %v8035_v23, %v631_v1  ;;  %v1378_v13 = vld [vmem:[#allocation4 + $0xb0] ss:$2 sm:$0xff]  ;;  %v1410_v14 = vld [vmem:[#allocation4 + $0xb1] ss:$2 sm:$0xff]  ;;  %v633_v31 = vmul.f32 %v8030_v21, %v603_v19 }
 0x10a   :  { %684 = vst.msk [vmem:[#allocation4 + $0x150] sm:$0xff] %vm48_vm4, %v668_v0  ;;  %v961_v15 = vmax.f32 %v945_v2, 0.0  ;;  %v671_v17 = vmax.f32 %v655_v7, 0.0  ;;  %v1438_v22 = vmax.f32 %v1378_v13, %v1410_v14  ;;  %v1487_v25 = vld [vmem:[#allocation5 + $0x28] sm:$0xff]  ;;  %v947_v27 = vadd.f32 %v8035_v23, %v924_v8  ;;  %v6442_v28 = vpop.f32.mrb[22].mxu0  ;;  %v1503_v29 = vld [vmem:[#allocation5 + $0x40] sm:$0xff] }
 0x10b   :  { %1362 = vst.msk [vmem:[#allocation5 + $0x38] sm:$0xff] %vm48_vm4, %v1346_v11  ;;  %v670_v30 = vmax.f32 %v654_v20, 0.0  ;;  %v1489_v32 = vmax.f32 %v1485_v24, %v1487_v25  ;;  %v964_v33 = vmax.f32 %v948_v16, 0.0  ;;  %v896_v34 = vpop.f32.mrb[23].mxu0  ;;  %6996 = vmatpush3.bf16.msra.mxu0 %v8157_v26  ;;  %v1300_v35 = vld [vmem:[#allocation4 + $0x140] ss:$2 sm:$0xff]  ;;  %v657_v37 = vadd.f32 %v8035_v23, %v634_v18 }
 0x10c   :  { %977 = vst.msk [vmem:[#allocation4 + $0x190] sm:$0xff] %vm48_vm4, %v961_v15  ;;  %v1332_v36 = vld [vmem:[#allocation4 + $0x141] ss:$2 sm:$0xff]  ;;  %687 = vst.msk [vmem:[#allocation4 + $0x168] sm:$0xff] %vm48_vm4, %v671_v17  ;;  %v963_v38 = vmax.f32 %v947_v27, 0.0  ;;  %v927_v39 = vmul.f32 %v6442_v28, %v8030_v21  ;;  %v926_v40 = vmul.f32 %v8030_v21, %v896_v34  ;;  %6998 = vmatprep.subr.bf16.mxu0 %v8198_v9  ;;  %v6449_v43 = vpop.f32.mrb[24].mxu1 }
 0x10d   :  { %1454 = vst.msk [vmem:[#allocation5 + $0x58] sm:$0xff] %vm48_vm4, %v1438_v22  ;;  %v1505_v41 = vld [vmem:[#allocation5 + $0x48] sm:$0xff]  ;;  %v1351_v42 = vmax.f32 %v1300_v35, %v1332_v36  ;;  %686 = vst.msk [vmem:[#allocation4 + $0x160] sm:$0xff] %vm48_vm4, %v670_v30  ;;  %v656_v26 = vadd.f32 %v8035_v23, %v633_v31  ;;  %v673_v48 = vmax.f32 %v657_v37, 0.0  ;;  %v1206_v49 = vmul.f32 %v6449_v43, %v8030_v21  ;;  %v1119_v50 = vpop.f32.mrb[25].mxu1 }
 0x10e   :  { %v1388_v44 = vld [vmem:[#allocation4 + $0x180] ss:$2 sm:$0xff]  ;;  %v1420_v45 = vld [vmem:[#allocation4 + $0x181] ss:$2 sm:$0xff]  ;;  %1492 = vst.msk [vmem:[#allocation2 + $0x31] sm:$0xff] %vm48_vm4, %v1489_v32  ;;  %980 = vst.msk [vmem:[#allocation4 + $0x1a8] sm:$0xff] %vm48_vm4, %v964_v33  ;;  %v1507_v47 = vmax.f32 %v1503_v29, %v1505_v41  ;;  %v950_v52 = vadd.f32 %v8035_v23, %v927_v39  ;;  %v1205_v54 = vmul.f32 %v8030_v21, %v1119_v50 }
 0x10f   :  { %v8217_v46 = vld [vmem:[#allocation2 + $0x21] sm:$0xff]  ;;  %v1443_v51 = vmax.f32 %v1388_v44, %v1420_v45  ;;  %979 = vst.msk [vmem:[#allocation4 + $0x1a0] sm:$0xff] %vm48_vm4, %v963_v38  ;;  %1367 = vst.msk [vmem:[#allocation5 + $0xa0] sm:$0xff] %vm48_vm4, %v1351_v42  ;;  %v672_v53 = vmax.f32 %v656_v26, 0.0  ;;  %v949_v56 = vadd.f32 %v8035_v23, %v926_v40  ;;  %v1229_v59 = vadd.f32 %v8035_v23, %v1206_v49  ;;  %v6452_v63 = vpop.f32.mrb[26].mxu1  ;;  %v1494_v20 = vld [vmem:[#allocation5 + $0x30] sm:$0xff] }
 0x110   :  { %6482 = vmatprep.mubr.msk.f32.mxu0 %vm48_vm4, %v8217_v46  ;;  %1510 = vst.msk [vmem:[#allocation2 + $0x51] sm:$0xff] %vm48_vm4, %v1507_v47  ;;  %689 = vst.msk [vmem:[#allocation4 + $0x178] sm:$0xff] %vm48_vm4, %v673_v48  ;;  %v966_v60 = vmax.f32 %v950_v52, 0.0  ;;  %v1228_v62 = vadd.f32 %v8035_v23, %v1205_v54  ;;  %v1512_v1 = vld [vmem:[#allocation5 + $0x50] sm:$0xff]  ;;  %v1208_v3 = vmul.f32 %v6452_v63, %v8030_v21  ;;  %v1129_v4 = vpop.f32.mrb[27].mxu1 }
 0x111   :  { %v1302_v57 = vld [vmem:[#allocation4 + $0x150] ss:$2 sm:$0xff]  ;;  %v1334_v58 = vld [vmem:[#allocation4 + $0x151] ss:$2 sm:$0xff]  ;;  %1459 = vst.msk [vmem:[#allocation5 + $0xc0] sm:$0xff] %vm48_vm4, %v1443_v51  ;;  %688 = vst.msk [vmem:[#allocation4 + $0x170] sm:$0xff] %vm48_vm4, %v672_v53  ;;  %v1207_v8 = vmul.f32 %v8030_v21, %v1129_v4 }
 0x112   :  { %v1352_v61 = vmax.f32 %v1302_v57, %v1334_v58  ;;  %v965_v0 = vmax.f32 %v949_v56, 0.0  ;;  %v1245_v2 = vmax.f32 %v1229_v59, 0.0  ;;  %982 = vst.msk [vmem:[#allocation4 + $0x1b8] sm:$0xff] %vm48_vm4, %v966_v60  ;;  %v1244_v7 = vmax.f32 %v1228_v62, 0.0  ;;  %v1496_v12 = vld [vmem:[#allocation5 + $0x38] sm:$0xff] }
 0x113   :  { %v1390_v5 = vld [vmem:[#allocation4 + $0x190] ss:$2 sm:$0xff]  ;;  %v1422_v6 = vld [vmem:[#allocation4 + $0x191] ss:$2 sm:$0xff]  ;;  %v1231_v16 = vadd.f32 %v8035_v23, %v1208_v3  ;;  %v1498_v18 = vmax.f32 %v1494_v20, %v1496_v12  ;;  %v1230_v24 = vadd.f32 %v8035_v23, %v1207_v8  ;;  %v6455_v25 = vpop.f32.mrb[28].mxu1 }
 0x114   :  { %1368 = vst.msk [vmem:[#allocation5 + $0xa8] sm:$0xff] %vm48_vm4, %v1352_v61  ;;  %v1444_v11 = vmax.f32 %v1390_v5, %v1422_v6  ;;  %981 = vst.msk [vmem:[#allocation4 + $0x1b0] sm:$0xff] %vm48_vm4, %v965_v0  ;;  %v1514_v13 = vld [vmem:[#allocation5 + $0x58] sm:$0xff]  ;;  %v1304_v14 = vld [vmem:[#allocation4 + $0x160] ss:$2 sm:$0xff]  ;;  %v1210_v30 = vmul.f32 %v6455_v25, %v8030_v21  ;;  %v1139_v31 = vpop.f32.mrb[29].mxu1 }
 0x115   :  { %v1336_v15 = vld [vmem:[#allocation4 + $0x161] ss:$2 sm:$0xff]  ;;  %1261 = vst.msk [vmem:[#allocation4 + $0xc8] sm:$0xff] %vm48_vm4, %v1245_v2  ;;  %v8242_v17 = vld [vmem:[#allocation2 + $0x31] sm:$0xff]  ;;  %v1516_v19 = vmax.f32 %v1512_v1, %v1514_v13  ;;  %1260 = vst.msk [vmem:[#allocation4 + $0xc0] sm:$0xff] %vm48_vm4, %v1244_v7  ;;  %v1247_v29 = vmax.f32 %v1231_v16, 0.0  ;;  %v1209_v34 = vmul.f32 %v8030_v21, %v1139_v31 }
 0x116   :  { %v1353_v22 = vmax.f32 %v1304_v14, %v1336_v15  ;;  %1460 = vst.msk [vmem:[#allocation5 + $0xc8] sm:$0xff] %vm48_vm4, %v1444_v11  ;;  %6483 = vmatmul.mubr.msk.f32.gmra.mrb[26].mxu0 %vm48_vm4, %v8242_v17  ;;  %v1392_v27 = vld [vmem:[#allocation4 + $0x1a0] ss:$2 sm:$0xff]  ;;  %v1424_v28 = vld [vmem:[#allocation4 + $0x1a1] ss:$2 sm:$0xff]  ;;  %1501 = vst.msk [vmem:[#allocation2 + $0x41] sm:$0xff] %vm48_vm4, %v1498_v18  ;;  %v1233_v37 = vadd.f32 %v8035_v23, %v1210_v30 }
 0x117   :  { %v1445_v32 = vmax.f32 %v1392_v27, %v1424_v28  ;;  %1519 = vst.msk [vmem:[#allocation2 + $0x61] sm:$0xff] %vm48_vm4, %v1516_v19  ;;  %v1246_v33 = vmax.f32 %v1230_v24, 0.0  ;;  %1263 = vst.msk [vmem:[#allocation4 + $0xd8] sm:$0xff] %vm48_vm4, %v1247_v29  ;;  %v1232_v39 = vadd.f32 %v8035_v23, %v1209_v34  ;;  %v6458_v40 = vpop.f32.mrb[30].mxu1  ;;  %v8262_v50 = vld [vmem:[#allocation2 + $0x51] sm:$0xff]  ;;  %v1486_v51 = vld [vmem:[#allocation5 + $0xa0] sm:$0xff] }
 0x118   :  { %1369 = vst.msk [vmem:[#allocation5 + $0xb0] sm:$0xff] %vm48_vm4, %v1353_v22  ;;  %v1306_v35 = vld [vmem:[#allocation4 + $0x170] ss:$2 sm:$0xff]  ;;  %v1338_v36 = vld [vmem:[#allocation4 + $0x171] ss:$2 sm:$0xff]  ;;  %v1504_v41 = vld [vmem:[#allocation5 + $0xc0] sm:$0xff]  ;;  %v1212_v26 = vmul.f32 %v6458_v40, %v8030_v21 }
 0x119   :  { %1461 = vst.msk [vmem:[#allocation5 + $0xd0] sm:$0xff] %vm48_vm4, %v1445_v32  ;;  %v1354_v38 = vmax.f32 %v1306_v35, %v1338_v36  ;;  %1262 = vst.msk [vmem:[#allocation4 + $0xd0] sm:$0xff] %vm48_vm4, %v1246_v33  ;;  %v1249_v42 = vmax.f32 %v1233_v37, 0.0  ;;  %v1149_v43 = vpop.f32.mrb[31].mxu1  ;;  %v1248_v47 = vmax.f32 %v1232_v39, 0.0 }
 0x11a   :  { %v1211_v48 = vmul.f32 %v8030_v21, %v1149_v43  ;;  %v1235_v56 = vadd.f32 %v8035_v23, %v1212_v26 }
 0x11b   :  { %v1394_v44 = vld [vmem:[#allocation4 + $0x1b0] ss:$2 sm:$0xff]  ;;  %v1426_v45 = vld [vmem:[#allocation4 + $0x1b1] ss:$2 sm:$0xff]  ;;  %1370 = vst.msk [vmem:[#allocation5 + $0xb8] sm:$0xff] %vm48_vm4, %v1354_v38  ;;  %v1488_v52 = vld [vmem:[#allocation5 + $0xa8] sm:$0xff] }
 0x11c   :  { %v1446_v49 = vmax.f32 %v1394_v44, %v1426_v45  ;;  %v1380_v53 = vld [vmem:[#allocation4 + $0xc0] ss:$2 sm:$0xff]  ;;  %v1412_v54 = vld [vmem:[#allocation4 + $0xc1] ss:$2 sm:$0xff]  ;;  %1265 = vst.msk [vmem:[#allocation4 + $0xe8] sm:$0xff] %vm48_vm4, %v1249_v42  ;;  %v1490_v57 = vmax.f32 %v1486_v51, %v1488_v52  ;;  %1264 = vst.msk [vmem:[#allocation4 + $0xe0] sm:$0xff] %vm48_vm4, %v1248_v47  ;;  %v1234_v60 = vadd.f32 %v8035_v23, %v1211_v48 }
 0x11d   :  { %v1506_v58 = vld [vmem:[#allocation5 + $0xc8] sm:$0xff]  ;;  %v1439_v59 = vmax.f32 %v1380_v53, %v1412_v54  ;;  %v6461_v61 = vpop.f32.mrb[32].mxu1  ;;  %v1251_v1 = vmax.f32 %v1235_v56, 0.0 }
 0x11e   :  { %1462 = vst.msk [vmem:[#allocation5 + $0xd8] sm:$0xff] %vm48_vm4, %v1446_v49  ;;  %v8269_v62 = vld [vmem:[#allocation2 + $0x41] sm:$0xff]  ;;  %v1508_v0 = vmax.f32 %v1504_v41, %v1506_v58  ;;  %v1214_v2 = vmul.f32 %v6461_v61, %v8030_v21  ;;  %v1159_v3 = vpop.f32.mrb[33].mxu1  ;;  %1493 = vst.msk [vmem:[#allocation2 + $0xd1] sm:$0xff] %vm48_vm4, %v1490_v57  ;;  %v1250_v4 = vmax.f32 %v1234_v60, 0.0 }
 0x11f   :  { %v8271_v63 = vld [vmem:[#allocation2 + $0x61] sm:$0xff]  ;;  %6485 = vmatprep.mubr.msk.f32.mxu0 %vm48_vm4, %v8269_v62  ;;  %1455 = vst.msk [vmem:[#allocation5 + $0x60] sm:$0xff] %vm48_vm4, %v1439_v59  ;;  %v1213_v5 = vmul.f32 %v8030_v21, %v1159_v3  ;;  %1267 = vst.msk [vmem:[#allocation4 + $0xf8] sm:$0xff] %vm48_vm4, %v1251_v1  ;;  %v6464_v12 = vpop.f32.mrb[34].mxu1  ;;  %v1495_v16 = vld [vmem:[#allocation5 + $0xb0] sm:$0xff] }
 0x120   :  { %6486 = vmatmul.mubr.msk.f32.gmra.mrb[28].mxu0 %vm48_vm4, %v8262_v50  ;;  %1511 = vst.msk [vmem:[#allocation2 + $0xf1] sm:$0xff] %vm48_vm4, %v1508_v0  ;;  %v1382_v6 = vld [vmem:[#allocation4 + $0xd0] ss:$2 sm:$0xff]  ;;  %v1414_v7 = vld [vmem:[#allocation4 + $0xd1] ss:$2 sm:$0xff]  ;;  %v1237_v8 = vadd.f32 %v8035_v23, %v1214_v2  ;;  %1266 = vst.msk [vmem:[#allocation4 + $0xf0] sm:$0xff] %vm48_vm4, %v1250_v4  ;;  %v1216_v14 = vmul.f32 %v6464_v12, %v8030_v21 }
 0x121   :  { %6488 = vmatprep.mubr.msk.f32.mxu0 %vm48_vm4, %v8271_v63  ;;  %v1440_v11 = vmax.f32 %v1382_v6, %v1414_v7  ;;  %v1236_v20 = vadd.f32 %v8035_v23, %v1213_v5  ;;  %v1169_v15 = vpop.f32.mrb[35].mxu1  ;;  %v1513_v19 = vld [vmem:[#allocation5 + $0xd0] sm:$0xff]  ;;  %v1567_v5 = vld [vmem:[#allocation2 + $0xa1] sm:$0xff] }
 0x122   :  { %v1253_v13 = vmax.f32 %v1237_v8, 0.0  ;;  %v1497_v18 = vld [vmem:[#allocation5 + $0xb8] sm:$0xff]  ;;  %v1215_v24 = vmul.f32 %v8030_v21, %v1169_v15  ;;  %v1239_v29 = vadd.f32 %v8035_v23, %v1216_v14  ;;  %v8327_v14 = vld [vmem:[#allocation2 + $0xc1] sm:$0xff] }
 0x123   :  { %1456 = vst.msk [vmem:[#allocation5 + $0x68] sm:$0xff] %vm48_vm4, %v1440_v11  ;;  %v1252_v22 = vmax.f32 %v1236_v20, 0.0  ;;  %v1499_v25 = vmax.f32 %v1495_v16, %v1497_v18  ;;  %v1384_v27 = vld [vmem:[#allocation4 + $0xe0] ss:$2 sm:$0xff]  ;;  %v1416_v28 = vld [vmem:[#allocation4 + $0xe1] ss:$2 sm:$0xff] }
 0x124   :  { %1269 = vst.msk [vmem:[#allocation4 + $0x1c8] sm:$0xff] %vm48_vm4, %v1253_v13  ;;  %v1441_v31 = vmax.f32 %v1384_v27, %v1416_v28  ;;  %v1238_v32 = vadd.f32 %v8035_v23, %v1215_v24  ;;  %v6467_v34 = vpop.f32.mrb[36].mxu1  ;;  %v1255_v35 = vmax.f32 %v1239_v29, 0.0  ;;  %v8322_v20 = vld [vmem:[#allocation2 + $0xb1] sm:$0xff] }
 0x125   :  { %v1515_v30 = vld [vmem:[#allocation5 + $0xd8] sm:$0xff]  ;;  %1268 = vst.msk [vmem:[#allocation4 + $0x1c0] sm:$0xff] %vm48_vm4, %v1252_v22  ;;  %1502 = vst.msk [vmem:[#allocation2 + $0xe1] sm:$0xff] %vm48_vm4, %v1499_v25  ;;  %v1218_v36 = vmul.f32 %v6467_v34, %v8030_v21  ;;  %v1179_v37 = vpop.f32.mrb[37].mxu1 }
 0x126   :  { %v1517_v33 = vmax.f32 %v1513_v19, %v1515_v30  ;;  %1457 = vst.msk [vmem:[#allocation5 + $0x70] sm:$0xff] %vm48_vm4, %v1441_v31  ;;  %v1254_v38 = vmax.f32 %v1238_v32, 0.0  ;;  %v1217_v39 = vmul.f32 %v8030_v21, %v1179_v37  ;;  %1271 = vst.msk [vmem:[#allocation4 + $0x1d8] sm:$0xff] %vm48_vm4, %v1255_v35  ;;  %v1521_v45 = vld [vmem:[#allocation5 + $0x60] sm:$0xff]  ;;  %v8332_v22 = vld [vmem:[#allocation2 + $0xd1] sm:$0xff] }
 0x127   :  { %v1386_v40 = vld [vmem:[#allocation4 + $0xf0] ss:$2 sm:$0xff]  ;;  %v1418_v41 = vld [vmem:[#allocation4 + $0xf1] ss:$2 sm:$0xff]  ;;  %v1241_v42 = vadd.f32 %v8035_v23, %v1218_v36  ;;  %v6470_v44 = vpop.f32.mrb[38].mxu1  ;;  %v1539_v30 = vld [vmem:[#allocation2] sm:$0xff] }
 0x128   :  { %1520 = vst.msk [vmem:[#allocation2 + $0x101] sm:$0xff] %vm48_vm4, %v1517_v33  ;;  %v1442_v26 = vmax.f32 %v1386_v40, %v1418_v41  ;;  %1270 = vst.msk [vmem:[#allocation4 + $0x1d0] sm:$0xff] %vm48_vm4, %v1254_v38  ;;  %v1240_v43 = vadd.f32 %v8035_v23, %v1217_v39  ;;  %v1220_v49 = vmul.f32 %v6470_v44, %v8030_v21  ;;  %v1189_v51 = vpop.f32.mrb[39].mxu1  ;;  %v8341_v25 = vld [vmem:[#allocation2 + $0xf1] sm:$0xff]  ;;  %v5739_v37 = vld [vmem:[%s9758_s4 + $0x60] sm:$0xff] }
 0x129   :  { %v1257_v48 = vmax.f32 %v1241_v42, 0.0  ;;  %v1219_v54 = vmul.f32 %v8030_v21, %v1189_v51  ;;  %v5721_v33 = vld [vmem:[%s9758_s4 + $0x50] sm:$0xff]  ;;  %v5722_v34 = vld [vmem:[%s9758_s4 + $0x58] sm:$0xff]  ;;  %v5740_v38 = vld [vmem:[%s9758_s4 + $0x68] sm:$0xff] }
 0x12a   :  { %v1523_v47 = vld [vmem:[#allocation5 + $0x68] sm:$0xff]  ;;  %1458 = vst.msk [vmem:[#allocation5 + $0x78] sm:$0xff] %vm48_vm4, %v1442_v26  ;;  %v1256_v53 = vmax.f32 %v1240_v43, 0.0  ;;  %v1243_v58 = vadd.f32 %v8035_v23, %v1220_v49  ;;  %v7001_v35 = vpack.c.bf16 %v5722_v34, %v5721_v33  ;;  %v8361_v36 = vld [vmem:[#allocation2 + $0x10] sm:$0xff]  ;;  %v8371_v39 = vld [vmem:[#allocation2 + $0x20] sm:$0xff]  ;;  %v7005_v40 = vpack.c.bf16 %v5740_v38, %v5739_v37 }
 0x12b   :  { %v1525_v52 = vmax.f32 %v1521_v45, %v1523_v47  ;;  %1273 = vst.msk [vmem:[#allocation4 + $0x1e8] sm:$0xff] %vm48_vm4, %v1257_v48  ;;  %v1242_v60 = vadd.f32 %v8035_v23, %v1219_v54  ;;  %v8376_v41 = vld [vmem:[#allocation2 + $0x30] sm:$0xff]  ;;  %v8380_v42 = vld [vmem:[#allocation2 + $0x40] sm:$0xff] }
 0x12c   :  { %v1396_v56 = vld [vmem:[#allocation4 + $0x1c0] ss:$2 sm:$0xff]  ;;  %v1428_v57 = vld [vmem:[#allocation4 + $0x1c1] ss:$2 sm:$0xff]  ;;  %1272 = vst.msk [vmem:[#allocation4 + $0x1e0] sm:$0xff] %vm48_vm4, %v1256_v53  ;;  %v1259_v61 = vmax.f32 %v1243_v58, 0.0 }
 0x12d   :  { %v1447_v59 = vmax.f32 %v1396_v56, %v1428_v57  ;;  %1528 = vst.msk [vmem:[#allocation2 + $0x71] sm:$0xff] %vm48_vm4, %v1525_v52  ;;  %v1258_v0 = vmax.f32 %v1242_v60, 0.0  ;;  %v1530_v3 = vld [vmem:[#allocation5 + $0x70] sm:$0xff]  ;;  %v8336_v24 = vld [vmem:[#allocation2 + $0xe1] sm:$0xff]  ;;  %v5742_v57 = vld [vmem:[%s9758_s4 + $0x78] sm:$0xff] }
 0x12e   :  { %1275 = vst.msk [vmem:[#allocation4 + $0x1f8] sm:$0xff] %vm48_vm4, %v1259_v61  ;;  %v8384_v26 = vld [vmem:[#allocation2 + $0x50] sm:$0xff]  ;;  %v1547_v43 = vld [vmem:[#allocation2 + $0xa0] sm:$0xff]  ;;  %v5760_v61 = vld [vmem:[%s9758_s4 + $0x88] sm:$0xff] }
 0x12f   :  { %1463 = vst.msk [vmem:[#allocation5 + $0xe0] sm:$0xff] %vm48_vm4, %v1447_v59  ;;  %v1398_v1 = vld [vmem:[#allocation4 + $0x1d0] ss:$2 sm:$0xff]  ;;  %v1430_v2 = vld [vmem:[#allocation4 + $0x1d1] ss:$2 sm:$0xff]  ;;  %1274 = vst.msk [vmem:[#allocation4 + $0x1f0] sm:$0xff] %vm48_vm4, %v1258_v0 }
 0x130   :  { %v1448_v21 = vmax.f32 %v1398_v1, %v1430_v2  ;;  %v8345_v28 = vld [vmem:[#allocation2 + $0x101] sm:$0xff]  ;;  %v8397_v45 = vld [vmem:[#allocation2 + $0xb0] sm:$0xff] }
 0x131   :  { %v1532_v4 = vld [vmem:[#allocation5 + $0x78] sm:$0xff]  ;;  %v8401_v47 = vld [vmem:[#allocation2 + $0xc0] sm:$0xff]  ;;  %v8405_v48 = vld [vmem:[#allocation2 + $0xd0] sm:$0xff] }
 0x132   :  { %1464 = vst.msk [vmem:[#allocation5 + $0xe8] sm:$0xff] %vm48_vm4, %v1448_v21  ;;  %v1534_v6 = vmax.f32 %v1530_v3, %v1532_v4  ;;  %v8409_v49 = vld [vmem:[#allocation2 + $0xe0] sm:$0xff]  ;;  %v8413_v51 = vld [vmem:[#allocation2 + $0xf0] sm:$0xff] }
 0x133   :  { %v1400_v23 = vld [vmem:[#allocation4 + $0x1e0] ss:$2 sm:$0xff]  ;;  %v1432_v8 = vld [vmem:[#allocation4 + $0x1e1] ss:$2 sm:$0xff]  ;;  %v5741_v56 = vld [vmem:[%s9758_s4 + $0x70] sm:$0xff] }
 0x134   :  { %v8316_v7 = vld [vmem:[#allocation2 + $0x71] sm:$0xff]  ;;  %1537 = vst.msk [vmem:[#allocation2 + $0x81] sm:$0xff] %vm48_vm4, %v1534_v6  ;;  %v1449_v11 = vmax.f32 %v1400_v23, %v1432_v8  ;;  %v8417_v52 = vld [vmem:[#allocation2 + $0x100] sm:$0xff]  ;;  %v7009_v58 = vpack.c.bf16 %v5742_v57, %v5741_v56 }
 0x135   :  { %6489 = vmatmul.mubr.msk.f32.gmra.mrb[30].mxu0 %vm48_vm4, %v8316_v7  ;;  %v8392_v44 = vld [vmem:[#allocation2 + $0x70] sm:$0xff]  ;;  %v1966_v53 = vld [vmem:[#allocation2 + $0x2] sm:$0xff] }
 0x136   :  { %6491 = vmatprep.mubr.msk.f32.mxu0 %vm48_vm4, %v1567_v5  ;;  %1465 = vst.msk [vmem:[#allocation5 + $0xf0] sm:$0xff] %vm48_vm4, %v1449_v11  ;;  %v1402_v12 = vld [vmem:[#allocation4 + $0x1f0] ss:$2 sm:$0xff]  ;;  %v1434_v13 = vld [vmem:[#allocation4 + $0x1f1] ss:$2 sm:$0xff]  ;;  %v1522_v16 = vld [vmem:[#allocation5 + $0xe0] sm:$0xff] }
 0x137   :  { %v1450_v15 = vmax.f32 %v1402_v12, %v1434_v13  ;;  %v8432_v59 = vld [vmem:[#allocation2 + $0x12] sm:$0xff]  ;;  %v5759_v60 = vld [vmem:[%s9758_s4 + $0x80] sm:$0xff] }
 0x138   :  { %v8442_v0 = vld [vmem:[#allocation2 + $0x22] sm:$0xff]  ;;  %v7013_v1 = vpack.c.bf16 %v5760_v61, %v5759_v60  ;;  %v8446_v2 = vld [vmem:[#allocation2 + $0x32] sm:$0xff] }
 0x139   :  { %6492 = vmatmul.mubr.msk.f32.gmra.mrb[32].mxu0 %vm48_vm4, %v8322_v20  ;;  %v1524_v18 = vld [vmem:[#allocation5 + $0xe8] sm:$0xff]  ;;  %1466 = vst.msk [vmem:[#allocation5 + $0xf8] sm:$0xff] %vm48_vm4, %v1450_v15  ;;  %v8454_v3 = vld [vmem:[#allocation2 + $0x52] sm:$0xff]  ;;  %v5799_v38 = vld [vmem:[%s9758_s4 + $0xc0] sm:$0xff] }
 0x13a   :  { %6494 = vmatprep.mubr.msk.f32.mxu0 %vm48_vm4, %v8327_v14  ;;  %v1526_v19 = vmax.f32 %v1522_v16, %v1524_v18  ;;  %v8450_v21 = vld [vmem:[#allocation2 + $0x42] sm:$0xff]  ;;  %v8462_v6 = vld [vmem:[#allocation2 + $0x72] sm:$0xff] }
 0x13b   :  { %v8458_v4 = vld [vmem:[#allocation2 + $0x62] sm:$0xff]  ;;  %v8467_v23 = vld [vmem:[#allocation2 + $0xb2] sm:$0xff] }
 0x13c   :  { %1529 = vst.msk [vmem:[#allocation2 + $0x111] sm:$0xff] %vm48_vm4, %v1526_v19  ;;  %v1974_v5 = vld [vmem:[#allocation2 + $0xa2] sm:$0xff]  ;;  %v8475_v11 = vld [vmem:[#allocation2 + $0xd2] sm:$0xff] }
 0x13d   :  { %6495 = vmatmul.mubr.msk.f32.gmra.mrb[34].mxu0 %vm48_vm4, %v8332_v22  ;;  %v1531_v27 = vld [vmem:[#allocation5 + $0xf0] sm:$0xff]  ;;  %v8471_v8 = vld [vmem:[#allocation2 + $0xc2] sm:$0xff]  ;;  %v5762_v19 = vld [vmem:[%s9758_s4 + $0x98] sm:$0xff] }
 0x13e   :  { %6497 = vmatprep.mubr.msk.f32.mxu0 %vm48_vm4, %v8336_v24  ;;  %v8479_v12 = vld [vmem:[#allocation2 + $0xe2] sm:$0xff]  ;;  %v8483_v13 = vld [vmem:[#allocation2 + $0xf2] sm:$0xff] }
 0x13f   :  { %v8487_v15 = vld [vmem:[#allocation2 + $0x102] sm:$0xff]  ;;  %v5761_v18 = vld [vmem:[%s9758_s4 + $0x90] sm:$0xff] }
 0x140   :  { %v1533_v29 = vld [vmem:[#allocation5 + $0xf8] sm:$0xff]  ;;  %v8521_v33 = vld [vmem:[#allocation2 + $0x80] sm:$0xff] }
 0x141   :  { %6498 = vmatmul.mubr.msk.f32.gmra.mrb[36].mxu0 %vm48_vm4, %v8341_v25  ;;  %v1535_v31 = vmax.f32 %v1531_v27, %v1533_v29  ;;  %v7017_v27 = vpack.c.bf16 %v5762_v19, %v5761_v18  ;;  %v5779_v29 = vld [vmem:[%s9758_s4 + $0xa0] sm:$0xff]  ;;  %v5840_v19 = vld [vmem:[%s9758_s4 + $0x108] sm:$0xff] }
 0x142   :  { %6500 = vmatprep.mubr.msk.f32.mxu0 %vm48_vm4, %v8345_v28  ;;  %v5819_v57 = vld [vmem:[%s9758_s4 + $0xe0] sm:$0xff] }
 0x143   :  { %v8349_v32 = vld [vmem:[#allocation2 + $0x111] sm:$0xff]  ;;  %1538 = vst.msk [vmem:[#allocation2 + $0x121] sm:$0xff] %vm48_vm4, %v1535_v31  ;;  %v5839_v18 = vld [vmem:[%s9758_s4 + $0x100] sm:$0xff] }
 0x144   :  { %v8421_v54 = vld [vmem:[#allocation2 + $0x110] sm:$0xff] }
 0x145   :  { %6501 = vmatmul.mubr.msk.f32.gmra.mrb[38].mxu0 %vm48_vm4, %v8349_v32  ;;  %v8491_v16 = vld [vmem:[#allocation2 + $0x112] sm:$0xff] }
 0x146   :  { %6511 = vmatprep.mubr.msk.f32.mxu0 %vm48_vm4, %v1539_v30  ;;  %v5780_v30 = vld [vmem:[%s9758_s4 + $0xa8] sm:$0xff] }
 0x147   :  { %v7021_v31 = vpack.c.bf16 %v5780_v30, %v5779_v29 }
 0x149   :  { %6512 = vmatmul.mubr.msk.f32.vlgmr.msra.gmra.mrb[24].mxu0 %vm48_vm4, %v8361_v36 }
 0x14a   :  { %6514 = vmatprep.mubr.msk.f32.mxu0 %vm48_vm4, %v8371_v39  ;;  %7000 = vmatpush3.bf16.msra.mxu0 %v8198_v9  ;;  %v8388_v9 = vld [vmem:[#allocation2 + $0x60] sm:$0xff] }
 0x14b   :  { %7002 = vmatprep.subr.bf16.mxu0 %v7001_v35  ;;  %v8539_v34 = vld [vmem:[#allocation2 + $0x120] sm:$0xff] }
 0x14c   :  { %v8635_v61 = vld [vmem:[#allocation2 + $0x122] sm:$0xff] }
 0x14d   :  { %6515 = vmatmul.mubr.msk.f32.gmra.mrb[26].mxu0 %vm48_vm4, %v8376_v41 }
 0x14e   :  { %6517 = vmatprep.mubr.msk.f32.mxu0 %vm48_vm4, %v8380_v42  ;;  %7004 = vmatpush3.bf16.msra.mxu0 %v7001_v35  ;;  %v5781_v35 = vld [vmem:[%s9758_s4 + $0xb0] sm:$0xff] }
 0x14f   :  { %7006 = vmatprep.subr.bf16.mxu0 %v7005_v40 }
 0x151   :  { %6518 = vmatmul.mubr.msk.f32.gmra.mrb[28].mxu0 %vm48_vm4, %v8384_v26 }
 0x152   :  { %6520 = vmatprep.mubr.msk.f32.mxu0 %vm48_vm4, %v8388_v9 }
 0x155   :  { %6521 = vmatmul.mubr.msk.f32.gmra.mrb[30].mxu0 %vm48_vm4, %v8392_v44 }
 0x156   :  { %6523 = vmatprep.mubr.msk.f32.mxu0 %vm48_vm4, %v1547_v43 }
 0x159   :  { %6524 = vmatmul.mubr.msk.f32.gmra.mrb[32].mxu0 %vm48_vm4, %v8397_v45 }
 0x15a   :  { %6526 = vmatprep.mubr.msk.f32.mxu0 %vm48_vm4, %v8401_v47 }
 0x15d   :  { %6527 = vmatmul.mubr.msk.f32.gmra.mrb[34].mxu0 %vm48_vm4, %v8405_v48 }
 0x15e   :  { %6529 = vmatprep.mubr.msk.f32.mxu0 %vm48_vm4, %v8409_v49 }
 0x161   :  { %6530 = vmatmul.mubr.msk.f32.gmra.mrb[36].mxu0 %vm48_vm4, %v8413_v51 }
 0x162   :  { %6532 = vmatprep.mubr.msk.f32.mxu0 %vm48_vm4, %v8417_v52 }
 0x165   :  { %6533 = vmatmul.mubr.msk.f32.gmra.mrb[38].mxu0 %vm48_vm4, %v8421_v54 }
 0x166   :  { %6543 = vmatprep.mubr.msk.f32.mxu0 %vm48_vm4, %v1966_v53  ;;  %v5802_v53 = vld [vmem:[%s9758_s4 + $0xd8] sm:$0xff] }
 0x169   :  { %6544 = vmatmul.mubr.msk.f32.vlgmr.msra.gmra.mrb[24].mxu0 %vm48_vm4, %v8432_v59 }
 0x16a   :  { %6546 = vmatprep.mubr.msk.f32.mxu0 %vm48_vm4, %v8442_v0  ;;  %7008 = vmatpush3.bf16.msra.mxu0 %v7005_v40  ;;  %v5800_v40 = vld [vmem:[%s9758_s4 + $0xc8] sm:$0xff] }
 0x16b   :  { %7010 = vmatprep.subr.bf16.mxu0 %v7009_v58  ;;  %v7029_v43 = vpack.c.bf16 %v5800_v40, %v5799_v38 }
 0x16d   :  { %6547 = vmatmul.mubr.msk.f32.gmra.mrb[26].mxu0 %vm48_vm4, %v8446_v2 }
 0x16e   :  { %6549 = vmatprep.mubr.msk.f32.mxu0 %vm48_vm4, %v8450_v21  ;;  %7012 = vmatpush3.bf16.msra.mxu0 %v7009_v58  ;;  %v5820_v58 = vld [vmem:[%s9758_s4 + $0xe8] sm:$0xff] }
 0x16f   :  { %7014 = vmatprep.subr.bf16.mxu0 %v7013_v1  ;;  %v7037_v60 = vpack.c.bf16 %v5820_v58, %v5819_v57 }
 0x171   :  { %6550 = vmatmul.mubr.msk.f32.gmra.mrb[28].mxu0 %vm48_vm4, %v8454_v3 }
 0x172   :  { %6552 = vmatprep.mubr.msk.f32.mxu0 %vm48_vm4, %v8458_v4 }
 0x175   :  { %6553 = vmatmul.mubr.msk.f32.gmra.mrb[30].mxu0 %vm48_vm4, %v8462_v6 }
 0x176   :  { %6555 = vmatprep.mubr.msk.f32.mxu0 %vm48_vm4, %v1974_v5  ;;  %v5822_v5 = vld [vmem:[%s9758_s4 + $0xf8] sm:$0xff] }
 0x179   :  { %6556 = vmatmul.mubr.msk.f32.gmra.mrb[32].mxu0 %vm48_vm4, %v8467_v23 }
 0x17a   :  { %6558 = vmatprep.mubr.msk.f32.mxu0 %vm48_vm4, %v8471_v8 }
 0x17d   :  { %6559 = vmatmul.mubr.msk.f32.gmra.mrb[34].mxu0 %vm48_vm4, %v8475_v11 }
 0x17e   :  { %6561 = vmatprep.mubr.msk.f32.mxu0 %vm48_vm4, %v8479_v12 }
 0x181   :  { %6562 = vmatmul.mubr.msk.f32.gmra.mrb[36].mxu0 %vm48_vm4, %v8483_v13 }
 0x182   :  { %6564 = vmatprep.mubr.msk.f32.mxu0 %vm48_vm4, %v8487_v15 }
 0x185   :  { %6565 = vmatmul.mubr.msk.f32.gmra.mrb[38].mxu0 %vm48_vm4, %v8491_v16 }
 0x186   :  { %6575 = vmatprep.mubr.msk.f32.mxu0 %vm48_vm4, %v8361_v36  ;;  %v5782_v36 = vld [vmem:[%s9758_s4 + $0xb8] sm:$0xff] }
 0x187   :  { %v7025_v37 = vpack.c.bf16 %v5782_v36, %v5781_v35 }
 0x189   :  { %6576 = vmatmul.mubr.msk.f32.vlgmr.msra.gmra.mrb[24].mxu0 %vm48_vm4, %v8371_v39 }
 0x18a   :  { %6578 = vmatprep.mubr.msk.f32.mxu0 %vm48_vm4, %v8376_v41  ;;  %7016 = vmatpush3.bf16.msra.mxu0 %v7013_v1  ;;  %v5821_v1 = vld [vmem:[%s9758_s4 + $0xf0] sm:$0xff] }
 0x18b   :  { %7018 = vmatprep.subr.bf16.mxu0 %v7017_v27 }
 0x18d   :  { %6579 = vmatmul.mubr.msk.f32.gmra.mrb[26].mxu0 %vm48_vm4, %v8380_v42 }
 0x18e   :  { %6581 = vmatprep.mubr.msk.f32.mxu0 %vm48_vm4, %v8384_v26  ;;  %7020 = vmatpush3.bf16.msra.mxu0 %v7017_v27  ;;  %v7045_v27 = vpack.c.bf16 %v5840_v19, %v5839_v18 }
 0x18f   :  { %7022 = vmatprep.subr.bf16.mxu0 %v7021_v31 }
 0x191   :  { %6582 = vmatmul.mubr.msk.f32.gmra.mrb[28].mxu0 %vm48_vm4, %v8388_v9 }
 0x192   :  { %6584 = vmatprep.mubr.msk.f32.mxu0 %vm48_vm4, %v8392_v44 }
 0x195   :  { %6585 = vmatmul.mubr.msk.f32.gmra.mrb[30].mxu0 %vm48_vm4, %v8521_v33 }
 0x196   :  { %6587 = vmatprep.mubr.msk.f32.mxu0 %vm48_vm4, %v8397_v45  ;;  %v8587_v45 = vld [vmem:[#allocation2 + $0x121] sm:$0xff] }
 0x199   :  { %6588 = vmatmul.mubr.msk.f32.gmra.mrb[32].mxu0 %vm48_vm4, %v8401_v47 }
 0x19a   :  { %6590 = vmatprep.mubr.msk.f32.mxu0 %vm48_vm4, %v8405_v48 }
 0x19d   :  { %6591 = vmatmul.mubr.msk.f32.gmra.mrb[34].mxu0 %vm48_vm4, %v8409_v49 }
 0x19e   :  { %6593 = vmatprep.mubr.msk.f32.mxu0 %vm48_vm4, %v8413_v51 }
 0x1a1   :  { %6594 = vmatmul.mubr.msk.f32.gmra.mrb[36].mxu0 %vm48_vm4, %v8417_v52 }
 0x1a2   :  { %6596 = vmatprep.mubr.msk.f32.mxu0 %vm48_vm4, %v8421_v54 }
 0x1a5   :  { %6597 = vmatmul.mubr.msk.f32.gmra.mrb[38].mxu0 %vm48_vm4, %v8539_v34 }
 0x1a6   :  { %6607 = vmatprep.mubr.msk.f32.mxu0 %vm48_vm4, %v8177_v55  ;;  %v8569_v55 = vld [vmem:[#allocation2 + $0x81] sm:$0xff] }
 0x1a9   :  { %6608 = vmatmul.mubr.msk.f32.vlgmr.msra.gmra.mrb[24].mxu0 %vm48_vm4, %v8217_v46 }
 0x1aa   :  { %6610 = vmatprep.mubr.msk.f32.mxu0 %vm48_vm4, %v8242_v17  ;;  %7024 = vmatpush3.bf16.msra.mxu0 %v7021_v31 }
 0x1ab   :  { %7026 = vmatprep.subr.bf16.mxu0 %v7025_v37 }
 0x1ad   :  { %6611 = vmatmul.mubr.msk.f32.gmra.mrb[26].mxu0 %vm48_vm4, %v8269_v62 }
 0x1ae   :  { %6613 = vmatprep.mubr.msk.f32.mxu0 %vm48_vm4, %v8262_v50  ;;  %7028 = vmatpush3.bf16.msra.mxu0 %v7025_v37 }
 0x1af   :  { %7030 = vmatprep.subr.bf16.mxu0 %v7029_v43 }
 0x1b1   :  { %6614 = vmatmul.mubr.msk.f32.gmra.mrb[28].mxu0 %vm48_vm4, %v8271_v63 }
 0x1b2   :  { %6616 = vmatprep.mubr.msk.f32.mxu0 %vm48_vm4, %v8316_v7 }
 0x1b5   :  { %6617 = vmatmul.mubr.msk.f32.gmra.mrb[30].mxu0 %vm48_vm4, %v8569_v55 }
 0x1b6   :  { %6619 = vmatprep.mubr.msk.f32.mxu0 %vm48_vm4, %v8322_v20  ;;  %v5801_v20 = vld [vmem:[%s9758_s4 + $0xd0] sm:$0xff] }
 0x1b7   :  { %v7033_v56 = vpack.c.bf16 %v5802_v53, %v5801_v20 }
 0x1b9   :  { %6620 = vmatmul.mubr.msk.f32.gmra.mrb[32].mxu0 %vm48_vm4, %v8327_v14 }
 0x1ba   :  { %6622 = vmatprep.mubr.msk.f32.mxu0 %vm48_vm4, %v8332_v22 }
 0x1bd   :  { %6623 = vmatmul.mubr.msk.f32.gmra.mrb[34].mxu0 %vm48_vm4, %v8336_v24 }
 0x1be   :  { %6625 = vmatprep.mubr.msk.f32.mxu0 %vm48_vm4, %v8341_v25 }
 0x1c1   :  { %6626 = vmatmul.mubr.msk.f32.gmra.mrb[36].mxu0 %vm48_vm4, %v8345_v28 }
 0x1c2   :  { %6628 = vmatprep.mubr.msk.f32.mxu0 %vm48_vm4, %v8349_v32 }
 0x1c5   :  { %6629 = vmatmul.mubr.msk.f32.gmra.mrb[38].mxu0 %vm48_vm4, %v8587_v45 }
 0x1c6   :  { %6639 = vmatprep.mubr.msk.f32.mxu0 %vm48_vm4, %v8432_v59  ;;  %v8617_v59 = vld [vmem:[#allocation2 + $0x82] sm:$0xff] }
 0x1c9   :  { %6640 = vmatmul.mubr.msk.f32.vlgmr.msra.gmra.mrb[24].mxu0 %vm48_vm4, %v8442_v0 }
 0x1ca   :  { %6642 = vmatprep.mubr.msk.f32.mxu0 %vm48_vm4, %v8446_v2  ;;  %7032 = vmatpush3.bf16.msra.mxu0 %v7029_v43 }
 0x1cb   :  { %7034 = vmatprep.subr.bf16.mxu0 %v7033_v56 }
 0x1cd   :  { %6643 = vmatmul.mubr.msk.f32.gmra.mrb[26].mxu0 %vm48_vm4, %v8450_v21 }
 0x1ce   :  { %6645 = vmatprep.mubr.msk.f32.mxu0 %vm48_vm4, %v8454_v3  ;;  %7036 = vmatpush3.bf16.msra.mxu0 %v7033_v56 }
 0x1cf   :  { %7038 = vmatprep.subr.bf16.mxu0 %v7037_v60 }
 0x1d1   :  { %6646 = vmatmul.mubr.msk.f32.gmra.mrb[28].mxu0 %vm48_vm4, %v8458_v4 }
 0x1d2   :  { %6648 = vmatprep.mubr.msk.f32.mxu0 %vm48_vm4, %v8462_v6 }
 0x1d5   :  { %6649 = vmatmul.mubr.msk.f32.gmra.mrb[30].mxu0 %vm48_vm4, %v8617_v59 }
 0x1d6   :  { %6651 = vmatprep.mubr.msk.f32.mxu0 %vm48_vm4, %v8467_v23  ;;  %v7041_v23 = vpack.c.bf16 %v5822_v5, %v5821_v1 }
 0x1d9   :  { %6652 = vmatmul.mubr.msk.f32.gmra.mrb[32].mxu0 %vm48_vm4, %v8471_v8 }
 0x1da   :  { %6654 = vmatprep.mubr.msk.f32.mxu0 %vm48_vm4, %v8475_v11 }
 0x1dd   :  { %6655 = vmatmul.mubr.msk.f32.gmra.mrb[34].mxu0 %vm48_vm4, %v8479_v12 }
 0x1de   :  { %6657 = vmatprep.mubr.msk.f32.mxu0 %vm48_vm4, %v8483_v13 }
 0x1e1   :  { %6658 = vmatmul.mubr.msk.f32.gmra.mrb[36].mxu0 %vm48_vm4, %v8487_v15 }
 0x1e2   :  { %6660 = vmatprep.mubr.msk.f32.mxu0 %vm48_vm4, %v8491_v16 }
 0x1e5   :  { %6661 = vmatmul.mubr.msk.f32.gmra.mrb[38].mxu0 %vm48_vm4, %v8635_v61 }
 0x1e6   :  { %6671 = vmatprep.mubr.msk.f32.mxu0 %vm48_vm4, %v8371_v39  ;;  %v2893_v39 = vld [vmem:[#allocation2 + $0x90] sm:$0xff] }
 0x1e9   :  { %6672 = vmatmul.mubr.msk.f32.vlgmr.msra.gmra.mrb[24].mxu0 %vm48_vm4, %v8376_v41  ;;  %v2901_v41 = vld [vmem:[#allocation2 + $0x130] sm:$0xff] }
 0x1ea   :  { %6674 = vmatprep.mubr.msk.f32.mxu0 %vm48_vm4, %v8380_v42  ;;  %7040 = vmatpush3.bf16.msra.mxu0 %v7037_v60  ;;  %v5841_v42 = vld [vmem:[%s9758_s4 + $0x110] sm:$0xff] }
 0x1eb   :  { %7042 = vmatprep.subr.bf16.mxu0 %v7041_v23 }
 0x1ed   :  { %6675 = vmatmul.mubr.msk.f32.gmra.mrb[26].mxu0 %vm48_vm4, %v8384_v26  ;;  %v5842_v26 = vld [vmem:[%s9758_s4 + $0x118] sm:$0xff] }
 0x1ee   :  { %6677 = vmatprep.mubr.msk.f32.mxu0 %vm48_vm4, %v8388_v9  ;;  %7044 = vmatpush3.bf16.msra.mxu0 %v7041_v23  ;;  %v7049_v9 = vpack.c.bf16 %v5842_v26, %v5841_v42 }
 0x1ef   :  { %7046 = vmatprep.subr.bf16.mxu0 %v7045_v27 }
 0x1f1   :  { %6678 = vmatmul.mubr.msk.f32.gmra.mrb[28].mxu0 %vm48_vm4, %v8392_v44  ;;  %v5866_v44 = vld [vmem:[%s9761_s7 + $0x68] sm:$0xff] }
 0x1f2   :  { %6680 = vmatprep.mubr.msk.f32.mxu0 %vm48_vm4, %v8521_v33 }
 0x1f5   :  { %6681 = vmatmul.mubr.msk.f32.gmra.mrb[30].mxu0 %vm48_vm4, %v2893_v39 }
 0x1f6   :  { %6683 = vmatprep.mubr.msk.f32.mxu0 %vm48_vm4, %v8401_v47 }
 0x1f9   :  { %6684 = vmatmul.mubr.msk.f32.gmra.mrb[32].mxu0 %vm48_vm4, %v8405_v48  ;;  %v5867_v48 = vld [vmem:[%s9761_s7 + $0x70] sm:$0xff] }
 0x1fa   :  { %6686 = vmatprep.mubr.msk.f32.mxu0 %vm48_vm4, %v8409_v49  ;;  %v5868_v49 = vld [vmem:[%s9761_s7 + $0x78] sm:$0xff] }
 0x1fd   :  { %6687 = vmatmul.mubr.msk.f32.gmra.mrb[34].mxu0 %vm48_vm4, %v8413_v51  ;;  %v7065_v51 = vpack.c.bf16 %v5868_v49, %v5867_v48 }
 0x1fe   :  { %6689 = vmatprep.mubr.msk.f32.mxu0 %vm48_vm4, %v8417_v52  ;;  %v3740_v52 = vld [vmem:[#allocation3 + $0x30] sm:$0xf] }
 0x1ff   :  { %3742 = vst.msk [vmem:[#allocation10 + $0x10] sm:$0xf] %vm3709_vm7, %v3740_v52 }
 0x201   :  { %6690 = vmatmul.mubr.msk.f32.gmra.mrb[36].mxu0 %vm48_vm4, %v8421_v54  ;;  %v3759_v54 = vld [vmem:[%s9761_s7] sm:$0xff] }
 0x202   :  { %6692 = vmatprep.mubr.msk.f32.mxu0 %vm48_vm4, %v8539_v34 }
 0x205   :  { %6693 = vmatmul.mubr.msk.f32.gmra.mrb[38].mxu0 %vm48_vm4, %v2901_v41 }
 0x206   :  { %6703 = vmatprep.mubr.msk.f32.mxu0 %vm48_vm4, %v8217_v46  ;;  %v3123_v46 = vld [vmem:[#allocation2 + $0x91] sm:$0xff] }
 0x209   :  { %6704 = vmatmul.mubr.msk.f32.vlgmr.msra.gmra.mrb[24].mxu0 %vm48_vm4, %v8242_v17  ;;  %v3131_v17 = vld [vmem:[#allocation2 + $0x131] sm:$0xff] }
 0x20a   :  { %6706 = vmatprep.mubr.msk.f32.mxu0 %vm48_vm4, %v8269_v62  ;;  %7048 = vmatpush3.bf16.msra.mxu0 %v7045_v27  ;;  %v3361_v62 = vld [vmem:[#allocation2 + $0x132] sm:$0xff] }
 0x20b   :  { %7050 = vmatprep.subr.bf16.mxu0 %v7049_v9 }
 0x20d   :  { %6707 = vmatmul.mubr.msk.f32.gmra.mrb[26].mxu0 %vm48_vm4, %v8262_v50  ;;  %v3353_v50 = vld [vmem:[#allocation2 + $0x92] sm:$0xff] }
 0x20e   :  { %6709 = vmatprep.mubr.msk.f32.mxu0 %vm48_vm4, %v8271_v63  ;;  %7052 = vmatpush3.bf16.msra.mxu0 %v7049_v9  ;;  %v3739_v63 = vld [vmem:[#allocation3] sm:$0xf] }
 0x20f   :  { %3741 = vst.msk [vmem:[#allocation10] sm:$0xf] %vm3709_vm7, %v3739_v63 }
 0x211   :  { %6710 = vmatmul.mubr.msk.f32.gmra.mrb[28].mxu0 %vm48_vm4, %v8316_v7  ;;  %v5861_v7 = vld [vmem:[%s9761_s7 + $0x40] sm:$0xff] }
 0x212   :  { %6712 = vmatprep.mubr.msk.f32.mxu0 %vm48_vm4, %v8569_v55 }
 0x215   :  { %6713 = vmatmul.mubr.msk.f32.gmra.mrb[30].mxu0 %vm48_vm4, %v3123_v46 }
 0x216   :  { %6715 = vmatprep.mubr.msk.f32.mxu0 %vm48_vm4, %v8327_v14  ;;  %v5862_v14 = vld [vmem:[%s9761_s7 + $0x48] sm:$0xff] }
 0x219   :  { %6716 = vmatmul.mubr.msk.f32.gmra.mrb[32].mxu0 %vm48_vm4, %v8332_v22  ;;  %v7053_v22 = vpack.c.bf16 %v5862_v14, %v5861_v7 }
 0x21a   :  { %6718 = vmatprep.mubr.msk.f32.mxu0 %vm48_vm4, %v8336_v24  ;;  %v5863_v24 = vld [vmem:[%s9761_s7 + $0x50] sm:$0xff] }
 0x21b   :  { %7054 = vmatprep.subr.bf16.mxu1 %v7053_v22 }
 0x21c   :  { %7056 = vmatpush3.bf16.msra.mxu1 %v7053_v22 }
 0x21d   :  { %6719 = vmatmul.mubr.msk.f32.gmra.mrb[34].mxu0 %vm48_vm4, %v8341_v25  ;;  %v5864_v25 = vld [vmem:[%s9761_s7 + $0x58] sm:$0xff] }
 0x21e   :  { %6721 = vmatprep.mubr.msk.f32.mxu0 %vm48_vm4, %v8345_v28  ;;  %v7057_v28 = vpack.c.bf16 %v5864_v25, %v5863_v24 }
 0x220   :  { %7058 = vmatprep.subr.bf16.mxu1 %v7057_v28 }
 0x221   :  { %6722 = vmatmul.mubr.msk.f32.gmra.mrb[36].mxu0 %vm48_vm4, %v8349_v32  ;;  %7060 = vmatpush3.bf16.msra.mxu1 %v7057_v28  ;;  %v5865_v32 = vld [vmem:[%s9761_s7 + $0x60] sm:$0xff] }
 0x222   :  { %6724 = vmatprep.mubr.msk.f32.mxu0 %vm48_vm4, %v8587_v45  ;;  %v7061_v47 = vpack.c.bf16 %v5866_v44, %v5865_v32 }
 0x224   :  { %7062 = vmatprep.subr.bf16.mxu1 %v7061_v47 }
 0x225   :  { %6725 = vmatmul.mubr.msk.f32.gmra.mrb[38].mxu0 %vm48_vm4, %v3131_v17  ;;  %7064 = vmatpush3.bf16.msra.mxu1 %v7061_v47 }
 0x226   :  { %6735 = vmatprep.mubr.msk.f32.mxu0 %vm48_vm4, %v8442_v0  ;;  %7066 = vmatprep.subr.bf16.mxu1 %v7065_v51  ;;  %v3760_v0 = vld [vmem:[%s9761_s7 + $0x8] sm:$0xff] }
 0x229   :  { %6736 = vmatmul.mubr.msk.f32.vlgmr.msra.gmra.mrb[24].mxu0 %vm48_vm4, %v8446_v2  ;;  %v8791_v2 = vpack.c.bf16 %v3760_v0, %v3759_v54  ;;  %7068 = vmatpush3.bf16.msra.mxu1 %v7065_v51 }
 0x22a   :  { %6738 = vmatprep.mubr.msk.f32.mxu0 %vm48_vm4, %v8450_v21  ;;  %v8797_v21 = vld [vmem:[%s9759_s5] ss:$0 sm:$0xff] }
 0x22b   :  { %7070 = vmatprep.subr.bf16.mxu1 %v8791_v2 }
 0x22d   :  { %6739 = vmatmul.mubr.msk.f32.gmra.mrb[26].mxu0 %vm48_vm4, %v8454_v3 }
 0x22e   :  { %6741 = vmatprep.mubr.msk.f32.mxu0 %vm48_vm4, %v8458_v4  ;;  %v8802_v4 = vld [vmem:[%s9760_s6] ss:$0 sm:$0xff] }
 0x231   :  { %6742 = vmatmul.mubr.msk.f32.gmra.mrb[28].mxu0 %vm48_vm4, %v8462_v6 }
 0x232   :  { %6744 = vmatprep.mubr.msk.f32.mxu0 %vm48_vm4, %v8617_v59 }
 0x235   :  { %6745 = vmatmul.mubr.msk.f32.gmra.mrb[30].mxu0 %vm48_vm4, %v3353_v50 }
 0x236   :  { %6747 = vmatprep.mubr.msk.f32.mxu0 %vm48_vm4, %v8471_v8 }
 0x239   :  { %6748 = vmatmul.mubr.msk.f32.gmra.mrb[32].mxu0 %vm48_vm4, %v8475_v11 }
 0x23a   :  { %6750 = vmatprep.mubr.msk.f32.mxu0 %vm48_vm4, %v8479_v12 }
 0x23d   :  { %6751 = vmatmul.mubr.msk.f32.gmra.mrb[34].mxu0 %vm48_vm4, %v8483_v13 }
 0x23e   :  { %6753 = vmatprep.mubr.msk.f32.mxu0 %vm48_vm4, %v8487_v15 }
 0x241   :  { %6754 = vmatmul.mubr.msk.f32.gmra.mrb[36].mxu0 %vm48_vm4, %v8491_v16 }
 0x242   :  { %6756 = vmatprep.mubr.msk.f32.mxu0 %vm48_vm4, %v8635_v61 }
 0x245   :  { %6757 = vmatmul.mubr.msk.f32.gmra.mrb[38].mxu0 %vm48_vm4, %v3361_v62 }
 0x2fc   :  { %v6737_v3 = vpop.f32.mrb[24].mxu0 }
 0x2fd   :  { %v3584_v6 = vmul.f32 %v6737_v3, %v8797_v21  ;;  %v3481_v8 = vpop.f32.mrb[25].mxu0 }
 0x2fe   :  { %v3583_v11 = vmul.f32 %v8797_v21, %v3481_v8 }
 0x2ff   :  { %v3607_v12 = vadd.f32 %v8802_v4, %v3584_v6 }
 0x300   :  { %v3606_v13 = vadd.f32 %v8802_v4, %v3583_v11  ;;  %v6740_v15 = vpop.f32.mrb[26].mxu0 }
 0x301   :  { %v3623_v16 = vmax.f32 %v3607_v12, 0.0  ;;  %v3586_v29 = vmul.f32 %v6740_v15, %v8797_v21  ;;  %v3491_v30 = vpop.f32.mrb[27].mxu0 }
 0x302   :  { %v3622_v31 = vmax.f32 %v3606_v13, 0.0  ;;  %v3585_v33 = vmul.f32 %v8797_v21, %v3491_v30 }
 0x303   :  { %3640 = vst.msk [vmem:[#allocation6 + $0x8] sm:$0xff] %vm3638_vm8, %v3623_v16  ;;  %v3609_v34 = vadd.f32 %v8802_v4, %v3586_v29 }
 0x304   :  { %3639 = vst.msk [vmem:[#allocation6] sm:$0xff] %vm3638_vm8, %v3622_v31  ;;  %v3608_v35 = vadd.f32 %v8802_v4, %v3585_v33  ;;  %v6743_v36 = vpop.f32.mrb[28].mxu0 }
 0x305   :  { %v3625_v37 = vmax.f32 %v3609_v34, 0.0  ;;  %v3588_v38 = vmul.f32 %v6743_v36, %v8797_v21  ;;  %v3501_v40 = vpop.f32.mrb[29].mxu0 }
 0x306   :  { %v3624_v43 = vmax.f32 %v3608_v35, 0.0  ;;  %v3587_v55 = vmul.f32 %v8797_v21, %v3501_v40 }
 0x307   :  { %3642 = vst.msk [vmem:[#allocation6 + $0x18] sm:$0xff] %vm3638_vm8, %v3625_v37  ;;  %v3611_v45 = vadd.f32 %v8802_v4, %v3588_v38 }
 0x308   :  { %3641 = vst.msk [vmem:[#allocation6 + $0x10] sm:$0xff] %vm3638_vm8, %v3624_v43  ;;  %v3610_v20 = vadd.f32 %v8802_v4, %v3587_v55  ;;  %v6746_v53 = vpop.f32.mrb[30].mxu0 }
 0x309   :  { %v3627_v56 = vmax.f32 %v3611_v45, 0.0  ;;  %v3590_v57 = vmul.f32 %v6746_v53, %v8797_v21  ;;  %v3511_v58 = vpop.f32.mrb[31].mxu0 }
 0x30a   :  { %v3626_v60 = vmax.f32 %v3610_v20, 0.0  ;;  %v3589_v59 = vmul.f32 %v8797_v21, %v3511_v58 }
 0x30b   :  { %v3655_v61 = vld [vmem:[#allocation6] ss:$2 sm:$0xff]  ;;  %v3671_v1 = vld [vmem:[#allocation6 + $0x1] ss:$2 sm:$0xff]  ;;  %3644 = vst.msk [vmem:[#allocation6 + $0x28] sm:$0xff] %vm3638_vm8, %v3627_v56  ;;  %v3613_v5 = vadd.f32 %v8802_v4, %v3590_v57 }
 0x30c   :  { %v3686_v23 = vmax.f32 %v3655_v61, %v3671_v1  ;;  %3643 = vst.msk [vmem:[#allocation6 + $0x20] sm:$0xff] %vm3638_vm8, %v3626_v60  ;;  %v3612_v18 = vadd.f32 %v8802_v4, %v3589_v59  ;;  %v6749_v19 = vpop.f32.mrb[32].mxu0 }
 0x30d   :  { %v3629_v27 = vmax.f32 %v3613_v5, 0.0  ;;  %v3592_v39 = vmul.f32 %v6749_v19, %v8797_v21  ;;  %v3521_v41 = vpop.f32.mrb[33].mxu0 }
 0x30e   :  { %3694 = vst.msk [vmem:[#allocation7] sm:$0xff] %vm3638_vm8, %v3686_v23  ;;  %v3628_v42 = vmax.f32 %v3612_v18, 0.0  ;;  %v3591_v26 = vmul.f32 %v8797_v21, %v3521_v41 }
 0x30f   :  { %v3657_v9 = vld [vmem:[#allocation6 + $0x10] ss:$2 sm:$0xff]  ;;  %v3673_v46 = vld [vmem:[#allocation6 + $0x11] ss:$2 sm:$0xff]  ;;  %3646 = vst.msk [vmem:[#allocation6 + $0x38] sm:$0xff] %vm3638_vm8, %v3629_v27  ;;  %v3615_v17 = vadd.f32 %v8802_v4, %v3592_v39 }
 0x310   :  { %v3687_v50 = vmax.f32 %v3657_v9, %v3673_v46  ;;  %3645 = vst.msk [vmem:[#allocation6 + $0x30] sm:$0xff] %vm3638_vm8, %v3628_v42  ;;  %v3614_v62 = vadd.f32 %v8802_v4, %v3591_v26  ;;  %v6752_v63 = vpop.f32.mrb[34].mxu0  ;;  %v3767_v9 = vld [vmem:[#allocation3 + $0x1] sm:$0xf] }
 0x311   :  { %v3631_v7 = vmax.f32 %v3615_v17, 0.0  ;;  %v3594_v14 = vmul.f32 %v6752_v63, %v8797_v21  ;;  %v3531_v22 = vpop.f32.mrb[35].mxu0 }
 0x312   :  { %3695 = vst.msk [vmem:[#allocation7 + $0x8] sm:$0xff] %vm3638_vm8, %v3687_v50  ;;  %v3630_v24 = vmax.f32 %v3614_v62, 0.0  ;;  %v3593_v25 = vmul.f32 %v8797_v21, %v3531_v22 }
 0x313   :  { %v3659_v28 = vld [vmem:[#allocation6 + $0x20] ss:$2 sm:$0xff]  ;;  %v3675_v32 = vld [vmem:[#allocation6 + $0x21] ss:$2 sm:$0xff]  ;;  %3648 = vst.msk [vmem:[#allocation6 + $0x48] sm:$0xff] %vm3638_vm8, %v3631_v7  ;;  %v3617_v44 = vadd.f32 %v8802_v4, %v3594_v14 }
 0x314   :  { %v3688_v47 = vmax.f32 %v3659_v28, %v3675_v32  ;;  %3647 = vst.msk [vmem:[#allocation6 + $0x40] sm:$0xff] %vm3638_vm8, %v3630_v24  ;;  %v3616_v48 = vadd.f32 %v8802_v4, %v3593_v25  ;;  %v6755_v49 = vpop.f32.mrb[36].mxu0 }
 0x315   :  { %v3702_v51 = vld [vmem:[#allocation7] sm:$0xf]  ;;  %v3704_v52 = vld [vmem:[#allocation7 + $0x4] sm:$0xf]  ;;  %v3633_v54 = vmax.f32 %v3617_v44, 0.0  ;;  %v3596_v0 = vmul.f32 %v6755_v49, %v8797_v21  ;;  %v3541_v3 = vpop.f32.mrb[37].mxu0 }
 0x316   :  { %v3706_v6 = vmax.f32 %v3702_v51, %v3704_v52  ;;  %3696 = vst.msk [vmem:[#allocation7 + $0x10] sm:$0xff] %vm3638_vm8, %v3688_v47  ;;  %v3632_v8 = vmax.f32 %v3616_v48, 0.0  ;;  %v3595_v11 = vmul.f32 %v8797_v21, %v3541_v3  ;;  %v3990_v44 = vld [vmem:[#allocation3 + $0x2] sm:$0xf] }
 0x317   :  { %v3661_v12 = vld [vmem:[#allocation6 + $0x30] ss:$2 sm:$0xff]  ;;  %v3677_v13 = vld [vmem:[#allocation6 + $0x31] ss:$2 sm:$0xff]  ;;  %3650 = vst.msk [vmem:[#allocation6 + $0x58] sm:$0xff] %vm3638_vm8, %v3633_v54  ;;  %v3619_v15 = vadd.f32 %v8802_v4, %v3596_v0 }
 0x318   :  { %3710 = vst.msk [vmem:[#allocation3 + $0x9] sm:$0xf] %vm3709_vm7, %v3706_v6  ;;  %v3689_v16 = vmax.f32 %v3661_v12, %v3677_v13  ;;  %v3618_v29 = vadd.f32 %v8802_v4, %v3595_v11  ;;  %v6758_v30 = vpop.f32.mrb[38].mxu0  ;;  %v3761_v12 = vld [vmem:[%s9761_s7 + $0x10] sm:$0xff]  ;;  %v3762_v13 = vld [vmem:[%s9761_s7 + $0x18] sm:$0xff] }
 0x319   :  { %3649 = vst.msk [vmem:[#allocation6 + $0x50] sm:$0xff] %vm3638_vm8, %v3632_v8  ;;  %v3712_v31 = vld [vmem:[#allocation7 + $0x8] sm:$0xf]  ;;  %v3714_v33 = vld [vmem:[#allocation7 + $0xc] sm:$0xf]  ;;  %v3635_v34 = vmax.f32 %v3619_v15, 0.0  ;;  %v3598_v35 = vmul.f32 %v6758_v30, %v8797_v21 }
 0x31a   :  { %v3551_v36 = vpop.f32.mrb[39].mxu0  ;;  %v3716_v37 = vmax.f32 %v3712_v31, %v3714_v33  ;;  %3697 = vst.msk [vmem:[#allocation7 + $0x18] sm:$0xff] %vm3638_vm8, %v3689_v16  ;;  %v3634_v38 = vmax.f32 %v3618_v29, 0.0  ;;  %v3768_v15 = vld [vmem:[#allocation3 + $0x31] sm:$0xf]  ;;  %v3763_v16 = vld [vmem:[%s9761_s7 + $0x20] sm:$0xff] }
 0x31b   :  { %v3597_v40 = vmul.f32 %v8797_v21, %v3551_v36  ;;  %v3663_v43 = vld [vmem:[#allocation6 + $0x40] ss:$2 sm:$0xff]  ;;  %v3679_v55 = vld [vmem:[#allocation6 + $0x41] ss:$2 sm:$0xff]  ;;  %3652 = vst.msk [vmem:[#allocation6 + $0x68] sm:$0xff] %vm3638_vm8, %v3635_v34  ;;  %v3621_v45 = vadd.f32 %v8802_v4, %v3598_v35  ;;  %v7073_v34 = vpack.c.bf16 %v3762_v13, %v3761_v12 }
 0x31c   :  { %3719 = vst.msk [vmem:[#allocation3 + $0x11] sm:$0xf] %vm3709_vm7, %v3716_v37  ;;  %v3690_v20 = vmax.f32 %v3663_v43, %v3679_v55  ;;  %v3764_v29 = vld [vmem:[%s9761_s7 + $0x28] sm:$0xff] }
 0x31d   :  { %3651 = vst.msk [vmem:[#allocation6 + $0x60] sm:$0xff] %vm3638_vm8, %v3634_v38  ;;  %v3620_v53 = vadd.f32 %v8802_v4, %v3597_v40  ;;  %v3721_v56 = vld [vmem:[#allocation7 + $0x10] sm:$0xf]  ;;  %v3723_v57 = vld [vmem:[#allocation7 + $0x14] sm:$0xf]  ;;  %v3637_v58 = vmax.f32 %v3621_v45, 0.0  ;;  %v7077_v55 = vpack.c.bf16 %v3764_v29, %v3763_v16 }
 0x31e   :  { %v3725_v60 = vmax.f32 %v3721_v56, %v3723_v57  ;;  %3698 = vst.msk [vmem:[#allocation7 + $0x20] sm:$0xff] %vm3638_vm8, %v3690_v20  ;;  %v3765_v45 = vld [vmem:[%s9761_s7 + $0x30] sm:$0xff]  ;;  %v3766_v20 = vld [vmem:[%s9761_s7 + $0x38] sm:$0xff]  ;;  %v5877_v57 = vld [vmem:[%s9761_s7 + $0x80] sm:$0xff] }
 0x31f   :  { %v3636_v21 = vmax.f32 %v3620_v53, 0.0  ;;  %3654 = vst.msk [vmem:[#allocation6 + $0x78] sm:$0xff] %vm3638_vm8, %v3637_v58  ;;  %v3743_v1 = vld [vmem:[#allocation3 + $0x8] sm:$0xf]  ;;  %v3991_v53 = vld [vmem:[#allocation3 + $0x32] sm:$0xf] }
 0x320   :  { %v3665_v59 = vld [vmem:[#allocation6 + $0x50] ss:$2 sm:$0xff]  ;;  %v3681_v61 = vld [vmem:[#allocation6 + $0x51] ss:$2 sm:$0xff]  ;;  %3728 = vst.msk [vmem:[#allocation3 + $0x19] sm:$0xf] %vm3709_vm7, %v3725_v60 }
 0x321   :  { %v3691_v5 = vmax.f32 %v3665_v59, %v3681_v61  ;;  %3653 = vst.msk [vmem:[#allocation6 + $0x70] sm:$0xff] %vm3638_vm8, %v3636_v21  ;;  %v3730_v4 = vld [vmem:[#allocation7 + $0x18] sm:$0xf]  ;;  %v3732_v23 = vld [vmem:[#allocation7 + $0x1c] sm:$0xf]  ;;  %v5889_v29 = vld [vmem:[%s9761_s7 + $0xc0] sm:$0xff] }
 0x322   :  { %3745 = vst.msk [vmem:[#allocation10 + $0x4] sm:$0xf] %vm3709_vm7, %v3743_v1  ;;  %v3734_v18 = vmax.f32 %v3730_v4, %v3732_v23  ;;  %v3771_v17 = vld [vmem:[#allocation3 + $0x9] sm:$0xf]  ;;  %v7081_v1 = vpack.c.bf16 %v3766_v20, %v3765_v45 }
 0x323   :  { %3699 = vst.msk [vmem:[#allocation7 + $0x28] sm:$0xff] %vm3638_vm8, %v3691_v5  ;;  %v3747_v39 = vld [vmem:[#allocation3 + $0x10] sm:$0xf]  ;;  %v3994_v51 = vld [vmem:[#allocation3 + $0xa] sm:$0xf] }
 0x324   :  { %v3667_v19 = vld [vmem:[#allocation6 + $0x60] ss:$2 sm:$0xff]  ;;  %v3683_v27 = vld [vmem:[#allocation6 + $0x61] ss:$2 sm:$0xff]  ;;  %3737 = vst.msk [vmem:[#allocation3 + $0x21] sm:$0xf] %vm3709_vm7, %v3734_v18 }
 0x325   :  { %v3692_v41 = vmax.f32 %v3667_v19, %v3683_v27  ;;  %3749 = vst.msk [vmem:[#allocation10 + $0x8] sm:$0xf] %vm3709_vm7, %v3747_v39  ;;  %v3703_v42 = vld [vmem:[#allocation7 + $0x20] sm:$0xf]  ;;  %v3705_v26 = vld [vmem:[#allocation7 + $0x24] sm:$0xf] }
 0x326   :  { %v3707_v46 = vmax.f32 %v3703_v42, %v3705_v26  ;;  %v3775_v54 = vld [vmem:[#allocation3 + $0x11] sm:$0xf]  ;;  %v4120_v31 = vld [vmem:[#allocation3 + $0x8] sm:$0xf] }
 0x327   :  { %3700 = vst.msk [vmem:[#allocation7 + $0x30] sm:$0xff] %vm3638_vm8, %v3692_v41  ;;  %v3751_v14 = vld [vmem:[#allocation3 + $0x18] sm:$0xf]  ;;  %v3998_v30 = vld [vmem:[#allocation3 + $0x12] sm:$0xf] }
 0x328   :  { %v3669_v50 = vld [vmem:[#allocation6 + $0x70] ss:$2 sm:$0xff]  ;;  %v3685_v62 = vld [vmem:[#allocation6 + $0x71] ss:$2 sm:$0xff]  ;;  %3711 = vst.msk [vmem:[#allocation3 + $0x39] sm:$0xf] %vm3709_vm7, %v3707_v46 }
 0x329   :  { %v8865_v63 = vld [vmem:[#allocation10] sm:$0xff]  ;;  %v3693_v7 = vmax.f32 %v3669_v50, %v3685_v62  ;;  %3753 = vst.msk [vmem:[#allocation10 + $0xc] sm:$0xf] %vm3709_vm7, %v3751_v14  ;;  %v3779_v0 = vld [vmem:[#allocation3 + $0x19] sm:$0xf] }
 0x32a   :  { %3769 = vst.msk [vmem:[#allocation10] sm:$0xf] %vm3709_vm7, %v3767_v9  ;;  %3773 = vst.msk [vmem:[#allocation10 + $0x4] sm:$0xf] %vm3709_vm7, %v3771_v17  ;;  %v3713_v22 = vld [vmem:[#allocation7 + $0x28] sm:$0xf] }
 0x32b   :  { %v3715_v24 = vld [vmem:[#allocation7 + $0x2c] sm:$0xf]  ;;  %3701 = vst.msk [vmem:[#allocation7 + $0x38] sm:$0xff] %vm3638_vm8, %v3693_v7  ;;  %v4124_v33 = vld [vmem:[#allocation3 + $0x10] sm:$0xf]  ;;  %v5880_v41 = vld [vmem:[%s9761_s7 + $0x98] sm:$0xff] }
 0x32c   :  { %v3717_v25 = vmax.f32 %v3713_v22, %v3715_v24  ;;  %v4002_v43 = vld [vmem:[#allocation3 + $0x1a] sm:$0xf]  ;;  %v4250_v21 = vld [vmem:[#allocation3 + $0x9] sm:$0xf]  ;;  %v4254_v59 = vld [vmem:[#allocation3 + $0x11] sm:$0xf] }
 0x32d   :  { %v4128_v60 = vld [vmem:[#allocation3 + $0x18] sm:$0xf]  ;;  %v4132_v19 = vld [vmem:[#allocation3 + $0x20] sm:$0xf]  ;;  %v5879_v39 = vld [vmem:[%s9761_s7 + $0x90] sm:$0xff] }
 0x32e   :  { %3720 = vst.msk [vmem:[#allocation3 + $0x41] sm:$0xf] %vm3709_vm7, %v3717_v25  ;;  %v3722_v28 = vld [vmem:[#allocation7 + $0x30] sm:$0xf]  ;;  %v3724_v32 = vld [vmem:[#allocation7 + $0x34] sm:$0xf] }
 0x32f   :  { %v3726_v47 = vmax.f32 %v3722_v28, %v3724_v32  ;;  %v3744_v49 = vld [vmem:[#allocation3 + $0x38] sm:$0xf]  ;;  %v4380_v46 = vld [vmem:[#allocation3 + $0xa] sm:$0xf]  ;;  %v4384_v17 = vld [vmem:[#allocation3 + $0x12] sm:$0xf]  ;;  %v7089_v28 = vpack.c.bf16 %v5880_v41, %v5879_v39 }
 0x330   :  { %v8875_v52 = vld [vmem:[#allocation10 + $0x8] sm:$0xff]  ;;  %3746 = vst.msk [vmem:[#allocation10 + $0x14] sm:$0xf] %vm3709_vm7, %v3744_v49  ;;  %v4262_v25 = vld [vmem:[#allocation3 + $0x21] sm:$0xf] }
 0x331   :  { %v3783_v48 = vld [vmem:[#allocation10] sm:$0xff]  ;;  %3729 = vst.msk [vmem:[#allocation3 + $0x49] sm:$0xf] %vm3709_vm7, %v3726_v47  ;;  %3777 = vst.msk [vmem:[#allocation10 + $0x8] sm:$0xf] %vm3709_vm7, %v3775_v54  ;;  %v5881_v32 = vld [vmem:[%s9761_s7 + $0xa0] sm:$0xff] }
 0x332   :  { %6775 = vmatprep.mubr.msk.f32.mxu1 %vm3638_vm8, %v3783_v48  ;;  %3992 = vst.msk [vmem:[#allocation10] sm:$0xf] %vm3709_vm7, %v3990_v44  ;;  %3996 = vst.msk [vmem:[#allocation10 + $0x4] sm:$0xf] %vm3709_vm7, %v3994_v51  ;;  %v3731_v3 = vld [vmem:[#allocation7 + $0x38] sm:$0xf] }
 0x333   :  { %v3733_v6 = vld [vmem:[#allocation7 + $0x3c] sm:$0xf]  ;;  %3781 = vst.msk [vmem:[#allocation10 + $0xc] sm:$0xf] %vm3709_vm7, %v3779_v0  ;;  %v4121_v26 = vld [vmem:[#allocation3 + $0x38] sm:$0xf] }
 0x334   :  { %v3735_v8 = vmax.f32 %v3731_v3, %v3733_v6  ;;  %v3772_v36 = vld [vmem:[#allocation3 + $0x39] sm:$0xf]  ;;  %v5882_v44 = vld [vmem:[%s9761_s7 + $0xa8] sm:$0xff]  ;;  %v4510_v3 = vld [vmem:[#allocation3 + $0x10] sm:$0xf] }
 0x335   :  { %v3748_v11 = vld [vmem:[#allocation3 + $0x40] sm:$0xf]  ;;  %v3995_v58 = vld [vmem:[#allocation3 + $0x3a] sm:$0xf]  ;;  %v7093_v48 = vpack.c.bf16 %v5882_v44, %v5881_v32  ;;  %v4783_v44 = vld [vmem:[#allocation3 + $0x2a] sm:$0xf] }
 0x336   :  { %3738 = vst.msk [vmem:[#allocation3 + $0x51] sm:$0xf] %vm3709_vm7, %v3735_v8  ;;  %3750 = vst.msk [vmem:[#allocation10 + $0x18] sm:$0xf] %vm3709_vm7, %v3748_v11  ;;  %v3776_v56 = vld [vmem:[#allocation3 + $0x41] sm:$0xf] }
 0x337   :  { %v8896_v35 = vld [vmem:[#allocation10 + $0x10] sm:$0xff]  ;;  %v4258_v50 = vld [vmem:[#allocation3 + $0x19] sm:$0xf] }
 0x338   :  { %v3752_v37 = vld [vmem:[#allocation3 + $0x48] sm:$0xf]  ;;  %3770 = vst.msk [vmem:[#allocation10 + $0x10] sm:$0xf] %vm3709_vm7, %v3768_v15  ;;  %3774 = vst.msk [vmem:[#allocation10 + $0x14] sm:$0xf] %vm3709_vm7, %v3772_v36 }
 0x339   :  { %3754 = vst.msk [vmem:[#allocation10 + $0x1c] sm:$0xf] %vm3709_vm7, %v3752_v37  ;;  %v8901_v40 = vld [vmem:[#allocation10] sm:$0xff]  ;;  %v3780_v4 = vld [vmem:[#allocation3 + $0x49] sm:$0xf]  ;;  %v5884_v47 = vld [vmem:[%s9761_s7 + $0xb8] sm:$0xff] }
 0x33a   :  { %v3784_v38 = vld [vmem:[#allocation10 + $0x8] sm:$0xff]  ;;  %4122 = vst.msk [vmem:[#allocation10] sm:$0xf] %vm3709_vm7, %v4120_v31  ;;  %4126 = vst.msk [vmem:[#allocation10 + $0x4] sm:$0xf] %vm3709_vm7, %v4124_v33  ;;  %v5891_v31 = vld [vmem:[%s9761_s7 + $0xd0] sm:$0xff] }
 0x33b   :  { %6776 = vmatmul.mubr.msk.f32.vlgmr.msra.gmra.mrb[40].mxu1 %vm3638_vm8, %v3784_v38  ;;  %4000 = vst.msk [vmem:[#allocation10 + $0x8] sm:$0xf] %vm3709_vm7, %v3998_v30  ;;  %4004 = vst.msk [vmem:[#allocation10 + $0xc] sm:$0xf] %vm3709_vm7, %v4002_v43  ;;  %v3999_v42 = vld [vmem:[#allocation3 + $0x42] sm:$0xf] }
 0x33c   :  { %7072 = vmatpush3.bf16.msra.mxu1 %v8791_v2  ;;  %v5878_v2 = vld [vmem:[%s9761_s7 + $0x88] sm:$0xff]  ;;  %v4125_v9 = vld [vmem:[#allocation3 + $0x40] sm:$0xf]  ;;  %v4388_v51 = vld [vmem:[#allocation3 + $0x1a] sm:$0xf] }
 0x33d   :  { %7074 = vmatprep.subr.bf16.mxu1 %v7073_v34  ;;  %v7085_v27 = vpack.c.bf16 %v5878_v2, %v5877_v57  ;;  %v4003_v14 = vld [vmem:[#allocation3 + $0x4a] sm:$0xf]  ;;  %v4251_v54 = vld [vmem:[#allocation3 + $0x39] sm:$0xf]  ;;  %v4255_v0 = vld [vmem:[#allocation3 + $0x41] sm:$0xf] }
 0x33e   :  { %v4129_v49 = vld [vmem:[#allocation3 + $0x48] sm:$0xf]  ;;  %v4133_v11 = vld [vmem:[#allocation3 + $0x50] sm:$0xf]  ;;  %v4392_v13 = vld [vmem:[#allocation3 + $0x22] sm:$0xf] }
 0x33f   :  { %v3785_v61 = vld [vmem:[#allocation10 + $0x10] sm:$0xff]  ;;  %v5890_v30 = vld [vmem:[%s9761_s7 + $0xc8] sm:$0xff]  ;;  %v5892_v33 = vld [vmem:[%s9761_s7 + $0xd8] sm:$0xff] }
 0x340   :  { %7076 = vmatpush3.bf16.msra.mxu1 %v7073_v34  ;;  %v3758_v5 = vld [vmem:[#allocation10 + $0x18] sm:$0xff]  ;;  %6778 = vmatprep.mubr.msk.f32.mxu1 %vm3638_vm8, %v3785_v61  ;;  %3993 = vst.msk [vmem:[#allocation10 + $0x10] sm:$0xf] %vm3709_vm7, %v3991_v53  ;;  %3997 = vst.msk [vmem:[#allocation10 + $0x14] sm:$0xf] %vm3709_vm7, %v3995_v58  ;;  %v7105_v2 = vpack.c.bf16 %v5892_v33, %v5891_v31  ;;  %v5893_v58 = vld [vmem:[%s9761_s7 + $0xe0] sm:$0xff] }
 0x341   :  { %7078 = vmatprep.subr.bf16.mxu1 %v7077_v55  ;;  %3778 = vst.msk [vmem:[#allocation10 + $0x18] sm:$0xf] %vm3709_vm7, %v3776_v56  ;;  %3782 = vst.msk [vmem:[#allocation10 + $0x1c] sm:$0xf] %vm3709_vm7, %v3780_v4  ;;  %v8928_v18 = vld [vmem:[#allocation10] sm:$0xff]  ;;  %v5913_v33 = vld [vmem:[%s9761_s7 + $0x140] sm:$0xff] }
 0x342   :  { %v8924_v23 = vld [vmem:[#allocation10 + $0x8] sm:$0xff]  ;;  %4252 = vst.msk [vmem:[#allocation10] sm:$0xf] %vm3709_vm7, %v4250_v21  ;;  %4256 = vst.msk [vmem:[#allocation10 + $0x4] sm:$0xf] %vm3709_vm7, %v4254_v59  ;;  %v5895_v21 = vld [vmem:[%s9761_s7 + $0xf0] sm:$0xff] }
 0x343   :  { %4130 = vst.msk [vmem:[#allocation10 + $0x8] sm:$0xf] %vm3709_vm7, %v4128_v60  ;;  %4134 = vst.msk [vmem:[#allocation10 + $0xc] sm:$0xf] %vm3709_vm7, %v4132_v19  ;;  %v4523_v34 = vld [vmem:[#allocation3 + $0x28] sm:$0xf] }
 0x344   :  { %7080 = vmatpush3.bf16.msra.mxu1 %v7077_v55  ;;  %v4381_v36 = vld [vmem:[#allocation3 + $0x3a] sm:$0xf]  ;;  %v4385_v37 = vld [vmem:[#allocation3 + $0x42] sm:$0xf]  ;;  %v4259_v38 = vld [vmem:[#allocation3 + $0x49] sm:$0xf] }
 0x345   :  { %7082 = vmatprep.subr.bf16.mxu1 %v7081_v1  ;;  %v4641_v43 = vld [vmem:[#allocation3 + $0x11] sm:$0xf]  ;;  %v4645_v57 = vld [vmem:[#allocation3 + $0x19] sm:$0xf]  ;;  %v5894_v60 = vld [vmem:[%s9761_s7 + $0xe8] sm:$0xff] }
 0x346   :  { %v4263_v20 = vld [vmem:[#allocation3 + $0x51] sm:$0xf]  ;;  %v5896_v59 = vld [vmem:[%s9761_s7 + $0xf8] sm:$0xff]  ;;  %v4653_v61 = vld [vmem:[#allocation3 + $0x29] sm:$0xf] }
 0x347   :  { %v8940_v7 = vld [vmem:[#allocation10 + $0x10] sm:$0xff]  ;;  %v4515_v19 = vld [vmem:[#allocation3 + $0x48] sm:$0xf]  ;;  %v4393_v41 = vld [vmem:[#allocation3 + $0x52] sm:$0xf] }
 0x348   :  { %7084 = vmatpush3.bf16.msra.mxu1 %v7081_v1  ;;  %v3786_v62 = vld [vmem:[#allocation10 + $0x18] sm:$0xff]  ;;  %4123 = vst.msk [vmem:[#allocation10 + $0x10] sm:$0xf] %vm3709_vm7, %v4121_v26  ;;  %4127 = vst.msk [vmem:[#allocation10 + $0x14] sm:$0xf] %vm3709_vm7, %v4125_v9  ;;  %v7109_v1 = vpack.c.bf16 %v5894_v60, %v5893_v58  ;;  %v5920_v58 = vld [vmem:[%s9761_s7 + $0x178] sm:$0xff] }
 0x349   :  { %7086 = vmatprep.subr.bf16.mxu1 %v7085_v27  ;;  %6779 = vmatmul.mubr.msk.f32.gmra.mrb[42].mxu1 %vm3638_vm8, %v3786_v62  ;;  %4001 = vst.msk [vmem:[#allocation10 + $0x18] sm:$0xf] %vm3709_vm7, %v3999_v42  ;;  %4005 = vst.msk [vmem:[#allocation10 + $0x1c] sm:$0xf] %vm3709_vm7, %v4003_v14  ;;  %v8949_v24 = vld [vmem:[#allocation10] sm:$0xff]  ;;  %v5902_v62 = vld [vmem:[%s9761_s7 + $0x108] sm:$0xff] }
 0x34a   :  { %v8945_v22 = vld [vmem:[#allocation10 + $0x8] sm:$0xff]  ;;  %6797 = vmatprep.mubr.msk.f32.mxu1 %vm3638_vm8, %v8865_v63  ;;  %4382 = vst.msk [vmem:[#allocation10] sm:$0xf] %vm3709_vm7, %v4380_v46  ;;  %4386 = vst.msk [vmem:[#allocation10 + $0x4] sm:$0xf] %vm3709_vm7, %v4384_v17  ;;  %v5883_v63 = vld [vmem:[%s9761_s7 + $0xb0] sm:$0xff]  ;;  %v7113_v17 = vpack.c.bf16 %v5896_v59, %v5895_v21 }
 0x34b   :  { %4260 = vst.msk [vmem:[#allocation10 + $0x8] sm:$0xf] %vm3709_vm7, %v4258_v50  ;;  %4264 = vst.msk [vmem:[#allocation10 + $0xc] sm:$0xf] %vm3709_vm7, %v4262_v25  ;;  %v7097_v16 = vpack.c.bf16 %v5884_v47, %v5883_v63  ;;  %v4511_v4 = vld [vmem:[#allocation3 + $0x40] sm:$0xf] }
 0x34c   :  { %v4775_v46 = vld [vmem:[#allocation3 + $0x1a] sm:$0xf]  ;;  %v5901_v50 = vld [vmem:[%s9761_s7 + $0x100] sm:$0xff]  ;;  %v4646_v32 = vld [vmem:[#allocation3 + $0x49] sm:$0xf] }
 0x34d   :  { %6798 = vmatmul.mubr.msk.f32.vlgmr.msra.gmra.mrb[40].mxu1 %vm3638_vm8, %v8875_v52  ;;  %v4514_v52 = vld [vmem:[#allocation3 + $0x18] sm:$0xf]  ;;  %v7117_v25 = vpack.c.bf16 %v5902_v62, %v5901_v50  ;;  %v4519_v47 = vld [vmem:[#allocation3 + $0x50] sm:$0xf]  ;;  %v5926_v60 = vld [vmem:[%s9761_s7 + $0x188] sm:$0xff] }
 0x34e   :  { %7088 = vmatpush3.bf16.msra.mxu1 %v7085_v27  ;;  %6800 = vmatprep.mubr.msk.f32.mxu1 %vm3638_vm8, %v8896_v35  ;;  %v7101_v35 = vpack.c.bf16 %v5890_v30, %v5889_v29  ;;  %v4649_v27 = vld [vmem:[#allocation3 + $0x21] sm:$0xf]  ;;  %v4524_v14 = vld [vmem:[#allocation3 + $0x58] sm:$0xf]  ;;  %v4776_v29 = vld [vmem:[#allocation3 + $0x4a] sm:$0xf] }
 0x34f   :  { %7090 = vmatprep.subr.bf16.mxu1 %v7089_v28  ;;  %v8975_v8 = vld [vmem:[#allocation10 + $0x10] sm:$0xff]  ;;  %v5927_v59 = vld [vmem:[%s9761_s7 + $0x190] sm:$0xff]  ;;  %v5942_v50 = vld [vmem:[%s9761_s7 + $0x1e8] sm:$0xff] }
 0x350   :  { %v8973_v6 = vld [vmem:[#allocation10 + $0x18] sm:$0xff]  ;;  %4253 = vst.msk [vmem:[#allocation10 + $0x10] sm:$0xf] %vm3709_vm7, %v4251_v54  ;;  %4257 = vst.msk [vmem:[#allocation10 + $0x14] sm:$0xf] %vm3709_vm7, %v4255_v0  ;;  %v5905_v0 = vld [vmem:[%s9761_s7 + $0x120] sm:$0xff] }
 0x351   :  { %6801 = vmatmul.mubr.msk.f32.gmra.mrb[42].mxu1 %vm3638_vm8, %v3758_v5  ;;  %4131 = vst.msk [vmem:[#allocation10 + $0x18] sm:$0xf] %vm3709_vm7, %v4129_v49  ;;  %4135 = vst.msk [vmem:[#allocation10 + $0x1c] sm:$0xf] %vm3709_vm7, %v4133_v11  ;;  %v8984_v15 = vld [vmem:[#allocation10] sm:$0xff] }
 0x352   :  { %v8980_v12 = vld [vmem:[#allocation10 + $0x8] sm:$0xff]  ;;  %7092 = vmatpush3.bf16.msra.mxu1 %v7089_v28  ;;  %6819 = vmatprep.mubr.msk.f32.mxu1 %vm3638_vm8, %v8901_v40  ;;  %4512 = vst.msk [vmem:[#allocation10] sm:$0xf] %vm3709_vm7, %v4510_v3  ;;  %4516 = vst.msk [vmem:[#allocation10 + $0x4] sm:$0xf] %vm3709_vm7, %v4514_v52  ;;  %v5906_v3 = vld [vmem:[%s9761_s7 + $0x128] sm:$0xff] }
 0x353   :  { %4390 = vst.msk [vmem:[#allocation10 + $0x8] sm:$0xf] %vm3709_vm7, %v4388_v51  ;;  %4394 = vst.msk [vmem:[#allocation10 + $0xc] sm:$0xf] %vm3709_vm7, %v4392_v13  ;;  %7094 = vmatprep.subr.bf16.mxu1 %v7093_v48  ;;  %v4518_v40 = vld [vmem:[#allocation3 + $0x20] sm:$0xf]  ;;  %v7125_v11 = vpack.c.bf16 %v5906_v3, %v5905_v0 }
 0x354   :  { %v4389_v5 = vld [vmem:[#allocation3 + $0x4a] sm:$0xf]  ;;  %v4642_v28 = vld [vmem:[#allocation3 + $0x41] sm:$0xf]  ;;  %v5907_v52 = vld [vmem:[%s9761_s7 + $0x130] sm:$0xff] }
 0x355   :  { %v4779_v51 = vld [vmem:[#allocation3 + $0x22] sm:$0xf]  ;;  %v5908_v13 = vld [vmem:[%s9761_s7 + $0x138] sm:$0xff] }
 0x356   :  { %7096 = vmatpush3.bf16.msra.mxu1 %v7093_v48 }
 0x357   :  { %7098 = vmatprep.subr.bf16.mxu1 %v7097_v16  ;;  %v9006_v45 = vld [vmem:[#allocation10 + $0x10] sm:$0xff] }
 0x358   :  { %v9004_v55 = vld [vmem:[#allocation10 + $0x18] sm:$0xff]  ;;  %4383 = vst.msk [vmem:[#allocation10 + $0x10] sm:$0xf] %vm3709_vm7, %v4381_v36  ;;  %4387 = vst.msk [vmem:[#allocation10 + $0x14] sm:$0xf] %vm3709_vm7, %v4385_v37  ;;  %v5915_v37 = vld [vmem:[%s9761_s7 + $0x150] sm:$0xff] }
 0x359   :  { %4261 = vst.msk [vmem:[#allocation10 + $0x18] sm:$0xf] %vm3709_vm7, %v4259_v38  ;;  %4265 = vst.msk [vmem:[#allocation10 + $0x1c] sm:$0xf] %vm3709_vm7, %v4263_v20  ;;  %v9014_v56 = vld [vmem:[#allocation10] sm:$0xff]  ;;  %v5918_v20 = vld [vmem:[%s9761_s7 + $0x168] sm:$0xff] }
 0x35a   :  { %v9012_v53 = vld [vmem:[#allocation10 + $0x8] sm:$0xff]  ;;  %7100 = vmatpush3.bf16.msra.mxu1 %v7097_v16  ;;  %4643 = vst.msk [vmem:[#allocation10] sm:$0xf] %vm3709_vm7, %v4641_v43  ;;  %4647 = vst.msk [vmem:[#allocation10 + $0x4] sm:$0xf] %vm3709_vm7, %v4645_v57 }
 0x35b   :  { %4520 = vst.msk [vmem:[#allocation10 + $0x8] sm:$0xf] %vm3709_vm7, %v4518_v40  ;;  %4525 = vst.msk [vmem:[#allocation10 + $0xc] sm:$0xf] %vm3709_vm7, %v4523_v34  ;;  %7102 = vmatprep.subr.bf16.mxu1 %v7101_v35  ;;  %v4772_v16 = vld [vmem:[#allocation3 + $0x42] sm:$0xf] }
 0x35c   :  { %v5914_v34 = vld [vmem:[%s9761_s7 + $0x148] sm:$0xff]  ;;  %v4780_v40 = vld [vmem:[#allocation3 + $0x52] sm:$0xf] }
 0x35d   :  { %6820 = vmatmul.mubr.msk.f32.vlgmr.msra.gmra.mrb[40].mxu1 %vm3638_vm8, %v8924_v23  ;;  %v4771_v23 = vld [vmem:[#allocation3 + $0x12] sm:$0xf]  ;;  %v7133_v36 = vpack.c.bf16 %v5914_v34, %v5913_v33  ;;  %v5014_v34 = vld [vmem:[%s9764_s10 + $0x120] sm:$0xff] }
 0x35e   :  { %6822 = vmatprep.mubr.msk.f32.mxu1 %vm3638_vm8, %v8940_v7  ;;  %7104 = vmatpush3.bf16.msra.mxu1 %v7101_v35  ;;  %v5904_v7 = vld [vmem:[%s9761_s7 + $0x118] sm:$0xff] }
 0x35f   :  { %7106 = vmatprep.subr.bf16.mxu1 %v7105_v2  ;;  %v9038_v42 = vld [vmem:[#allocation10 + $0x10] sm:$0xff]  ;;  %v4784_v35 = vld [vmem:[#allocation3 + $0x5a] sm:$0xf] }
 0x360   :  { %v9036_v39 = vld [vmem:[#allocation10 + $0x18] sm:$0xff]  ;;  %4513 = vst.msk [vmem:[#allocation10 + $0x10] sm:$0xf] %vm3709_vm7, %v4511_v4  ;;  %4517 = vst.msk [vmem:[#allocation10 + $0x14] sm:$0xf] %vm3709_vm7, %v4515_v19  ;;  %v5931_v19 = vld [vmem:[%s9761_s7 + $0x1b0] sm:$0xff] }
 0x361   :  { %6823 = vmatmul.mubr.msk.f32.gmra.mrb[42].mxu1 %vm3638_vm8, %v8973_v6  ;;  %4391 = vst.msk [vmem:[#allocation10 + $0x18] sm:$0xf] %vm3709_vm7, %v4389_v5  ;;  %4395 = vst.msk [vmem:[#allocation10 + $0x1c] sm:$0xf] %vm3709_vm7, %v4393_v41  ;;  %v9048_v9 = vld [vmem:[#allocation10] sm:$0xff]  ;;  %v5930_v5 = vld [vmem:[%s9761_s7 + $0x1a8] sm:$0xff] }
 0x362   :  { %v9046_v26 = vld [vmem:[#allocation10 + $0x8] sm:$0xff]  ;;  %7108 = vmatpush3.bf16.msra.mxu1 %v7105_v2  ;;  %6841 = vmatprep.mubr.msk.f32.mxu1 %vm3638_vm8, %v8928_v18  ;;  %4773 = vst.msk [vmem:[#allocation10] sm:$0xf] %vm3709_vm7, %v4771_v23  ;;  %4777 = vst.msk [vmem:[#allocation10 + $0x4] sm:$0xf] %vm3709_vm7, %v4775_v46  ;;  %v5903_v18 = vld [vmem:[%s9761_s7 + $0x110] sm:$0xff] }
 0x363   :  { %4651 = vst.msk [vmem:[#allocation10 + $0x8] sm:$0xf] %vm3709_vm7, %v4649_v27  ;;  %4655 = vst.msk [vmem:[#allocation10 + $0xc] sm:$0xf] %vm3709_vm7, %v4653_v61  ;;  %7110 = vmatprep.subr.bf16.mxu1 %v7109_v1  ;;  %v7121_v54 = vpack.c.bf16 %v5904_v7, %v5903_v18  ;;  %v4654_v6 = vld [vmem:[#allocation3 + $0x59] sm:$0xf] }
 0x364   :  { %v5919_v2 = vld [vmem:[%s9761_s7 + $0x170] sm:$0xff]  ;;  %v5932_v27 = vld [vmem:[%s9761_s7 + $0x1b8] sm:$0xff]  ;;  %v5937_v23 = vld [vmem:[%s9761_s7 + $0x1c0] sm:$0xff] }
 0x365   :  { %v5943_v18 = vld [vmem:[%s9761_s7 + $0x1f0] sm:$0xff]  ;;  %v5944_v7 = vld [vmem:[%s9761_s7 + $0x1f8] sm:$0xff] }
 0x366   :  { %7112 = vmatpush3.bf16.msra.mxu1 %v7109_v1  ;;  %v5929_v1 = vld [vmem:[%s9761_s7 + $0x1a0] sm:$0xff] }
 0x367   :  { %7114 = vmatprep.subr.bf16.mxu1 %v7113_v17  ;;  %v9070_v48 = vld [vmem:[#allocation10 + $0x10] sm:$0xff]  ;;  %v7157_v4 = vpack.c.bf16 %v5930_v5, %v5929_v1  ;;  %v5031_v1 = vld [vmem:[%s9764_s10 + $0x1a8] sm:$0xff]  ;;  %v5033_v5 = vld [vmem:[%s9764_s10 + $0x1b8] sm:$0xff] }
 0x368   :  { %v9068_v63 = vld [vmem:[#allocation10 + $0x18] sm:$0xff]  ;;  %4644 = vst.msk [vmem:[#allocation10 + $0x10] sm:$0xf] %vm3709_vm7, %v4642_v28  ;;  %4648 = vst.msk [vmem:[#allocation10 + $0x14] sm:$0xf] %vm3709_vm7, %v4646_v32  ;;  %v5951_v32 = vld [vmem:[%s9761_s7 + $0x210] sm:$0xff] }
 0x369   :  { %4521 = vst.msk [vmem:[#allocation10 + $0x18] sm:$0xf] %vm3709_vm7, %v4519_v47  ;;  %4526 = vst.msk [vmem:[#allocation10 + $0x1c] sm:$0xf] %vm3709_vm7, %v4524_v14  ;;  %v5949_v14 = vld [vmem:[%s9761_s7 + $0x200] sm:$0xff]  ;;  %v5954_v47 = vld [vmem:[%s9761_s7 + $0x228] sm:$0xff] }
 0x36a   :  { %v9076_v49 = vld [vmem:[#allocation10 + $0x8] sm:$0xff]  ;;  %7116 = vmatpush3.bf16.msra.mxu1 %v7113_v17  ;;  %v5941_v17 = vld [vmem:[%s9761_s7 + $0x1e0] sm:$0xff]  ;;  %v4787_v0 = vld [vmem:[#allocation10] sm:$0xff] }
 0x36b   :  { %4781 = vst.msk [vmem:[#allocation10 + $0x8] sm:$0xf] %vm3709_vm7, %v4779_v51  ;;  %4785 = vst.msk [vmem:[#allocation10 + $0xc] sm:$0xf] %vm3709_vm7, %v4783_v44  ;;  %7118 = vmatprep.subr.bf16.mxu1 %v7117_v25  ;;  %v7173_v62 = vpack.c.bf16 %v5942_v50, %v5941_v17  ;;  %v5955_v51 = vld [vmem:[%s9761_s7 + $0x230] sm:$0xff]  ;;  %v5039_v17 = vld [vmem:[%s9764_s10 + $0x1e8] sm:$0xff] }
 0x36c   :  { %v5041_v50 = vld [vmem:[%s9764_s10 + $0x1f8] sm:$0xff] }
 0x36d   :  { %6842 = vmatmul.mubr.msk.f32.vlgmr.msra.gmra.mrb[40].mxu1 %vm3638_vm8, %v8945_v22  ;;  %v4650_v22 = vld [vmem:[#allocation3 + $0x51] sm:$0xf] }
 0x36e   :  { %6844 = vmatprep.mubr.msk.f32.mxu1 %vm3638_vm8, %v8975_v8  ;;  %7120 = vmatpush3.bf16.msra.mxu1 %v7117_v25  ;;  %v7129_v8 = vpack.c.bf16 %v5908_v13, %v5907_v52  ;;  %v5950_v25 = vld [vmem:[%s9761_s7 + $0x208] sm:$0xff]  ;;  %v5013_v13 = vld [vmem:[%s9764_s10 + $0x118] sm:$0xff] }
 0x36f   :  { %7122 = vmatprep.subr.bf16.mxu1 %v7121_v54  ;;  %v9098_v31 = vld [vmem:[#allocation10 + $0x10] sm:$0xff]  ;;  %v7181_v28 = vpack.c.bf16 %v5950_v25, %v5949_v14  ;;  %v4977_v14 = vld [vmem:[%s9764_s10 + $0x8] sm:$0xff]  ;;  %v4979_v25 = vld [vmem:[%s9764_s10 + $0x18] sm:$0xff] }
 0x370   :  { %v9096_v30 = vld [vmem:[#allocation10 + $0x18] sm:$0xff]  ;;  %4774 = vst.msk [vmem:[#allocation10 + $0x10] sm:$0xf] %vm3709_vm7, %v4772_v16  ;;  %4778 = vst.msk [vmem:[#allocation10 + $0x14] sm:$0xf] %vm3709_vm7, %v4776_v29  ;;  %v5010_v29 = vld [vmem:[%s9764_s10 + $0x100] sm:$0xff] }
 0x371   :  { %6845 = vmatmul.mubr.msk.f32.gmra.mrb[42].mxu1 %vm3638_vm8, %v9004_v55  ;;  %4652 = vst.msk [vmem:[#allocation10 + $0x18] sm:$0xf] %vm3709_vm7, %v4650_v22  ;;  %4656 = vst.msk [vmem:[#allocation10 + $0x1c] sm:$0xf] %vm3709_vm7, %v4654_v6  ;;  %v5917_v55 = vld [vmem:[%s9761_s7 + $0x160] sm:$0xff] }
 0x372   :  { %7124 = vmatpush3.bf16.msra.mxu1 %v7121_v54  ;;  %6863 = vmatprep.mubr.msk.f32.mxu1 %vm3638_vm8, %v8949_v24  ;;  %v5916_v24 = vld [vmem:[%s9761_s7 + $0x158] sm:$0xff]  ;;  %v7141_v57 = vpack.c.bf16 %v5918_v20, %v5917_v55  ;;  %v5023_v55 = vld [vmem:[%s9764_s10 + $0x168] sm:$0xff] }
 0x373   :  { %7126 = vmatprep.subr.bf16.mxu1 %v7125_v11  ;;  %v7137_v43 = vpack.c.bf16 %v5916_v24, %v5915_v37  ;;  %v5956_v54 = vld [vmem:[%s9761_s7 + $0x238] sm:$0xff]  ;;  %v5019_v37 = vld [vmem:[%s9764_s10 + $0x148] sm:$0xff] }
 0x374   :  { %v4788_v3 = vld [vmem:[#allocation10 + $0x8] sm:$0xff] }
 0x375   :  { %v5021_v24 = vld [vmem:[%s9764_s10 + $0x158] sm:$0xff] }
 0x376   :  { %7128 = vmatpush3.bf16.msra.mxu1 %v7125_v11  ;;  %v5011_v11 = vld [vmem:[%s9764_s10 + $0x108] sm:$0xff]  ;;  %v5025_v20 = vld [vmem:[%s9764_s10 + $0x178] sm:$0xff] }
 0x377   :  { %7130 = vmatprep.subr.bf16.mxu1 %v7129_v8  ;;  %v4789_v52 = vld [vmem:[#allocation10 + $0x10] sm:$0xff]  ;;  %v7197_v16 = vpack.c.bf16 %v5013_v13, %v5011_v11 }
 0x378   :  { %v9120_v38 = vld [vmem:[#allocation10 + $0x18] sm:$0xff] }
 0x379   :  { %4782 = vst.msk [vmem:[#allocation10 + $0x18] sm:$0xf] %vm3709_vm7, %v4780_v40  ;;  %4786 = vst.msk [vmem:[#allocation10 + $0x1c] sm:$0xf] %vm3709_vm7, %v4784_v35  ;;  %v5016_v35 = vld [vmem:[%s9764_s10 + $0x130] sm:$0xff]  ;;  %v7205_v40 = vpack.c.bf16 %v5021_v24, %v5019_v37  ;;  %v5454_v37 = vld [vmem:[%s9766_s12 + $0x98] sm:$0xff] }
 0x37a   :  { %7132 = vmatpush3.bf16.msra.mxu1 %v7129_v8  ;;  %v5017_v8 = vld [vmem:[%s9764_s10 + $0x138] sm:$0xff] }
 0x37b   :  { %7134 = vmatprep.subr.bf16.mxu1 %v7133_v36 }
 0x37d   :  { %6864 = vmatmul.mubr.msk.f32.vlgmr.msra.gmra.mrb[40].mxu1 %vm3638_vm8, %v8980_v12  ;;  %v7145_v12 = vpack.c.bf16 %v5920_v58, %v5919_v2  ;;  %v7209_v2 = vpack.c.bf16 %v5025_v20, %v5023_v55  ;;  %v5022_v58 = vld [vmem:[%s9764_s10 + $0x160] sm:$0xff]  ;;  %v5456_v20 = vld [vmem:[%s9766_s12 + $0xa8] sm:$0xff] }
 0x37e   :  { %6866 = vmatprep.mubr.msk.f32.mxu1 %vm3638_vm8, %v9006_v45  ;;  %7136 = vmatpush3.bf16.msra.mxu1 %v7133_v36  ;;  %v5925_v45 = vld [vmem:[%s9761_s7 + $0x180] sm:$0xff]  ;;  %v7203_v36 = vpack.c.bf16 %v5016_v35, %v5014_v34  ;;  %v5436_v35 = vld [vmem:[%s9766_s12 + $0x8] sm:$0xff] }
 0x37f   :  { %7138 = vmatprep.subr.bf16.mxu1 %v7137_v43  ;;  %v7149_v21 = vpack.c.bf16 %v5926_v60, %v5925_v45  ;;  %v5027_v45 = vld [vmem:[%s9764_s10 + $0x188] sm:$0xff]  ;;  %v5029_v60 = vld [vmem:[%s9764_s10 + $0x198] sm:$0xff]  ;;  %v5455_v55 = vld [vmem:[%s9766_s12 + $0xa0] sm:$0xff] }
 0x380   :  { %v4790_v6 = vld [vmem:[#allocation10 + $0x18] sm:$0xff] }
 0x381   :  { %6867 = vmatmul.mubr.msk.f32.gmra.mrb[42].mxu1 %vm3638_vm8, %v9036_v39  ;;  %v5938_v39 = vld [vmem:[%s9761_s7 + $0x1c8] sm:$0xff] }
 0x382   :  { %7140 = vmatpush3.bf16.msra.mxu1 %v7137_v43  ;;  %6885 = vmatprep.mubr.msk.f32.mxu1 %vm3638_vm8, %v8984_v15  ;;  %v5928_v15 = vld [vmem:[%s9761_s7 + $0x198] sm:$0xff]  ;;  %v7165_v41 = vpack.c.bf16 %v5938_v39, %v5937_v23  ;;  %v5020_v43 = vld [vmem:[%s9764_s10 + $0x150] sm:$0xff]  ;;  %v5035_v23 = vld [vmem:[%s9764_s10 + $0x1c8] sm:$0xff] }
 0x383   :  { %7142 = vmatprep.subr.bf16.mxu1 %v7141_v57  ;;  %v7153_v61 = vpack.c.bf16 %v5928_v15, %v5927_v59  ;;  %v7213_v59 = vpack.c.bf16 %v5029_v60, %v5027_v45  ;;  %v5026_v15 = vld [vmem:[%s9764_s10 + $0x180] sm:$0xff]  ;;  %v5037_v39 = vld [vmem:[%s9764_s10 + $0x1d8] sm:$0xff]  ;;  %v7333_v45 = vpack.c.bf16 %v5456_v20, %v5455_v55 }
 0x384   :  { %v5439_v60 = vld [vmem:[%s9766_s12 + $0x20] sm:$0xff] }
 0x386   :  { %7144 = vmatpush3.bf16.msra.mxu1 %v7141_v57 }
 0x387   :  { %7146 = vmatprep.subr.bf16.mxu1 %v7145_v12 }
 0x38a   :  { %7148 = vmatpush3.bf16.msra.mxu1 %v7145_v12  ;;  %v5024_v12 = vld [vmem:[%s9764_s10 + $0x170] sm:$0xff] }
 0x38b   :  { %7150 = vmatprep.subr.bf16.mxu1 %v7149_v21 }
 0x38d   :  { %6886 = vmatmul.mubr.msk.f32.vlgmr.msra.gmra.mrb[40].mxu1 %vm3638_vm8, %v9012_v53  ;;  %v7161_v53 = vpack.c.bf16 %v5932_v27, %v5931_v19  ;;  %v7217_v19 = vpack.c.bf16 %v5033_v5, %v5031_v1  ;;  %v5030_v27 = vld [vmem:[%s9764_s10 + $0x1a0] sm:$0xff] }
 0x38e   :  { %6888 = vmatprep.mubr.msk.f32.mxu1 %vm3638_vm8, %v9038_v42  ;;  %7152 = vmatpush3.bf16.msra.mxu1 %v7149_v21  ;;  %v5939_v42 = vld [vmem:[%s9761_s7 + $0x1d0] sm:$0xff]  ;;  %v7211_v21 = vpack.c.bf16 %v5024_v12, %v5022_v58 }
 0x38f   :  { %7154 = vmatprep.subr.bf16.mxu1 %v7153_v61 }
 0x391   :  { %6889 = vmatmul.mubr.msk.f32.gmra.mrb[42].mxu1 %vm3638_vm8, %v9068_v63  ;;  %v5953_v63 = vld [vmem:[%s9761_s7 + $0x220] sm:$0xff] }
 0x392   :  { %7156 = vmatpush3.bf16.msra.mxu1 %v7153_v61  ;;  %6907 = vmatprep.mubr.msk.f32.mxu1 %vm3638_vm8, %v9014_v56  ;;  %v5940_v56 = vld [vmem:[%s9761_s7 + $0x1d8] sm:$0xff]  ;;  %v5028_v61 = vld [vmem:[%s9764_s10 + $0x190] sm:$0xff] }
 0x393   :  { %7158 = vmatprep.subr.bf16.mxu1 %v7157_v4  ;;  %v7169_v46 = vpack.c.bf16 %v5940_v56, %v5939_v42  ;;  %v7221_v42 = vpack.c.bf16 %v5037_v39, %v5035_v23  ;;  %v5034_v56 = vld [vmem:[%s9764_s10 + $0x1c0] sm:$0xff]  ;;  %v5460_v39 = vld [vmem:[%s9766_s12 + $0xc8] sm:$0xff] }
 0x394   :  { %v5459_v23 = vld [vmem:[%s9766_s12 + $0xc0] sm:$0xff] }
 0x396   :  { %7160 = vmatpush3.bf16.msra.mxu1 %v7157_v4  ;;  %v7215_v4 = vpack.c.bf16 %v5028_v61, %v5026_v15  ;;  %v5458_v15 = vld [vmem:[%s9766_s12 + $0xb8] sm:$0xff] }
 0x397   :  { %7162 = vmatprep.subr.bf16.mxu1 %v7161_v53 }
 0x39a   :  { %7164 = vmatpush3.bf16.msra.mxu1 %v7161_v53  ;;  %v5032_v53 = vld [vmem:[%s9764_s10 + $0x1b0] sm:$0xff] }
 0x39b   :  { %7166 = vmatprep.subr.bf16.mxu1 %v7165_v41 }
 0x39d   :  { %6908 = vmatmul.mubr.msk.f32.vlgmr.msra.gmra.mrb[40].mxu1 %vm3638_vm8, %v9046_v26  ;;  %v7177_v26 = vpack.c.bf16 %v5944_v7, %v5943_v18  ;;  %v7225_v18 = vpack.c.bf16 %v5041_v50, %v5039_v17  ;;  %v5038_v7 = vld [vmem:[%s9764_s10 + $0x1e0] sm:$0xff]  ;;  %v5461_v17 = vld [vmem:[%s9766_s12 + $0xd0] sm:$0xff]  ;;  %v5462_v50 = vld [vmem:[%s9766_s12 + $0xd8] sm:$0xff] }
 0x39e   :  { %6910 = vmatprep.mubr.msk.f32.mxu1 %vm3638_vm8, %v9070_v48  ;;  %7168 = vmatpush3.bf16.msra.mxu1 %v7165_v41  ;;  %v7189_v48 = vpack.c.bf16 %v5954_v47, %v5953_v63  ;;  %v7219_v41 = vpack.c.bf16 %v5032_v53, %v5030_v27  ;;  %v5962_v63 = vld [vmem:[%s9763_s9] ss:$0 sm:$0xff]  ;;  %v5441_v27 = vld [vmem:[%s9766_s12 + $0x30] sm:$0xff]  ;;  %v5442_v53 = vld [vmem:[%s9766_s12 + $0x38] sm:$0xff] }
 0x39f   :  { %7170 = vmatprep.subr.bf16.mxu1 %v7169_v46 }
 0x3a1   :  { %6911 = vmatmul.mubr.msk.f32.gmra.mrb[42].mxu1 %vm3638_vm8, %v9096_v30  ;;  %v5012_v30 = vld [vmem:[%s9764_s10 + $0x110] sm:$0xff] }
 0x3a2   :  { %7172 = vmatpush3.bf16.msra.mxu1 %v7169_v46  ;;  %6929 = vmatprep.mubr.msk.f32.mxu1 %vm3638_vm8, %v9048_v9  ;;  %v5952_v9 = vld [vmem:[%s9761_s7 + $0x218] sm:$0xff]  ;;  %v7199_v22 = vpack.c.bf16 %v5012_v30, %v5010_v29  ;;  %v5036_v46 = vld [vmem:[%s9764_s10 + $0x1d0] sm:$0xff] }
 0x3a3   :  { %7174 = vmatprep.subr.bf16.mxu1 %v7173_v62  ;;  %v7185_v44 = vpack.c.bf16 %v5952_v9, %v5951_v32  ;;  %v7229_v32 = vpack.c.bf16 %v4979_v25, %v4977_v14  ;;  %v5961_v9 = vld [vmem:[%s9762_s8] ss:$0 sm:$0xff] }
 0x3a6   :  { %7176 = vmatpush3.bf16.msra.mxu1 %v7173_v62  ;;  %v7223_v62 = vpack.c.bf16 %v5036_v46, %v5034_v56  ;;  %v7341_v56 = vpack.c.bf16 %v5460_v39, %v5459_v23  ;;  %v5444_v46 = vld [vmem:[%s9766_s12 + $0x48] sm:$0xff]  ;;  %v4990_v23 = vld [vmem:[%s9764_s10 + $0x70] sm:$0xff] }
 0x3a7   :  { %7178 = vmatprep.subr.bf16.mxu1 %v7177_v26  ;;  %v4993_v39 = vld [vmem:[%s9764_s10 + $0x88] sm:$0xff] }
 0x3aa   :  { %7180 = vmatpush3.bf16.msra.mxu1 %v7177_v26  ;;  %v5040_v26 = vld [vmem:[%s9764_s10 + $0x1f0] sm:$0xff] }
 0x3ab   :  { %7182 = vmatprep.subr.bf16.mxu1 %v7181_v28 }
 0x3ad   :  { %6930 = vmatmul.mubr.msk.f32.vlgmr.msra.gmra.mrb[40].mxu1 %vm3638_vm8, %v9076_v49  ;;  %v7193_v49 = vpack.c.bf16 %v5956_v54, %v5955_v51 }
 0x3ae   :  { %6932 = vmatprep.mubr.msk.f32.mxu1 %vm3638_vm8, %v9098_v31  ;;  %7184 = vmatpush3.bf16.msra.mxu1 %v7181_v28  ;;  %v5015_v31 = vld [vmem:[%s9764_s10 + $0x128] sm:$0xff]  ;;  %v7227_v28 = vpack.c.bf16 %v5040_v26, %v5038_v7 }
 0x3af   :  { %7186 = vmatprep.subr.bf16.mxu1 %v7185_v44  ;;  %v7201_v33 = vpack.c.bf16 %v5017_v8, %v5015_v31  ;;  %v5451_v31 = vld [vmem:[%s9766_s12 + $0x80] sm:$0xff]  ;;  %v5452_v8 = vld [vmem:[%s9766_s12 + $0x88] sm:$0xff] }
 0x3b0   :  { %v7325_v34 = vpack.c.bf16 %v5452_v8, %v5451_v31 }
 0x3b1   :  { %6933 = vmatmul.mubr.msk.f32.gmra.mrb[42].mxu1 %vm3638_vm8, %v9120_v38  ;;  %v5018_v38 = vld [vmem:[%s9764_s10 + $0x140] sm:$0xff] }
 0x3b2   :  { %7188 = vmatpush3.bf16.msra.mxu1 %v7185_v44  ;;  %6951 = vmatprep.mubr.msk.f32.mxu1 %vm3638_vm8, %v4787_v0  ;;  %v7207_v57 = vpack.c.bf16 %v5020_v43, %v5018_v38  ;;  %v5438_v43 = vld [vmem:[%s9766_s12 + $0x18] sm:$0xff] }
 0x3b3   :  { %7190 = vmatprep.subr.bf16.mxu1 %v7189_v48  ;;  %7326 = vmatprep.subr.bf16.mxu0 %v7325_v34 }
 0x3b6   :  { %7192 = vmatpush3.bf16.msra.mxu1 %v7189_v48 }
 0x3b7   :  { %7194 = vmatprep.subr.bf16.mxu1 %v7193_v49 }
 0x3ba   :  { %7196 = vmatpush3.bf16.msra.mxu1 %v7193_v49 }
 0x3bb   :  { %7198 = vmatprep.subr.bf16.mxu1 %v7197_v16 }
 0x3bd   :  { %6952 = vmatmul.mubr.msk.f32.vlgmr.msra.gmra.mrb[40].mxu1 %vm3638_vm8, %v4788_v3 }
 0x3be   :  { %6954 = vmatprep.mubr.msk.f32.mxu1 %vm3638_vm8, %v4789_v52  ;;  %7200 = vmatpush1.bf16.msra.mxu1 %v7199_v22 }
 0x3bf   :  { %7202 = vmatprep.subr.bf16.mxu1 %v7201_v33  ;;  %v5435_v33 = vld [vmem:[%s9766_s12] sm:$0xff] }
 0x3c0   :  { %v7327_v24 = vpack.c.bf16 %v5436_v35, %v5435_v33 }
 0x3c1   :  { %6955 = vmatmul.mubr.msk.f32.gmra.mrb[42].mxu1 %vm3638_vm8, %v4790_v6 }
 0x3c2   :  { %5112 = vmatprep.mubr.f32.mxu1 %v7553_v10  ;;  %7204 = vmatpush1.bf16.msra.mxu1 %v7203_v36  ;;  %v5453_v36 = vld [vmem:[%s9766_s12 + $0x90] sm:$0xff] }
 0x3c3   :  { %7206 = vmatprep.subr.bf16.mxu1 %v7205_v40  ;;  %v7329_v38 = vpack.c.bf16 %v5454_v37, %v5453_v36  ;;  %v5437_v40 = vld [vmem:[%s9766_s12 + $0x10] sm:$0xff]  ;;  %7328 = vmatpush3.bf16.msra.mxu0 %v7327_v24  ;;  %v4976_v37 = vld [vmem:[%s9764_s10] sm:$0xff] }
 0x3c4   :  { %v7331_v58 = vpack.c.bf16 %v5438_v43, %v5437_v40  ;;  %v4978_v24 = vld [vmem:[%s9764_s10 + $0x10] sm:$0xff]  ;;  %v4983_v40 = vld [vmem:[%s9764_s10 + $0x38] sm:$0xff] }
 0x3c5   :  { %7330 = vmatprep.subr.bf16.mxu0 %v7329_v38  ;;  %v4981_v38 = vld [vmem:[%s9764_s10 + $0x28] sm:$0xff]  ;;  %v7231_v20 = vpack.c.bf16 %v4978_v24, %v4976_v37 }
 0x3c6   :  { %7208 = vmatpush1.bf16.msra.mxu1 %v7207_v57  ;;  %v5206_v24 = vld [vmem:[%s9764_s10 + $0x248] sm:$0xff] }
 0x3c7   :  { %7210 = vmatprep.subr.bf16.mxu1 %v7209_v2  ;;  %7332 = vmatpush3.bf16.msra.mxu0 %v7331_v58  ;;  %v4980_v58 = vld [vmem:[%s9764_s10 + $0x20] sm:$0xff] }
 0x3c8   :  { %7334 = vmatprep.subr.bf16.mxu0 %v7333_v45 }
 0x3ca   :  { %7212 = vmatpush1.bf16.msra.mxu1 %v7211_v21  ;;  %v5440_v21 = vld [vmem:[%s9766_s12 + $0x28] sm:$0xff] }
 0x3cb   :  { %7214 = vmatprep.subr.bf16.mxu1 %v7213_v59  ;;  %v5457_v59 = vld [vmem:[%s9766_s12 + $0xb0] sm:$0xff]  ;;  %v7335_v5 = vpack.c.bf16 %v5440_v21, %v5439_v60  ;;  %v4985_v60 = vld [vmem:[%s9764_s10 + $0x48] sm:$0xff]  ;;  %v4987_v21 = vld [vmem:[%s9764_s10 + $0x58] sm:$0xff] }
 0x3cd   :  { %7336 = vmatpush3.bf16.msra.mxu0 %v7335_v5  ;;  %v4989_v5 = vld [vmem:[%s9764_s10 + $0x68] sm:$0xff] }
 0x3ce   :  { %7216 = vmatpush1.bf16.msra.mxu1 %v7215_v4 }
 0x3cf   :  { %7218 = vmatprep.subr.bf16.mxu1 %v7217_v19  ;;  %v7337_v19 = vpack.c.bf16 %v5458_v15, %v5457_v59  ;;  %v7237_v15 = vpack.c.bf16 %v4987_v21, %v4985_v60  ;;  %v5211_v60 = vld [vmem:[%s9764_s10 + $0x270] sm:$0xff]  ;;  %v5214_v21 = vld [vmem:[%s9764_s10 + $0x288] sm:$0xff] }
 0x3d1   :  { %7338 = vmatprep.subr.bf16.mxu0 %v7337_v19 }
 0x3d2   :  { %7220 = vmatpush1.bf16.msra.mxu1 %v7219_v41  ;;  %v7339_v41 = vpack.c.bf16 %v5442_v53, %v5441_v27  ;;  %v4988_v53 = vld [vmem:[%s9764_s10 + $0x60] sm:$0xff] }
 0x3d3   :  { %7222 = vmatprep.subr.bf16.mxu1 %v7221_v42  ;;  %v5443_v42 = vld [vmem:[%s9766_s12 + $0x40] sm:$0xff] }
 0x3d4   :  { %7340 = vmatpush3.bf16.msra.mxu0 %v7339_v41  ;;  %v4995_v41 = vld [vmem:[%s9764_s10 + $0x98] sm:$0xff] }
 0x3d5   :  { %7342 = vmatprep.subr.bf16.mxu0 %v7341_v56  ;;  %v7245_v56 = vpack.c.bf16 %v4995_v41, %v4993_v39  ;;  %v5219_v39 = vld [vmem:[%s9764_s10 + $0x2b0] sm:$0xff]  ;;  %v5222_v41 = vld [vmem:[%s9764_s10 + $0x2c8] sm:$0xff] }
 0x3d6   :  { %7224 = vmatpush1.bf16.msra.mxu1 %v7223_v62 }
 0x3d7   :  { %7226 = vmatprep.subr.bf16.mxu1 %v7225_v18 }
 0x3da   :  { %7228 = vmatpush1.bf16.msra.mxu1 %v7227_v28 }
 0x3db   :  { %7230 = vmatprep.subr.bf16.mxu1 %v7229_v32 }
 0x490   :  { %v6953_v44 = vpop.f32.mrb[40].mxu1 }
 0x491   :  { %v4909_v47 = vmul.f32 %v6953_v44, %v5961_v9  ;;  %v4878_v48 = vpop.f32.mrb[41].mxu1 }
 0x492   :  { %v4908_v51 = vmul.f32 %v5961_v9, %v4878_v48  ;;  %v5445_v48 = vld [vmem:[%s9766_s12 + $0x50] sm:$0xff] }
 0x493   :  { %v4920_v54 = vadd.f32 %v5962_v63, %v4909_v47  ;;  %v7343_v47 = vpack.c.bf16 %v5444_v46, %v5443_v42  ;;  %v7243_v42 = vpack.c.bf16 %v4990_v23, %v4988_v53  ;;  %v4992_v46 = vld [vmem:[%s9764_s10 + $0x80] sm:$0xff] }
 0x494   :  { %v4919_v0 = vadd.f32 %v5962_v63, %v4908_v51  ;;  %v6956_v49 = vpop.f32.mrb[42].mxu1  ;;  %v5217_v23 = vld [vmem:[%s9764_s10 + $0x2a0] sm:$0xff] }
 0x495   :  { %v4924_v3 = vmax.f32 %v4920_v54, 0.0  ;;  %v4911_v52 = vmul.f32 %v6956_v49, %v5961_v9  ;;  %v4888_v6 = vpop.f32.mrb[43].mxu1  ;;  %v7345_v54 = vpack.c.bf16 %v5462_v50, %v5461_v17  ;;  %v5463_v49 = vld [vmem:[%s9766_s12 + $0xe0] sm:$0xff]  ;;  %7344 = vmatpush3.bf16.msra.mxu0 %v7343_v47  ;;  %v4994_v17 = vld [vmem:[%s9764_s10 + $0x90] sm:$0xff]  ;;  %v4997_v50 = vld [vmem:[%s9764_s10 + $0xa8] sm:$0xff] }
 0x496   :  { %v4923_v11 = vmax.f32 %v4919_v0, 0.0  ;;  %v4910_v13 = vmul.f32 %v5961_v9, %v4888_v6  ;;  %v5446_v0 = vld [vmem:[%s9766_s12 + $0x58] sm:$0xff]  ;;  %v5005_v47 = vld [vmem:[%s9764_s10 + $0xe8] sm:$0xff] }
 0x497   :  { %4928 = vst [vmem:[#allocation8 + $0x8] sm:$0xff] %v4924_v3  ;;  %v4922_v16 = vadd.f32 %v5962_v63, %v4911_v52  ;;  %v5464_v3 = vld [vmem:[%s9766_s12 + $0xe8] sm:$0xff]  ;;  %v7347_v34 = vpack.c.bf16 %v5446_v0, %v5445_v48  ;;  %7346 = vmatprep.subr.bf16.mxu0 %v7345_v54  ;;  %v5007_v48 = vld [vmem:[%s9764_s10 + $0xf8] sm:$0xff]  ;;  %v5004_v0 = vld [vmem:[%s9764_s10 + $0xe0] sm:$0xff] }
 0x498   :  { %4927 = vst [vmem:[#allocation8] sm:$0xff] %v4923_v11  ;;  %v4921_v29 = vadd.f32 %v5962_v63, %v4910_v13  ;;  %v7349_v36 = vpack.c.bf16 %v5464_v3, %v5463_v49  ;;  %v7257_v54 = vpack.c.bf16 %v5007_v48, %v5005_v47  ;;  %v5006_v49 = vld [vmem:[%s9764_s10 + $0xf0] sm:$0xff]  ;;  %v5198_v3 = vld [vmem:[%s9764_s10 + $0x208] sm:$0xff]  ;;  %v5309_v47 = vld [vmem:[%s9764_s10 + $0x300] sm:$0xff] }
 0x499   :  { %v4926_v30 = vmax.f32 %v4922_v16, 0.0  ;;  %7348 = vmatpush3.bf16.msra.mxu0 %v7347_v34  ;;  %v5311_v48 = vld [vmem:[%s9764_s10 + $0x310] sm:$0xff] }
 0x49a   :  { %v4925_v22 = vmax.f32 %v4921_v29, 0.0  ;;  %7350 = vmatprep.subr.bf16.mxu0 %v7349_v36  ;;  %v5203_v36 = vld [vmem:[%s9764_s10 + $0x230] sm:$0xff] }
 0x49b   :  { %4930 = vst [vmem:[#allocation8 + $0x18] sm:$0xff] %v4926_v30 }
 0x49c   :  { %4929 = vst [vmem:[#allocation8 + $0x10] sm:$0xff] %v4925_v22 }
 0x49f   :  { %v4931_v57 = vld [vmem:[#allocation8] ss:$2 sm:$0xff]  ;;  %v4935_v2 = vld [vmem:[#allocation8 + $0x1] ss:$2 sm:$0xff] }
 0x4a0   :  { %v4938_v12 = vmax.f32 %v4931_v57, %v4935_v2  ;;  %v7233_v2 = vpack.c.bf16 %v4983_v40, %v4981_v38  ;;  %v5208_v38 = vld [vmem:[%s9764_s10 + $0x258] sm:$0xff] }
 0x4a2   :  { %4940 = vst [vmem:[#allocation9] sm:$0xff] %v4938_v12  ;;  %v4982_v12 = vld [vmem:[%s9764_s10 + $0x30] sm:$0xff] }
 0x4a3   :  { %v4933_v61 = vld [vmem:[#allocation8 + $0x10] ss:$2 sm:$0xff]  ;;  %v4937_v1 = vld [vmem:[#allocation8 + $0x11] ss:$2 sm:$0xff]  ;;  %v7235_v59 = vpack.c.bf16 %v4982_v12, %v4980_v58 }
 0x4a4   :  { %v4939_v4 = vmax.f32 %v4933_v61, %v4937_v1  ;;  %v4984_v61 = vld [vmem:[%s9764_s10 + $0x40] sm:$0xff]  ;;  %v4986_v1 = vld [vmem:[%s9764_s10 + $0x50] sm:$0xff] }
 0x4a5   :  { %v7239_v19 = vpack.c.bf16 %v4986_v1, %v4984_v61  ;;  %v5213_v1 = vld [vmem:[%s9764_s10 + $0x280] sm:$0xff] }
 0x4a6   :  { %4941 = vst [vmem:[#allocation9 + $0x8] sm:$0xff] %v4939_v4  ;;  %v4991_v4 = vld [vmem:[%s9764_s10 + $0x78] sm:$0xff] }
 0x4a7   :  { %v7241_v27 = vpack.c.bf16 %v4991_v4, %v4989_v5  ;;  %v5215_v5 = vld [vmem:[%s9764_s10 + $0x290] sm:$0xff]  ;;  %v5218_v4 = vld [vmem:[%s9764_s10 + $0x2a8] sm:$0xff] }
 0x4a9   :  { %v4950_v62 = vld [vmem:[#allocation9 + $0x1] sm:$0x1]  ;;  %v4952_v18 = vld [vmem:[#allocation9 + $0x3] sm:$0x1]  ;;  %v4942_v7 = vld [vmem:[#allocation9] sm:$0x1] }
 0x4aa   :  { %v4954_v26 = vmax.f32 %v4950_v62, %v4952_v18  ;;  %v4944_v14 = vld [vmem:[#allocation9 + $0x2] sm:$0x1]  ;;  %v4958_v25 = vld [vmem:[#allocation9 + $0x4] sm:$0x1]  ;;  %v4960_v28 = vld [vmem:[#allocation9 + $0x6] sm:$0x1]  ;;  %v7247_v18 = vpack.c.bf16 %v4994_v17, %v4992_v46 }
 0x4ab   :  { %v4946_v32 = vmax.f32 %v4942_v7, %v4944_v14  ;;  %v4962_v9 = vmax.f32 %v4958_v25, %v4960_v28  ;;  %v4966_v44 = vld [vmem:[#allocation9 + $0x5] sm:$0x1]  ;;  %v4968_v63 = vld [vmem:[#allocation9 + $0x7] sm:$0x1]  ;;  %v4999_v62 = vld [vmem:[%s9764_s10 + $0xb8] sm:$0xff] }
 0x4ac   :  { %4956 = vst [vmem:[#allocation11 + $0x1] sm:$0x1] %v4954_v26  ;;  %v4970_v51 = vmax.f32 %v4966_v44, %v4968_v63  ;;  %v7249_v7 = vpack.c.bf16 %v4999_v62, %v4997_v50  ;;  %v4996_v26 = vld [vmem:[%s9764_s10 + $0xa0] sm:$0xff]  ;;  %v4998_v14 = vld [vmem:[%s9764_s10 + $0xb0] sm:$0xff]  ;;  %v5001_v25 = vld [vmem:[%s9764_s10 + $0xc8] sm:$0xff] }
 0x4ad   :  { %v4951_v52 = vld [vmem:[#allocation9 + $0x9] sm:$0x1]  ;;  %v4953_v6 = vld [vmem:[#allocation9 + $0xb] sm:$0x1]  ;;  %v4943_v11 = vld [vmem:[#allocation9 + $0x8] sm:$0x1] }
 0x4ae   :  { %4948 = vst [vmem:[#allocation11] sm:$0x1] %v4946_v32  ;;  %4964 = vst [vmem:[#allocation11 + $0x2] sm:$0x1] %v4962_v9  ;;  %v4955_v13 = vmax.f32 %v4951_v52, %v4953_v6  ;;  %v4945_v16 = vld [vmem:[#allocation9 + $0xa] sm:$0x1]  ;;  %v7251_v32 = vpack.c.bf16 %v4998_v14, %v4996_v26 }
 0x4af   :  { %v4959_v29 = vld [vmem:[#allocation9 + $0xc] sm:$0x1]  ;;  %v4961_v30 = vld [vmem:[#allocation9 + $0xe] sm:$0x1]  ;;  %4972 = vst [vmem:[#allocation11 + $0x3] sm:$0x1] %v4970_v51  ;;  %v4947_v22 = vmax.f32 %v4943_v11, %v4945_v16  ;;  %v7259_v11 = vpack.c.bf16 %v5006_v49, %v5004_v0  ;;  %v7295_v49 = vpack.c.bf16 %v5311_v48, %v5309_v47 }
 0x4b0   :  { %v4963_v31 = vmax.f32 %v4959_v29, %v4961_v30  ;;  %v4967_v8 = vld [vmem:[#allocation9 + $0xd] sm:$0x1]  ;;  %v4969_v33 = vld [vmem:[#allocation9 + $0xf] sm:$0x1]  ;;  %4957 = vst [vmem:[#allocation11 + $0x5] sm:$0x1] %v4955_v13 }
 0x4b1   :  { %v4971_v35 = vmax.f32 %v4967_v8, %v4969_v33  ;;  %4949 = vst [vmem:[#allocation11 + $0x4] sm:$0x1] %v4947_v22  ;;  %v5003_v28 = vld [vmem:[%s9764_s10 + $0xd8] sm:$0xff]  ;;  %v5000_v44 = vld [vmem:[%s9764_s10 + $0xc0] sm:$0xff]  ;;  %v5002_v63 = vld [vmem:[%s9764_s10 + $0xd0] sm:$0xff] }
 0x4b2   :  { %4965 = vst [vmem:[#allocation11 + $0x6] sm:$0x1] %v4963_v31  ;;  %v7253_v9 = vpack.c.bf16 %v5003_v28, %v5001_v25  ;;  %v7255_v51 = vpack.c.bf16 %v5002_v63, %v5000_v44  ;;  %v5200_v52 = vld [vmem:[%s9764_s10 + $0x218] sm:$0xff]  ;;  %v5197_v16 = vld [vmem:[%s9764_s10 + $0x200] sm:$0xff]  ;;  %v5199_v29 = vld [vmem:[%s9764_s10 + $0x210] sm:$0xff] }
 0x4b3   :  { %4973 = vst [vmem:[#allocation11 + $0x7] sm:$0x1] %v4971_v35  ;;  %v5008_v57 = vld [vmem:[#allocation11 + $0x1] sm:$0x1]  ;;  %v7261_v13 = vpack.c.bf16 %v5200_v52, %v5198_v3  ;;  %v5202_v22 = vld [vmem:[%s9764_s10 + $0x228] sm:$0xff]  ;;  %v5204_v31 = vld [vmem:[%s9764_s10 + $0x238] sm:$0xff]  ;;  %v7263_v8 = vpack.c.bf16 %v5199_v29, %v5197_v16 }
 0x4b4   :  { %v7265_v34 = vpack.c.bf16 %v5204_v31, %v5202_v22  ;;  %v5201_v35 = vld [vmem:[%s9764_s10 + $0x220] sm:$0xff]  ;;  %v5223_v50 = vld [vmem:[%s9764_s10 + $0x2d0] sm:$0xff]  ;;  %v5226_v62 = vld [vmem:[%s9764_s10 + $0x2e8] sm:$0xff] }
 0x4b5   :  { %v4974_v33 = vld [vmem:[#allocation11] sm:$0x1]  ;;  %v7267_v40 = vpack.c.bf16 %v5203_v36, %v5201_v35  ;;  %v5221_v17 = vld [vmem:[%s9764_s10 + $0x2c0] sm:$0xff]  ;;  %v5310_v28 = vld [vmem:[%s9764_s10 + $0x308] sm:$0xff] }
 0x4b6   :  { %v5225_v14 = vld [vmem:[%s9764_s10 + $0x2e0] sm:$0xff]  ;;  %v5227_v25 = vld [vmem:[%s9764_s10 + $0x2f0] sm:$0xff]  ;;  %v5316_v0 = vld [vmem:[%s9764_s10 + $0x338] sm:$0xff] }
 0x4b7   :  { %v5009_v43 = vld [vmem:[#allocation11 + $0x5] sm:$0x1]  ;;  %v7291_v44 = vpack.c.bf16 %v5227_v25, %v5225_v14  ;;  %v5195_v3 = vld [vmem:[#allocation11 + $0x2] sm:$0x1]  ;;  %v5318_v16 = vld [vmem:[%s9764_s10 + $0x348] sm:$0xff] }
 0x4b8   :  { %v5044_v55 = vrot.slane %v5009_v43, 7  ;;  %v4975_v6 = vld [vmem:[#allocation11 + $0x4] sm:$0x1]  ;;  %v7269_v43 = vpack.c.bf16 %v5208_v38, %v5206_v24  ;;  %v5320_v29 = vld [vmem:[%s9764_s10 + $0x358] sm:$0xff]  ;;  %v5317_v31 = vld [vmem:[%s9764_s10 + $0x340] sm:$0xff] }
 0x4b9   :  { %v5121_v30 = vrot.slane %v4975_v6, 7  ;;  %v5313_v6 = vld [vmem:[%s9764_s10 + $0x320] sm:$0xff]  ;;  %v7301_v22 = vpack.c.bf16 %v5320_v29, %v5318_v16  ;;  %v5326_v24 = vld [vmem:[%s9764_s10 + $0x388] sm:$0xff]  ;;  %v5328_v38 = vld [vmem:[%s9764_s10 + $0x398] sm:$0xff] }
 0x4ba   :  { %v5046_v45 = vsel %vm5045_vm9, %v5044_v55, %v5008_v57  ;;  %v5205_v55 = vld [vmem:[%s9764_s10 + $0x240] sm:$0xff]  ;;  %v5210_v57 = vld [vmem:[%s9764_s10 + $0x268] sm:$0xff]  ;;  %v5449_v14 = vld [vmem:[%s9766_s12 + $0x70] sm:$0xff] }
 0x4bb   :  { %5113 = vmatmul.mubr.f32.vlgmr.msra.gmra.mrb[44].mxu1 %v5046_v45  ;;  %v5122_v37 = vsel %vm5045_vm9, %v5121_v30, %v4974_v33  ;;  %v5209_v45 = vld [vmem:[%s9764_s10 + $0x260] sm:$0xff]  ;;  %v5322_v33 = vld [vmem:[%s9764_s10 + $0x368] sm:$0xff] }
 0x4bc   :  { %7232 = vmatpush1.bf16.msra.mxu1 %v7231_v20  ;;  %5188 = vmatprep.mubr.f32.mxu1 %v7553_v10  ;;  %v5207_v20 = vld [vmem:[%s9764_s10 + $0x250] sm:$0xff]  ;;  %v5321_v36 = vld [vmem:[%s9764_s10 + $0x360] sm:$0xff] }
 0x4bd   :  { %7234 = vmatprep.subr.bf16.mxu1 %v7233_v2  ;;  %v5212_v2 = vld [vmem:[%s9764_s10 + $0x278] sm:$0xff]  ;;  %v7271_v58 = vpack.c.bf16 %v5207_v20, %v5205_v55  ;;  %v5325_v55 = vld [vmem:[%s9764_s10 + $0x380] sm:$0xff]  ;;  %v5327_v20 = vld [vmem:[%s9764_s10 + $0x390] sm:$0xff] }
 0x4be   :  { %v7273_v12 = vpack.c.bf16 %v5212_v2, %v5210_v57  ;;  %v5330_v57 = vld [vmem:[%s9764_s10 + $0x3a8] sm:$0xff]  ;;  %v5332_v2 = vld [vmem:[%s9764_s10 + $0x3b8] sm:$0xff]  ;;  %v5419_v47 = vld [vmem:[%s9765_s11] sm:$0x3]  ;;  %s7528_s11 = scalar_lea.vmem %s5552_s0, 32 }
 0x4bf   :  { %v5963_v29 = vld [vmem:[%s9767_s13] ss:$0 sm:$0xff]  ;;  %p7529_p0 = scmp.ne.s32.totalorder %s5552_s0, %s7528_s11  ;;  %p7534_p2 = scmp.lt.s32.totalorder %s7528_s11, %s7528_s11 }
 0x4c0   :  { %7236 = vmatpush1.bf16.msra.mxu1 %v7235_v59  ;;  %v5216_v59 = vld [vmem:[%s9764_s10 + $0x298] sm:$0xff] }
 0x4c1   :  { %7238 = vmatprep.subr.bf16.mxu1 %v7237_v15  ;;  %v7275_v15 = vpack.c.bf16 %v5211_v60, %v5209_v45  ;;  %v7277_v61 = vpack.c.bf16 %v5216_v59, %v5214_v21  ;;  %v5329_v45 = vld [vmem:[%s9764_s10 + $0x3a0] sm:$0xff]  ;;  %v5331_v60 = vld [vmem:[%s9764_s10 + $0x3b0] sm:$0xff]  ;;  %v5334_v21 = vld [vmem:[%s9764_s10 + $0x3c8] sm:$0xff]  ;;  %p7535_p3 = por %p7534_p2, %p7533_p1 }
 0x4c2   :  { %v5336_v59 = vld [vmem:[%s9764_s10 + $0x3d8] sm:$0xff] }
 0x4c3   :  { %p7536_p4 = pnand %p7535_p3, %p7529_p0 }
 0x4c4   :  { %7240 = vmatpush1.bf16.msra.mxu1 %v7239_v19  ;;  %v5220_v19 = vld [vmem:[%s9764_s10 + $0x2b8] sm:$0xff] }
 0x4c5   :  { %7242 = vmatprep.subr.bf16.mxu1 %v7241_v27  ;;  %v7279_v27 = vpack.c.bf16 %v5215_v5, %v5213_v1  ;;  %v7281_v53 = vpack.c.bf16 %v5220_v19, %v5218_v4  ;;  %v5333_v1 = vld [vmem:[%s9764_s10 + $0x3c0] sm:$0xff]  ;;  %v5335_v5 = vld [vmem:[%s9764_s10 + $0x3d0] sm:$0xff]  ;;  %v5338_v4 = vld [vmem:[%s9764_s10 + $0x3e8] sm:$0xff] }
 0x4c6   :  { %v5340_v19 = vld [vmem:[%s9764_s10 + $0x3f8] sm:$0xff] }
 0x4c8   :  { %7244 = vmatpush1.bf16.msra.mxu1 %v7243_v42  ;;  %v5224_v42 = vld [vmem:[%s9764_s10 + $0x2d8] sm:$0xff] }
 0x4c9   :  { %7246 = vmatprep.subr.bf16.mxu1 %v7245_v56  ;;  %v7283_v56 = vpack.c.bf16 %v5219_v39, %v5217_v23  ;;  %v7285_v46 = vpack.c.bf16 %v5224_v42, %v5222_v41  ;;  %v5337_v23 = vld [vmem:[%s9764_s10 + $0x3e0] sm:$0xff]  ;;  %v5339_v39 = vld [vmem:[%s9764_s10 + $0x3f0] sm:$0xff] }
 0x4ca   :  { %v5308_v41 = vld [vmem:[#allocation11 + $0x7] sm:$0x1]  ;;  %v7323_v42 = vpack.c.bf16 %v5339_v39, %v5337_v23 }
 0x4cc   :  { %7248 = vmatpush1.bf16.msra.mxu1 %v7247_v18  ;;  %v5228_v18 = vld [vmem:[%s9764_s10 + $0x2f8] sm:$0xff] }
 0x4cd   :  { %7250 = vmatprep.subr.bf16.mxu1 %v7249_v7  ;;  %v7287_v7 = vpack.c.bf16 %v5223_v50, %v5221_v17  ;;  %v7289_v26 = vpack.c.bf16 %v5228_v18, %v5226_v62  ;;  %v5447_v50 = vld [vmem:[%s9766_s12 + $0x60] sm:$0xff]  ;;  %v5448_v62 = vld [vmem:[%s9766_s12 + $0x68] sm:$0xff] }
 0x4ce   :  { %v7351_v18 = vpack.c.bf16 %v5448_v62, %v5447_v50 }
 0x4d0   :  { %7252 = vmatpush1.bf16.msra.mxu1 %v7251_v32  ;;  %v5312_v32 = vld [vmem:[%s9764_s10 + $0x318] sm:$0xff]  ;;  %7352 = vmatpush3.bf16.msra.mxu0 %v7351_v18 }
 0x4d1   :  { %7254 = vmatprep.subr.bf16.mxu1 %v7253_v9  ;;  %v5196_v9 = vld [vmem:[#allocation11 + $0x6] sm:$0x1]  ;;  %v7293_v63 = vpack.c.bf16 %v5312_v32, %v5310_v28  ;;  %v5450_v28 = vld [vmem:[%s9766_s12 + $0x78] sm:$0xff] }
 0x4d2   :  { %v7355_v32 = vpack.c.bf16 %v5450_v28, %v5449_v14 }
 0x4d4   :  { %7256 = vmatpush1.bf16.msra.mxu1 %v7255_v51  ;;  %v5231_v51 = vrot.slane %v5196_v9, 7  ;;  %v5421_v9 = vlaneseq }
 0x4d5   :  { %7258 = vmatprep.subr.bf16.mxu1 %v7257_v54  ;;  %v5314_v54 = vld [vmem:[%s9764_s10 + $0x328] sm:$0xff] }
 0x4d6   :  { %v7297_v52 = vpack.c.bf16 %v5316_v0, %v5314_v54 }
 0x4d8   :  { %7260 = vmatpush1.bf16.msra.mxu1 %v7259_v11  ;;  %v5315_v11 = vld [vmem:[%s9764_s10 + $0x330] sm:$0xff] }
 0x4d9   :  { %7262 = vmatprep.subr.bf16.mxu1 %v7261_v13  ;;  %v5232_v13 = vsel %vm5045_vm9, %v5231_v51, %v5195_v3  ;;  %v7299_v30 = vpack.c.bf16 %v5315_v11, %v5313_v6 }
 0x4db   :  { %5189 = vmatmul.mubr.f32.vlgmr.msra.gmra.mrb[44].mxu1 %v5122_v37  ;;  %v5323_v37 = vld [vmem:[%s9764_s10 + $0x370] sm:$0xff] }
 0x4dc   :  { %7264 = vmatpush1.bf16.msra.mxu1 %v7263_v8  ;;  %5298 = vmatprep.mubr.f32.mxu1 %v7553_v10  ;;  %v5319_v8 = vld [vmem:[%s9764_s10 + $0x350] sm:$0xff] }
 0x4dd   :  { %7266 = vmatprep.subr.bf16.mxu1 %v7265_v34  ;;  %v5324_v34 = vld [vmem:[%s9764_s10 + $0x378] sm:$0xff] }
 0x4de   :  { %v7305_v35 = vpack.c.bf16 %v5324_v34, %v5322_v33 }
 0x4e0   :  { %7268 = vmatpush1.bf16.msra.mxu1 %v7267_v40  ;;  %v7307_v40 = vpack.c.bf16 %v5323_v37, %v5321_v36 }
 0x4e1   :  { %7270 = vmatprep.subr.bf16.mxu1 %v7269_v43  ;;  %v7309_v43 = vpack.c.bf16 %v5328_v38, %v5326_v24 }
 0x4e4   :  { %7272 = vmatpush1.bf16.msra.mxu1 %v7271_v58  ;;  %v7311_v58 = vpack.c.bf16 %v5327_v20, %v5325_v55 }
 0x4e5   :  { %7274 = vmatprep.subr.bf16.mxu1 %v7273_v12  ;;  %v7313_v12 = vpack.c.bf16 %v5332_v2, %v5330_v57 }
 0x4e8   :  { %7276 = vmatpush1.bf16.msra.mxu1 %v7275_v15  ;;  %v7315_v15 = vpack.c.bf16 %v5331_v60, %v5329_v45 }
 0x4e9   :  { %7278 = vmatprep.subr.bf16.mxu1 %v7277_v61  ;;  %v7317_v61 = vpack.c.bf16 %v5336_v59, %v5334_v21 }
 0x4ec   :  { %7280 = vmatpush1.bf16.msra.mxu1 %v7279_v27  ;;  %v7319_v27 = vpack.c.bf16 %v5335_v5, %v5333_v1 }
 0x4ed   :  { %7282 = vmatprep.subr.bf16.mxu1 %v7281_v53  ;;  %v7321_v53 = vpack.c.bf16 %v5340_v19, %v5338_v4 }
 0x4f0   :  { %7284 = vmatpush1.bf16.msra.mxu1 %v7283_v56  ;;  %v5343_v56 = vrot.slane %v5308_v41, 7 }
 0x4f1   :  { %7286 = vmatprep.subr.bf16.mxu1 %v7285_v46  ;;  %v5307_v46 = vld [vmem:[#allocation11 + $0x3] sm:$0x1] }
 0x4f2   :  { %v5344_v17 = vsel %vm5045_vm9, %v5343_v56, %v5307_v46 }
 0x4f4   :  { %7288 = vmatpush1.bf16.msra.mxu1 %v7287_v7  ;;  %v5465_v7 = vld [vmem:[%s9766_s12 + $0xf0] sm:$0xff] }
 0x4f5   :  { %7290 = vmatprep.subr.bf16.mxu1 %v7289_v26  ;;  %v5466_v26 = vld [vmem:[%s9766_s12 + $0xf8] sm:$0xff] }
 0x4f6   :  { %v7353_v25 = vpack.c.bf16 %v5466_v26, %v5465_v7 }
 0x4f8   :  { %7292 = vmatpush1.bf16.msra.mxu1 %v7291_v44  ;;  %7354 = vmatprep.subr.bf16.mxu0 %v7353_v25  ;;  %v5422_v44 = vshrl.u32 %v5421_v9, 7 }
 0x4f9   :  { %7294 = vmatprep.subr.bf16.mxu1 %v7293_v63  ;;  %7356 = vmatpush3.bf16.msra.mxu0 %v7355_v32 }
 0x4fa   :  { %v5423_v63 = vsub.s32 0, %v5422_v44  ;;  %v5427_v48 = vsub.s32 1, %v5422_v44 }
 0x4fb   :  { %5299 = vmatmul.mubr.f32.vlgmr.msra.gmra.mrb[44].mxu1 %v5232_v13 }
 0x4fc   :  { %7296 = vmatpush1.bf16.msra.mxu1 %v7295_v49  ;;  %5410 = vmatprep.mubr.f32.mxu1 %v7553_v10  ;;  %v7303_v10 = vpack.c.bf16 %v5319_v8, %v5317_v31  ;;  %v5424_v51 = vrot.slane %v5419_v47, %v5423_v63  ;;  %v5428_v54 = vrot.slane %v5419_v47, %v5427_v48 }
 0x4fd   :  { %7298 = vmatprep.subr.bf16.mxu1 %v7297_v52 }
 0x500   :  { %7300 = vmatpush1.bf16.msra.mxu1 %v7299_v30 }
 0x501   :  { %7302 = vmatprep.subr.bf16.mxu1 %v7301_v22 }
 0x504   :  { %7304 = vmatpush1.bf16.msra.mxu1 %v7303_v10 }
 0x505   :  { %7306 = vmatprep.subr.bf16.mxu1 %v7305_v35 }
 0x508   :  { %7308 = vmatpush1.bf16.msra.mxu1 %v7307_v40 }
 0x509   :  { %7310 = vmatprep.subr.bf16.mxu1 %v7309_v43 }
 0x50c   :  { %7312 = vmatpush1.bf16.msra.mxu1 %v7311_v58 }
 0x50d   :  { %7314 = vmatprep.subr.bf16.mxu1 %v7313_v12 }
 0x510   :  { %7316 = vmatpush1.bf16.msra.mxu1 %v7315_v15 }
 0x511   :  { %7318 = vmatprep.subr.bf16.mxu1 %v7317_v61 }
 0x514   :  { %7320 = vmatpush1.bf16.msra.mxu1 %v7319_v27 }
 0x515   :  { %7322 = vmatprep.subr.bf16.mxu1 %v7321_v53 }
 0x518   :  { %7324 = vmatpush1.bf16.msra.mxu1 %v7323_v42 }
 0x51b   :  { %5411 = vmatmul.mubr.f32.vlgmr.msra.gmra.mrb[44].mxu1 %v5344_v17 }
 0x5ee   :  { %v5412_v0 = vpop.f32.mrb[44].mxu1 }
 0x5ef   :  { %v5431_v49 = vadd.f32 %v5424_v51, %v5412_v0  ;;  %v5414_v3 = vpop.f32.mrb[45].mxu1 }
 0x5f0   :  { %v5432_v52 = vadd.f32 %v5428_v54, %v5414_v3 }
 0x5f1   :  { %v5433_v11 = vmax.f32 %v5431_v49, 0.0 }
 0x5f2   :  { %v5434_v6 = vmax.f32 %v5432_v52, 0.0 }
 0x5f4   :  { %5538 = vmatprep.mubr.f32.mxu0 %v5434_v6 }
 0x5f5   :  { %5539 = vmatmul.mubr.f32.vlgmr.msra.gmra.mrb[40].mxu0 %v5433_v11 }
 0x6c8   :  { %v6356_v13 = vpop.f32.mrb[40].mxu0 }
 0x6c9   :  { %v6357_v16 = vpop.f32.mrb[41].mxu0 }
 0x6ca   :  { %v6358_v30 = vadd.f32 %v6357_v16, %v6356_v13 }
 0x6cc   :  { %v5541_v22 = vadd.f32 %v6358_v30, %v5963_v29 }
 0x6ce   :  { %5544 = vst [vmem:[#allocation12] sm:$0x3] %v5541_v22 }
 0x6cf   :  { %7539 = shalt.err (!%p7536_p4)
}
 0x6d0   :  { %s7540_s18 = scalar_lea.hbm %s9768_s14, 32 }
 0x6d1   :  { %p7541_p5 = scmp.ne.s32.totalorder %s9768_s14, %s7540_s18  ;;  %p7544_p6 = scmp.lt.u32.totalorder %s7540_s18, %s9768_s14 }
 0x6d3   :  { %p7546_p7 = pnand %p7544_p6, %p7541_p5 }
 0x6d5   :  { %7549 = shalt.err (!%p7546_p7)
}
 0x6d6   :  { %5554 = dma.vmem_to_hbm [thread:$0]  %s5552_s0, 32, %s9768_s14, [#allocation13]  }
 0x6d7   :  { %7550 = dma.done.wait [#allocation13], 32  }
 0x6d8   :  { %7551 = vsyncadd [#allocation13], 4294967264 }
 0x6d9   :  { %5558 = vsyncpa [#allocation13], 1 }

</bundles_post_ra>
